<compile_context>
chip_gen: v7x
topology: tpu7x:2x2x1
jax: 0.10.0
libtpu: 0.0.40
codegen_flags: <defaults>
</compile_context>

<pallas_src>
import functools
import math

import jax
import jax.numpy as jnp
from jax import lax
from jax.experimental import pallas as pl
from jax.experimental.pallas import tpu as pltpu


DILATIONS = (6, 12, 18)
BN_EPS = 1e-5


def _round_up(x, m):
    return ((x + m - 1) // m) * m


# --------------------------------------------------------------------------
# Pallas fused GEMM: out = A @ B + bias, optional fused ReLU epilogue.
# f32 accumulation directly in the resident output block (no scratch).
# --------------------------------------------------------------------------

def _gemm_bias_kernel(a_ref, b_ref, bias_ref, o_ref, *, apply_relu):
    k = pl.program_id(2)

    @pl.when(k == 0)
    def _():
        # initialize the resident accumulator with the (folded) bias
        o_ref[...] = jnp.broadcast_to(bias_ref[...], o_ref.shape)

    o_ref[...] += jnp.dot(a_ref[...], b_ref[...],
                          preferred_element_type=jnp.float32)

    if apply_relu:
        @pl.when(k == pl.num_programs(2) - 1)
        def _():
            o_ref[...] = jnp.maximum(o_ref[...], 0.0)


@functools.lru_cache(maxsize=None)
def _gemm_call(M, K, N, apply_relu):
    """Build (and cache) a padded, tiled Pallas GEMM for logical (M,K)@(K,N)."""
    # M tiles: cap at 128/256 rows; always pad M to a tile multiple so a large
    # (or awkward) M never becomes a single huge VMEM block.
    if M >= 512:
        tm = 256
    elif M >= 128:
        tm = 128
    else:
        tm = _round_up(max(M, 8), 8)
    Mp = _round_up(M, tm)

    Np = _round_up(N, 128)
    tn = 512 if Np % 512 == 0 else (256 if Np % 256 == 0 else 128)

    Kp = _round_up(K, 128)
    tk = 512 if Kp % 512 == 0 else (256 if Kp % 256 == 0 else 128)

    grid = (Mp // tm, Np // tn, Kp // tk)

    call = pl.pallas_call(
        functools.partial(_gemm_bias_kernel, apply_relu=apply_relu),
        out_shape=jax.ShapeDtypeStruct((Mp, Np), jnp.float32),
        grid_spec=pltpu.PrefetchScalarGridSpec(
            num_scalar_prefetch=0,
            grid=grid,
            in_specs=[pl.BlockSpec((tm, tk), lambda i, j, k: (i, k)),
                      pl.BlockSpec((tk, tn), lambda i, j, k: (k, j)),
                      pl.BlockSpec((1, tn), lambda i, j, k: (0, j))],
            out_specs=pl.BlockSpec((tm, tn), lambda i, j, k: (i, j))),
        compiler_params=pltpu.CompilerParams(
            dimension_semantics=("parallel", "parallel", "arbitrary")),
    )
    return call, Mp, Kp, Np


def matmul_bias(a, b, bias, apply_relu=False):
    """(M,K)@(K,N) + bias[N] with optional fused ReLU, via the Pallas GEMM."""
    M, K = a.shape
    N = b.shape[1]
    call, Mp, Kp, Np = _gemm_call(M, K, N, bool(apply_relu))
    a_p = jnp.pad(a, ((0, Mp - M), (0, Kp - K)))
    b_p = jnp.pad(b, ((0, Kp - K), (0, Np - N)))
    bias_p = jnp.pad(bias, (0, Np - N)).reshape(1, Np)
    out = call(a_p, b_p, bias_p)
    return out[:M, :N]


# --------------------------------------------------------------------------
# Conv blocks (BN folded into the GEMM, ReLU fused in the epilogue)
# --------------------------------------------------------------------------

def _fold_bn(w, b, bn, eps=BN_EPS):
    """Fold inference-mode BatchNorm into conv weights/bias."""
    scale = bn['gamma'] * lax.rsqrt(bn['var'] + eps)
    shift = bn['beta'] - bn['mean'] * scale
    return w * scale, b * scale + shift


def conv1x1_block(x, p, relu=True):
    """Conv2dBlock with 1x1 conv: conv -> BN -> ReLU, fully fused into one GEMM."""
    w, b = _fold_bn(p['conv']['w'], p['conv']['b'], p['bn'])
    n, h, wd, c = x.shape
    cout = w.shape[-1]
    y = matmul_bias(x.reshape(-1, c), w.reshape(c, cout), b, apply_relu=relu)
    return y.reshape(n, h, wd, cout)


def conv1x1(x, p):
    """Plain 1x1 conv with bias (no BN / activation)."""
    n, h, wd, c = x.shape
    cout = p['w'].shape[-1]
    y = matmul_bias(x.reshape(-1, c), p['w'].reshape(c, cout), p['b'],
                    apply_relu=False)
    return y.reshape(n, h, wd, cout)


def conv3x3_block(x, p, dilation=1, relu=True):
    """Conv2dBlock with a SAME-size 3x3 conv (stride 1, padding == dilation).

    Lowered WITHOUT im2col: the 9 kernel taps are folded into the GEMM N dim
    (B matrix is (Cin, 9*Cout)), so only the raw activation streams through the
    MXU. The 9 per-tap outputs (Cout channels each) are then spatially
    shift-added together with the folded bias and ReLU in one XLA fusion.
    """
    w, b = _fold_bn(p['conv']['w'], p['conv']['b'], p['bn'])
    n, h, wd, cin = x.shape
    kh, kw, _, cout = w.shape
    d = dilation

    # B[c, tap*cout + o] = w[ih, iw, c, o]  (tap-major along N)
    bmat = jnp.transpose(w, (2, 0, 1, 3)).reshape(cin, kh * kw * cout)
    y = matmul_bias(x.reshape(-1, cin), bmat,
                    jnp.zeros((kh * kw * cout,), jnp.float32), apply_relu=False)
    y = y.reshape(n, h, wd, kh * kw, cout)

    out = jnp.broadcast_to(b, (n, h, wd, cout))
    for ih in range(kh):
        for iw in range(kw):
            sy = (ih - 1) * d          # out[y, x] += Y_tap[y + sy, x + sx]
            sx = (iw - 1) * d
            y_lo, y_hi = max(0, -sy), min(h, h - sy)
            x_lo, x_hi = max(0, -sx), min(wd, wd - sx)
            if y_lo >= y_hi or x_lo >= x_hi:
                continue               # tap only touches zero padding
            src = y[:, y_lo + sy:y_hi + sy, x_lo + sx:x_hi + sx, ih * kw + iw, :]
            term = jnp.pad(src, ((0, 0), (y_lo, h - y_hi),
                                 (x_lo, wd - x_hi), (0, 0)))
            out = out + term
    if relu:
        out = jnp.maximum(out, 0.0)
    return out


# --------------------------------------------------------------------------
# Glue ops (bilinear resize matches F.interpolate align_corners=False)
# --------------------------------------------------------------------------

def bilinear_resize(x, out_h, out_w):
    n, h, w, c = x.shape
    if h == out_h and w == out_w:
        return x
    ys = jnp.clip((jnp.arange(out_h, dtype=jnp.float32) + 0.5) * (h / out_h) - 0.5,
                  0.0, h - 1.0)
    xs = jnp.clip((jnp.arange(out_w, dtype=jnp.float32) + 0.5) * (w / out_w) - 0.5,
                  0.0, w - 1.0)
    y0 = jnp.floor(ys).astype(jnp.int32)
    x0 = jnp.floor(xs).astype(jnp.int32)
    y1 = jnp.minimum(y0 + 1, h - 1)
    x1 = jnp.minimum(x0 + 1, w - 1)
    wy = (ys - y0.astype(jnp.float32))[None, :, None, None]
    wx = (xs - x0.astype(jnp.float32))[None, None, :, None]

    def gather(yi, xi):
        return x[:, yi][:, :, xi]

    top = gather(y0, x0) * (1.0 - wx) + gather(y0, x1) * wx
    bot = gather(y1, x0) * (1.0 - wx) + gather(y1, x1) * wx
    return top * (1.0 - wy) + bot * wy


# --------------------------------------------------------------------------
# Module forwards
# --------------------------------------------------------------------------

def aspp_forward(x, p):
    """ASPP: 1x1 branch + dilated 3x3 branches + image pooling -> concat -> project."""
    n, h, w, _ = x.shape
    outs = [conv1x1_block(x, p['b0'], relu=True)]
    for d, bp in zip(DILATIONS, p['branches']):
        outs.append(conv3x3_block(x, bp, dilation=d, relu=True))
    # image pooling branch: global average pool -> 1x1 conv block -> bilinear to
    # (h, w). Bilinear upsampling from a 1x1 map is an exact broadcast.
    pooled = jnp.mean(x, axis=(1, 2), keepdims=True)
    pooled = conv1x1_block(pooled, p['pool'], relu=True)
    outs.append(jnp.broadcast_to(pooled, (n, h, w, pooled.shape[-1])))
    cat = jnp.concatenate(outs, axis=-1)
    out = conv1x1_block(cat, p['project'], relu=True)
    # Dropout(0.1) is identity in eval mode.
    return out


def head_forward(x0_nchw, x1_nchw, params):
    """Head.forward((x_0, x_1)) -> logits at x_0 resolution (NCHW in/out)."""
    x0 = jnp.transpose(x0_nchw, (0, 2, 3, 1)).astype(jnp.float32)  # NCHW -> NHWC
    x1 = jnp.transpose(x1_nchw, (0, 2, 3, 1)).astype(jnp.float32)

    low = conv1x1_block(x0, params['project'], relu=True)          # (n,H0,W0,48)
    a = aspp_forward(x1, params['aspp'])                           # (n,H1,W1,256)
    a_up = bilinear_resize(a, x0.shape[1], x0.shape[2])            # (n,H0,W0,256)
    cat = jnp.concatenate([low, a_up], axis=-1)                    # 304 channels

    y = conv3x3_block(cat, params['cls0'], dilation=1, relu=True)  # 3x3, pad 1 -> 256
    y = conv1x1(y, params['cls1'])                                 # -> num_category
    return jnp.transpose(y, (0, 3, 1, 2))                          # NHWC -> NCHW


# --------------------------------------------------------------------------
# Deterministic parameter initialization (shapes follow the module __init__)
# --------------------------------------------------------------------------

class _KeyGen:
    def __init__(self, seed):
        self._key = jax.random.PRNGKey(seed)

    def __call__(self):
        self._key, sub = jax.random.split(self._key)
        return sub


def init_conv(kg, cin, cout, k):
    bound = 1.0 / math.sqrt(cin * k * k)
    return {'w': jax.random.uniform(kg(), (k, k, cin, cout), jnp.float32, -bound, bound),
            'b': jax.random.uniform(kg(), (cout,), jnp.float32, -bound, bound)}


def init_bn(kg, c):
    return {'gamma': jax.random.uniform(kg(), (c,), jnp.float32, 0.5, 1.5),
            'beta': jax.random.uniform(kg(), (c,), jnp.float32, -0.2, 0.2),
            'mean': jax.random.uniform(kg(), (c,), jnp.float32, -0.2, 0.2),
            'var': jax.random.uniform(kg(), (c,), jnp.float32, 0.5, 1.5)}


def init_conv_block(kg, cin, cout, k):
    return {'conv': init_conv(kg, cin, cout, k), 'bn': init_bn(kg, cout)}


def init_head(num_category, in_channels=(128, 2048), seed=0):
    kg = _KeyGen(seed)
    return {
        'project': init_conv_block(kg, in_channels[0], 48, 1),
        'aspp': {
            'b0': init_conv_block(kg, in_channels[1], 256, 1),
            'branches': [init_conv_block(kg, in_channels[1], 256, 3)
                         for _ in DILATIONS],
            'pool': init_conv_block(kg, in_channels[1], 256, 1),
            'project': init_conv_block(kg, 256 * (len(DILATIONS) + 2), 256, 1),
        },
        'cls0': init_conv_block(kg, 304, 256, 3),
        'cls1': init_conv(kg, 256, num_category, 1),
    }


# --------------------------------------------------------------------------

if __name__ == "__main__":
    num_category = 21
    key = jax.random.PRNGKey(0)
    k0, k1 = jax.random.split(key)

    # Head inputs: low-level features (stride 4, 128 ch) and high-level
    # features (stride 16, 2048 ch) at small, consistent spatial sizes.
    x0 = jax.random.normal(k0, (2, 128, 16, 16), jnp.float32)
    x1 = jax.random.normal(k1, (2, 2048, 4, 4), jnp.float32)
    params = init_head(num_category, in_channels=(128, 2048), seed=0)

    fwd = jax.jit(head_forward)          # single jit around the whole forward
    out = fwd(x0, x1, params)
    jax.block_until_ready(out)

    assert out.shape == (2, num_category, 16, 16), out.shape
    assert bool(jnp.all(jnp.isfinite(out)))
    print("KERNEL_OK")
</pallas_src>

<mosaic_0001>
module attributes {stable_mosaic.version = 11 : i64} {
  func.func @_gemm_bias_kernel(%arg0: i32, %arg1: i32, %arg2: i32, %arg3: memref<32x512xf32, #tpu.memory_space<vmem>>, %arg4: memref<512x256xf32, #tpu.memory_space<vmem>>, %arg5: memref<1x256xf32, #tpu.memory_space<vmem>>, %arg6: memref<32x256xf32, #tpu.memory_space<vmem>>) attributes {dimension_semantics = [#tpu.dimension_semantics<parallel>, #tpu.dimension_semantics<parallel>, #tpu.dimension_semantics<arbitrary>], iteration_bounds = array<i64: 1, 9, 4>, scalar_prefetch = 0 : i64, scratch_operands = 0 : i64, tpu.core_type = #tpu.core_type<tc>, window_params = [{transform_indices = @transform_0, window_bounds = array<i64: 32, 512>}, {transform_indices = @transform_1, window_bounds = array<i64: 512, 256>}, {transform_indices = @transform_2, window_bounds = array<i64: 1, 256>}, {transform_indices = @transform_3, window_bounds = array<i64: 32, 256>}]} {
    %c0_i32 = arith.constant 0 : i32
    %0 = arith.cmpi eq, %arg2, %c0_i32 : i32
    %1 = arith.extui %0 : i1 to i32
    %c0_i32_0 = arith.constant 0 : i32
    %2 = arith.cmpi ne, %1, %c0_i32_0 : i32
    scf.if %2 {
      %c0_8 = arith.constant 0 : index
      %c0_9 = arith.constant 0 : index
      %9 = vector.load %arg5[%c0_8, %c0_9] : memref<1x256xf32, #tpu.memory_space<vmem>>, vector<1x256xf32>
      %10 = vector.shape_cast %9 : vector<1x256xf32> to vector<1x256xf32>
      %11 = vector.broadcast %10 : vector<1x256xf32> to vector<32x256xf32>
      %c0_10 = arith.constant 0 : index
      %c0_11 = arith.constant 0 : index
      %12 = vector.load %arg6[%c0_10, %c0_11] : memref<32x256xf32, #tpu.memory_space<vmem>>, vector<32x256xf32>
      tpu.vector_store %arg6[%c0_10, %c0_11], %11 {strides = array<i32>} : memref<32x256xf32, #tpu.memory_space<vmem>>, vector<32x256xf32>,
    } else {
    }
    %c0 = arith.constant 0 : index
    %c0_1 = arith.constant 0 : index
    %3 = vector.load %arg6[%c0, %c0_1] : memref<32x256xf32, #tpu.memory_space<vmem>>, vector<32x256xf32>
    %c0_2 = arith.constant 0 : index
    %c0_3 = arith.constant 0 : index
    %4 = vector.load %arg3[%c0_2, %c0_3] : memref<32x512xf32, #tpu.memory_space<vmem>>, vector<32x512xf32>
    %c0_4 = arith.constant 0 : index
    %c0_5 = arith.constant 0 : index
    %5 = vector.load %arg4[%c0_4, %c0_5] : memref<512x256xf32, #tpu.memory_space<vmem>>, vector<512x256xf32>
    %cst = arith.constant dense<0.000000e+00> : vector<32x256xf32>
    %6 = tpu.matmul %4, %5, %cst {dimension_numbers = #tpu.dot_dimension_numbers<[1], [0], [0], [1], [0, 0, 1, 1], [], []>} : vector<32x512xf32>, vector<512x256xf32>, vector<32x256xf32> -> vector<32x256xf32>
    %7 = arith.addf %3, %6 : vector<32x256xf32>
    %c0_6 = arith.constant 0 : index
    %c0_7 = arith.constant 0 : index
    %8 = vector.load %arg6[%c0_6, %c0_7] : memref<32x256xf32, #tpu.memory_space<vmem>>, vector<32x256xf32>
    tpu.vector_store %arg6[%c0_6, %c0_7], %7 {strides = array<i32>} : memref<32x256xf32, #tpu.memory_space<vmem>>, vector<32x256xf32>,
    return
  }
  func.func @transform_0(%arg0: i32, %arg1: i32, %arg2: i32) -> (i32, i32) {
    %c0_i32 = arith.constant 0 : i32
    return %arg0, %arg2 : i32, i32
  }
  func.func @transform_1(%arg0: i32, %arg1: i32, %arg2: i32) -> (i32, i32) {
    %c0_i32 = arith.constant 0 : i32
    return %arg2, %arg1 : i32, i32
  }
  func.func @transform_2(%arg0: i32, %arg1: i32, %arg2: i32) -> (i32, i32) {
    %c0_i32 = arith.constant 0 : i32
    %c0_i32_0 = arith.constant 0 : i32
    return %c0_i32, %arg1 : i32, i32
  }
  func.func @transform_3(%arg0: i32, %arg1: i32, %arg2: i32) -> (i32, i32) {
    %c0_i32 = arith.constant 0 : i32
    return %arg0, %arg1 : i32, i32
  }
}

module attributes {stable_mosaic.version = 11 : i64} {
  func.func @_gemm_bias_kernel(%arg0: i32, %arg1: i32, %arg2: i32, %arg3: memref<32x512xf32, #tpu.memory_space<vmem>>, %arg4: memref<512x256xf32, #tpu.memory_space<vmem>>, %arg5: memref<1x256xf32, #tpu.memory_space<vmem>>, %arg6: memref<32x256xf32, #tpu.memory_space<vmem>>) attributes {dimension_semantics = [#tpu.dimension_semantics<parallel>, #tpu.dimension_semantics<parallel>, #tpu.dimension_semantics<arbitrary>], iteration_bounds = array<i64: 1, 1, 4>, scalar_prefetch = 0 : i64, scratch_operands = 0 : i64, tpu.core_type = #tpu.core_type<tc>, window_params = [{transform_indices = @transform_0, window_bounds = array<i64: 32, 512>}, {transform_indices = @transform_1, window_bounds = array<i64: 512, 256>}, {transform_indices = @transform_2, window_bounds = array<i64: 1, 256>}, {transform_indices = @transform_3, window_bounds = array<i64: 32, 256>}]} {
    %c0_i32 = arith.constant 0 : i32
    %0 = arith.cmpi eq, %arg2, %c0_i32 : i32
    %1 = arith.extui %0 : i1 to i32
    %c0_i32_0 = arith.constant 0 : i32
    %2 = arith.cmpi ne, %1, %c0_i32_0 : i32
    scf.if %2 {
      %c0_9 = arith.constant 0 : index
      %c0_10 = arith.constant 0 : index
      %12 = vector.load %arg5[%c0_9, %c0_10] : memref<1x256xf32, #tpu.memory_space<vmem>>, vector<1x256xf32>
      %13 = vector.shape_cast %12 : vector<1x256xf32> to vector<1x256xf32>
      %14 = vector.broadcast %13 : vector<1x256xf32> to vector<32x256xf32>
      %c0_11 = arith.constant 0 : index
      %c0_12 = arith.constant 0 : index
      %15 = vector.load %arg6[%c0_11, %c0_12] : memref<32x256xf32, #tpu.memory_space<vmem>>, vector<32x256xf32>
      tpu.vector_store %arg6[%c0_11, %c0_12], %14 {strides = array<i32>} : memref<32x256xf32, #tpu.memory_space<vmem>>, vector<32x256xf32>,
    } else {
    }
    %c0 = arith.constant 0 : index
    %c0_1 = arith.constant 0 : index
    %3 = vector.load %arg6[%c0, %c0_1] : memref<32x256xf32, #tpu.memory_space<vmem>>, vector<32x256xf32>
    %c0_2 = arith.constant 0 : index
    %c0_3 = arith.constant 0 : index
    %4 = vector.load %arg3[%c0_2, %c0_3] : memref<32x512xf32, #tpu.memory_space<vmem>>, vector<32x512xf32>
    %c0_4 = arith.constant 0 : index
    %c0_5 = arith.constant 0 : index
    %5 = vector.load %arg4[%c0_4, %c0_5] : memref<512x256xf32, #tpu.memory_space<vmem>>, vector<512x256xf32>
    %cst = arith.constant dense<0.000000e+00> : vector<32x256xf32>
    %6 = tpu.matmul %4, %5, %cst {dimension_numbers = #tpu.dot_dimension_numbers<[1], [0], [0], [1], [0, 0, 1, 1], [], []>} : vector<32x512xf32>, vector<512x256xf32>, vector<32x256xf32> -> vector<32x256xf32>
    %7 = arith.addf %3, %6 : vector<32x256xf32>
    %c0_6 = arith.constant 0 : index
    %c0_7 = arith.constant 0 : index
    %8 = vector.load %arg6[%c0_6, %c0_7] : memref<32x256xf32, #tpu.memory_space<vmem>>, vector<32x256xf32>
    tpu.vector_store %arg6[%c0_6, %c0_7], %7 {strides = array<i32>} : memref<32x256xf32, #tpu.memory_space<vmem>>, vector<32x256xf32>,
    %c3_i32 = arith.constant 3 : i32
    %9 = arith.cmpi eq, %arg2, %c3_i32 : i32
    %10 = arith.extui %9 : i1 to i32
    %c0_i32_8 = arith.constant 0 : i32
    %11 = arith.cmpi ne, %10, %c0_i32_8 : i32
    scf.if %11 {
      %c0_9 = arith.constant 0 : index
      %c0_10 = arith.constant 0 : index
      %12 = vector.load %arg6[%c0_9, %c0_10] : memref<32x256xf32, #tpu.memory_space<vmem>>, vector<32x256xf32>
      %cst_11 = arith.constant 0.000000e+00 : f32
      %13 = vector.broadcast %cst_11 : f32 to vector<32x256xf32>
      %14 = arith.maximumf %12, %13 : vector<32x256xf32>
      %c0_12 = arith.constant 0 : index
      %c0_13 = arith.constant 0 : index
      %15 = vector.load %arg6[%c0_12, %c0_13] : memref<32x256xf32, #tpu.memory_space<vmem>>, vector<32x256xf32>
      tpu.vector_store %arg6[%c0_12, %c0_13], %14 {strides = array<i32>} : memref<32x256xf32, #tpu.memory_space<vmem>>, vector<32x256xf32>,
    } else {
    }
    return
  }
  func.func @transform_0(%arg0: i32, %arg1: i32, %arg2: i32) -> (i32, i32) {
    %c0_i32 = arith.constant 0 : i32
    return %arg0, %arg2 : i32, i32
  }
  func.func @transform_1(%arg0: i32, %arg1: i32, %arg2: i32) -> (i32, i32) {
    %c0_i32 = arith.constant 0 : i32
    return %arg2, %arg1 : i32, i32
  }
  func.func @transform_2(%arg0: i32, %arg1: i32, %arg2: i32) -> (i32, i32) {
    %c0_i32 = arith.constant 0 : i32
    %c0_i32_0 = arith.constant 0 : i32
    return %c0_i32, %arg1 : i32, i32
  }
  func.func @transform_3(%arg0: i32, %arg1: i32, %arg2: i32) -> (i32, i32) {
    %c0_i32 = arith.constant 0 : i32
    return %arg0, %arg1 : i32, i32
  }
}

module attributes {stable_mosaic.version = 11 : i64} {
  func.func @_gemm_bias_kernel(%arg0: i32, %arg1: i32, %arg2: i32, %arg3: memref<8x512xf32, #tpu.memory_space<vmem>>, %arg4: memref<512x256xf32, #tpu.memory_space<vmem>>, %arg5: memref<1x256xf32, #tpu.memory_space<vmem>>, %arg6: memref<8x256xf32, #tpu.memory_space<vmem>>) attributes {dimension_semantics = [#tpu.dimension_semantics<parallel>, #tpu.dimension_semantics<parallel>, #tpu.dimension_semantics<arbitrary>], iteration_bounds = array<i64: 1, 1, 4>, scalar_prefetch = 0 : i64, scratch_operands = 0 : i64, tpu.core_type = #tpu.core_type<tc>, window_params = [{transform_indices = @transform_0, window_bounds = array<i64: 8, 512>}, {transform_indices = @transform_1, window_bounds = array<i64: 512, 256>}, {transform_indices = @transform_2, window_bounds = array<i64: 1, 256>}, {transform_indices = @transform_3, window_bounds = array<i64: 8, 256>}]} {
    %c0_i32 = arith.constant 0 : i32
    %0 = arith.cmpi eq, %arg2, %c0_i32 : i32
    %1 = arith.extui %0 : i1 to i32
    %c0_i32_0 = arith.constant 0 : i32
    %2 = arith.cmpi ne, %1, %c0_i32_0 : i32
    scf.if %2 {
      %c0_9 = arith.constant 0 : index
      %c0_10 = arith.constant 0 : index
      %12 = vector.load %arg5[%c0_9, %c0_10] : memref<1x256xf32, #tpu.memory_space<vmem>>, vector<1x256xf32>
      %13 = vector.shape_cast %12 : vector<1x256xf32> to vector<1x256xf32>
      %14 = vector.broadcast %13 : vector<1x256xf32> to vector<8x256xf32>
      %c0_11 = arith.constant 0 : index
      %c0_12 = arith.constant 0 : index
      %15 = vector.load %arg6[%c0_11, %c0_12] : memref<8x256xf32, #tpu.memory_space<vmem>>, vector<8x256xf32>
      tpu.vector_store %arg6[%c0_11, %c0_12], %14 {strides = array<i32>} : memref<8x256xf32, #tpu.memory_space<vmem>>, vector<8x256xf32>,
    } else {
    }
    %c0 = arith.constant 0 : index
    %c0_1 = arith.constant 0 : index
    %3 = vector.load %arg6[%c0, %c0_1] : memref<8x256xf32, #tpu.memory_space<vmem>>, vector<8x256xf32>
    %c0_2 = arith.constant 0 : index
    %c0_3 = arith.constant 0 : index
    %4 = vector.load %arg3[%c0_2, %c0_3] : memref<8x512xf32, #tpu.memory_space<vmem>>, vector<8x512xf32>
    %c0_4 = arith.constant 0 : index
    %c0_5 = arith.constant 0 : index
    %5 = vector.load %arg4[%c0_4, %c0_5] : memref<512x256xf32, #tpu.memory_space<vmem>>, vector<512x256xf32>
    %cst = arith.constant dense<0.000000e+00> : vector<8x256xf32>
    %6 = tpu.matmul %4, %5, %cst {dimension_numbers = #tpu.dot_dimension_numbers<[1], [0], [0], [1], [0, 0, 1, 1], [], []>} : vector<8x512xf32>, vector<512x256xf32>, vector<8x256xf32> -> vector<8x256xf32>
    %7 = arith.addf %3, %6 : vector<8x256xf32>
    %c0_6 = arith.constant 0 : index
    %c0_7 = arith.constant 0 : index
    %8 = vector.load %arg6[%c0_6, %c0_7] : memref<8x256xf32, #tpu.memory_space<vmem>>, vector<8x256xf32>
    tpu.vector_store %arg6[%c0_6, %c0_7], %7 {strides = array<i32>} : memref<8x256xf32, #tpu.memory_space<vmem>>, vector<8x256xf32>,
    %c3_i32 = arith.constant 3 : i32
    %9 = arith.cmpi eq, %arg2, %c3_i32 : i32
    %10 = arith.extui %9 : i1 to i32
    %c0_i32_8 = arith.constant 0 : i32
    %11 = arith.cmpi ne, %10, %c0_i32_8 : i32
    scf.if %11 {
      %c0_9 = arith.constant 0 : index
      %c0_10 = arith.constant 0 : index
      %12 = vector.load %arg6[%c0_9, %c0_10] : memref<8x256xf32, #tpu.memory_space<vmem>>, vector<8x256xf32>
      %cst_11 = arith.constant 0.000000e+00 : f32
      %13 = vector.broadcast %cst_11 : f32 to vector<8x256xf32>
      %14 = arith.maximumf %12, %13 : vector<8x256xf32>
      %c0_12 = arith.constant 0 : index
      %c0_13 = arith.constant 0 : index
      %15 = vector.load %arg6[%c0_12, %c0_13] : memref<8x256xf32, #tpu.memory_space<vmem>>, vector<8x256xf32>
      tpu.vector_store %arg6[%c0_12, %c0_13], %14 {strides = array<i32>} : memref<8x256xf32, #tpu.memory_space<vmem>>, vector<8x256xf32>,
    } else {
    }
    return
  }
  func.func @transform_0(%arg0: i32, %arg1: i32, %arg2: i32) -> (i32, i32) {
    %c0_i32 = arith.constant 0 : i32
    return %arg0, %arg2 : i32, i32
  }
  func.func @transform_1(%arg0: i32, %arg1: i32, %arg2: i32) -> (i32, i32) {
    %c0_i32 = arith.constant 0 : i32
    return %arg2, %arg1 : i32, i32
  }
  func.func @transform_2(%arg0: i32, %arg1: i32, %arg2: i32) -> (i32, i32) {
    %c0_i32 = arith.constant 0 : i32
    %c0_i32_0 = arith.constant 0 : i32
    return %c0_i32, %arg1 : i32, i32
  }
  func.func @transform_3(%arg0: i32, %arg1: i32, %arg2: i32) -> (i32, i32) {
    %c0_i32 = arith.constant 0 : i32
    return %arg0, %arg1 : i32, i32
  }
}

module attributes {stable_mosaic.version = 11 : i64} {
  func.func @_gemm_bias_kernel(%arg0: i32, %arg1: i32, %arg2: i32, %arg3: memref<32x256xf32, #tpu.memory_space<vmem>>, %arg4: memref<256x256xf32, #tpu.memory_space<vmem>>, %arg5: memref<1x256xf32, #tpu.memory_space<vmem>>, %arg6: memref<32x256xf32, #tpu.memory_space<vmem>>) attributes {dimension_semantics = [#tpu.dimension_semantics<parallel>, #tpu.dimension_semantics<parallel>, #tpu.dimension_semantics<arbitrary>], iteration_bounds = array<i64: 1, 1, 5>, scalar_prefetch = 0 : i64, scratch_operands = 0 : i64, tpu.core_type = #tpu.core_type<tc>, window_params = [{transform_indices = @transform_0, window_bounds = array<i64: 32, 256>}, {transform_indices = @transform_1, window_bounds = array<i64: 256, 256>}, {transform_indices = @transform_2, window_bounds = array<i64: 1, 256>}, {transform_indices = @transform_3, window_bounds = array<i64: 32, 256>}]} {
    %c0_i32 = arith.constant 0 : i32
    %0 = arith.cmpi eq, %arg2, %c0_i32 : i32
    %1 = arith.extui %0 : i1 to i32
    %c0_i32_0 = arith.constant 0 : i32
    %2 = arith.cmpi ne, %1, %c0_i32_0 : i32
    scf.if %2 {
      %c0_9 = arith.constant 0 : index
      %c0_10 = arith.constant 0 : index
      %12 = vector.load %arg5[%c0_9, %c0_10] : memref<1x256xf32, #tpu.memory_space<vmem>>, vector<1x256xf32>
      %13 = vector.shape_cast %12 : vector<1x256xf32> to vector<1x256xf32>
      %14 = vector.broadcast %13 : vector<1x256xf32> to vector<32x256xf32>
      %c0_11 = arith.constant 0 : index
      %c0_12 = arith.constant 0 : index
      %15 = vector.load %arg6[%c0_11, %c0_12] : memref<32x256xf32, #tpu.memory_space<vmem>>, vector<32x256xf32>
      tpu.vector_store %arg6[%c0_11, %c0_12], %14 {strides = array<i32>} : memref<32x256xf32, #tpu.memory_space<vmem>>, vector<32x256xf32>,
    } else {
    }
    %c0 = arith.constant 0 : index
    %c0_1 = arith.constant 0 : index
    %3 = vector.load %arg6[%c0, %c0_1] : memref<32x256xf32, #tpu.memory_space<vmem>>, vector<32x256xf32>
    %c0_2 = arith.constant 0 : index
    %c0_3 = arith.constant 0 : index
    %4 = vector.load %arg3[%c0_2, %c0_3] : memref<32x256xf32, #tpu.memory_space<vmem>>, vector<32x256xf32>
    %c0_4 = arith.constant 0 : index
    %c0_5 = arith.constant 0 : index
    %5 = vector.load %arg4[%c0_4, %c0_5] : memref<256x256xf32, #tpu.memory_space<vmem>>, vector<256x256xf32>
    %cst = arith.constant dense<0.000000e+00> : vector<32x256xf32>
    %6 = tpu.matmul %4, %5, %cst {dimension_numbers = #tpu.dot_dimension_numbers<[1], [0], [0], [1], [0, 0, 1, 1], [], []>} : vector<32x256xf32>, vector<256x256xf32>, vector<32x256xf32> -> vector<32x256xf32>
    %7 = arith.addf %3, %6 : vector<32x256xf32>
    %c0_6 = arith.constant 0 : index
    %c0_7 = arith.constant 0 : index
    %8 = vector.load %arg6[%c0_6, %c0_7] : memref<32x256xf32, #tpu.memory_space<vmem>>, vector<32x256xf32>
    tpu.vector_store %arg6[%c0_6, %c0_7], %7 {strides = array<i32>} : memref<32x256xf32, #tpu.memory_space<vmem>>, vector<32x256xf32>,
    %c4_i32 = arith.constant 4 : i32
    %9 = arith.cmpi eq, %arg2, %c4_i32 : i32
    %10 = arith.extui %9 : i1 to i32
    %c0_i32_8 = arith.constant 0 : i32
    %11 = arith.cmpi ne, %10, %c0_i32_8 : i32
    scf.if %11 {
      %c0_9 = arith.constant 0 : index
      %c0_10 = arith.constant 0 : index
      %12 = vector.load %arg6[%c0_9, %c0_10] : memref<32x256xf32, #tpu.memory_space<vmem>>, vector<32x256xf32>
      %cst_11 = arith.constant 0.000000e+00 : f32
      %13 = vector.broadcast %cst_11 : f32 to vector<32x256xf32>
      %14 = arith.maximumf %12, %13 : vector<32x256xf32>
      %c0_12 = arith.constant 0 : index
      %c0_13 = arith.constant 0 : index
      %15 = vector.load %arg6[%c0_12, %c0_13] : memref<32x256xf32, #tpu.memory_space<vmem>>, vector<32x256xf32>
      tpu.vector_store %arg6[%c0_12, %c0_13], %14 {strides = array<i32>} : memref<32x256xf32, #tpu.memory_space<vmem>>, vector<32x256xf32>,
    } else {
    }
    return
  }
  func.func @transform_0(%arg0: i32, %arg1: i32, %arg2: i32) -> (i32, i32) {
    %c0_i32 = arith.constant 0 : i32
    return %arg0, %arg2 : i32, i32
  }
  func.func @transform_1(%arg0: i32, %arg1: i32, %arg2: i32) -> (i32, i32) {
    %c0_i32 = arith.constant 0 : i32
    return %arg2, %arg1 : i32, i32
  }
  func.func @transform_2(%arg0: i32, %arg1: i32, %arg2: i32) -> (i32, i32) {
    %c0_i32 = arith.constant 0 : i32
    %c0_i32_0 = arith.constant 0 : i32
    return %c0_i32, %arg1 : i32, i32
  }
  func.func @transform_3(%arg0: i32, %arg1: i32, %arg2: i32) -> (i32, i32) {
    %c0_i32 = arith.constant 0 : i32
    return %arg0, %arg1 : i32, i32
  }
}

module attributes {stable_mosaic.version = 11 : i64} {
  func.func @_gemm_bias_kernel(%arg0: i32, %arg1: i32, %arg2: i32, %arg3: memref<256x128xf32, #tpu.memory_space<vmem>>, %arg4: memref<128x128xf32, #tpu.memory_space<vmem>>, %arg5: memref<1x128xf32, #tpu.memory_space<vmem>>, %arg6: memref<256x128xf32, #tpu.memory_space<vmem>>) attributes {dimension_semantics = [#tpu.dimension_semantics<parallel>, #tpu.dimension_semantics<parallel>, #tpu.dimension_semantics<arbitrary>], iteration_bounds = array<i64: 2, 1, 1>, scalar_prefetch = 0 : i64, scratch_operands = 0 : i64, tpu.core_type = #tpu.core_type<tc>, window_params = [{transform_indices = @transform_0, window_bounds = array<i64: 256, 128>}, {transform_indices = @transform_1, window_bounds = array<i64: 128, 128>}, {transform_indices = @transform_2, window_bounds = array<i64: 1, 128>}, {transform_indices = @transform_3, window_bounds = array<i64: 256, 128>}]} {
    %c0_i32 = arith.constant 0 : i32
    %0 = arith.cmpi eq, %arg2, %c0_i32 : i32
    %1 = arith.extui %0 : i1 to i32
    %c0_i32_0 = arith.constant 0 : i32
    %2 = arith.cmpi ne, %1, %c0_i32_0 : i32
    scf.if %2 {
      %c0_10 = arith.constant 0 : index
      %c0_11 = arith.constant 0 : index
      %12 = vector.load %arg5[%c0_10, %c0_11] : memref<1x128xf32, #tpu.memory_space<vmem>>, vector<1x128xf32>
      %13 = vector.shape_cast %12 : vector<1x128xf32> to vector<1x128xf32>
      %14 = vector.broadcast %13 : vector<1x128xf32> to vector<256x128xf32>
      %c0_12 = arith.constant 0 : index
      %c0_13 = arith.constant 0 : index
      %15 = vector.load %arg6[%c0_12, %c0_13] : memref<256x128xf32, #tpu.memory_space<vmem>>, vector<256x128xf32>
      tpu.vector_store %arg6[%c0_12, %c0_13], %14 {strides = array<i32>} : memref<256x128xf32, #tpu.memory_space<vmem>>, vector<256x128xf32>,
    } else {
    }
    %c0 = arith.constant 0 : index
    %c0_1 = arith.constant 0 : index
    %3 = vector.load %arg6[%c0, %c0_1] : memref<256x128xf32, #tpu.memory_space<vmem>>, vector<256x128xf32>
    %c0_2 = arith.constant 0 : index
    %c0_3 = arith.constant 0 : index
    %4 = vector.load %arg3[%c0_2, %c0_3] : memref<256x128xf32, #tpu.memory_space<vmem>>, vector<256x128xf32>
    %c0_4 = arith.constant 0 : index
    %c0_5 = arith.constant 0 : index
    %5 = vector.load %arg4[%c0_4, %c0_5] : memref<128x128xf32, #tpu.memory_space<vmem>>, vector<128x128xf32>
    %cst = arith.constant dense<0.000000e+00> : vector<256x128xf32>
    %6 = tpu.matmul %4, %5, %cst {dimension_numbers = #tpu.dot_dimension_numbers<[1], [0], [0], [1], [0, 0, 1, 1], [], []>} : vector<256x128xf32>, vector<128x128xf32>, vector<256x128xf32> -> vector<256x128xf32>
    %7 = arith.addf %3, %6 : vector<256x128xf32>
    %c0_6 = arith.constant 0 : index
    %c0_7 = arith.constant 0 : index
    %8 = vector.load %arg6[%c0_6, %c0_7] : memref<256x128xf32, #tpu.memory_space<vmem>>, vector<256x128xf32>
    tpu.vector_store %arg6[%c0_6, %c0_7], %7 {strides = array<i32>} : memref<256x128xf32, #tpu.memory_space<vmem>>, vector<256x128xf32>,
    %c0_i32_8 = arith.constant 0 : i32
    %9 = arith.cmpi eq, %arg2, %c0_i32_8 : i32
    %10 = arith.extui %9 : i1 to i32
    %c0_i32_9 = arith.constant 0 : i32
    %11 = arith.cmpi ne, %10, %c0_i32_9 : i32
    scf.if %11 {
      %c0_10 = arith.constant 0 : index
      %c0_11 = arith.constant 0 : index
      %12 = vector.load %arg6[%c0_10, %c0_11] : memref<256x128xf32, #tpu.memory_space<vmem>>, vector<256x128xf32>
      %cst_12 = arith.constant 0.000000e+00 : f32
      %13 = vector.broadcast %cst_12 : f32 to vector<256x128xf32>
      %14 = arith.maximumf %12, %13 : vector<256x128xf32>
      %c0_13 = arith.constant 0 : index
      %c0_14 = arith.constant 0 : index
      %15 = vector.load %arg6[%c0_13, %c0_14] : memref<256x128xf32, #tpu.memory_space<vmem>>, vector<256x128xf32>
      tpu.vector_store %arg6[%c0_13, %c0_14], %14 {strides = array<i32>} : memref<256x128xf32, #tpu.memory_space<vmem>>, vector<256x128xf32>,
    } else {
    }
    return
  }
  func.func @transform_0(%arg0: i32, %arg1: i32, %arg2: i32) -> (i32, i32) {
    %c0_i32 = arith.constant 0 : i32
    return %arg0, %arg2 : i32, i32
  }
  func.func @transform_1(%arg0: i32, %arg1: i32, %arg2: i32) -> (i32, i32) {
    %c0_i32 = arith.constant 0 : i32
    return %arg2, %arg1 : i32, i32
  }
  func.func @transform_2(%arg0: i32, %arg1: i32, %arg2: i32) -> (i32, i32) {
    %c0_i32 = arith.constant 0 : i32
    %c0_i32_0 = arith.constant 0 : i32
    return %c0_i32, %arg1 : i32, i32
  }
  func.func @transform_3(%arg0: i32, %arg1: i32, %arg2: i32) -> (i32, i32) {
    %c0_i32 = arith.constant 0 : i32
    return %arg0, %arg1 : i32, i32
  }
}

module attributes {stable_mosaic.version = 11 : i64} {
  func.func @_gemm_bias_kernel(%arg0: i32, %arg1: i32, %arg2: i32, %arg3: memref<256x128xf32, #tpu.memory_space<vmem>>, %arg4: memref<128x256xf32, #tpu.memory_space<vmem>>, %arg5: memref<1x256xf32, #tpu.memory_space<vmem>>, %arg6: memref<256x256xf32, #tpu.memory_space<vmem>>) attributes {dimension_semantics = [#tpu.dimension_semantics<parallel>, #tpu.dimension_semantics<parallel>, #tpu.dimension_semantics<arbitrary>], iteration_bounds = array<i64: 2, 9, 3>, scalar_prefetch = 0 : i64, scratch_operands = 0 : i64, tpu.core_type = #tpu.core_type<tc>, window_params = [{transform_indices = @transform_0, window_bounds = array<i64: 256, 128>}, {transform_indices = @transform_1, window_bounds = array<i64: 128, 256>}, {transform_indices = @transform_2, window_bounds = array<i64: 1, 256>}, {transform_indices = @transform_3, window_bounds = array<i64: 256, 256>}]} {
    %c0_i32 = arith.constant 0 : i32
    %0 = arith.cmpi eq, %arg2, %c0_i32 : i32
    %1 = arith.extui %0 : i1 to i32
    %c0_i32_0 = arith.constant 0 : i32
    %2 = arith.cmpi ne, %1, %c0_i32_0 : i32
    scf.if %2 {
      %c0_8 = arith.constant 0 : index
      %c0_9 = arith.constant 0 : index
      %9 = vector.load %arg5[%c0_8, %c0_9] : memref<1x256xf32, #tpu.memory_space<vmem>>, vector<1x256xf32>
      %10 = vector.shape_cast %9 : vector<1x256xf32> to vector<1x256xf32>
      %11 = vector.broadcast %10 : vector<1x256xf32> to vector<256x256xf32>
      %c0_10 = arith.constant 0 : index
      %c0_11 = arith.constant 0 : index
      %12 = vector.load %arg6[%c0_10, %c0_11] : memref<256x256xf32, #tpu.memory_space<vmem>>, vector<256x256xf32>
      tpu.vector_store %arg6[%c0_10, %c0_11], %11 {strides = array<i32>} : memref<256x256xf32, #tpu.memory_space<vmem>>, vector<256x256xf32>,
    } else {
    }
    %c0 = arith.constant 0 : index
    %c0_1 = arith.constant 0 : index
    %3 = vector.load %arg6[%c0, %c0_1] : memref<256x256xf32, #tpu.memory_space<vmem>>, vector<256x256xf32>
    %c0_2 = arith.constant 0 : index
    %c0_3 = arith.constant 0 : index
    %4 = vector.load %arg3[%c0_2, %c0_3] : memref<256x128xf32, #tpu.memory_space<vmem>>, vector<256x128xf32>
    %c0_4 = arith.constant 0 : index
    %c0_5 = arith.constant 0 : index
    %5 = vector.load %arg4[%c0_4, %c0_5] : memref<128x256xf32, #tpu.memory_space<vmem>>, vector<128x256xf32>
    %cst = arith.constant dense<0.000000e+00> : vector<256x256xf32>
    %6 = tpu.matmul %4, %5, %cst {dimension_numbers = #tpu.dot_dimension_numbers<[1], [0], [0], [1], [0, 0, 1, 1], [], []>} : vector<256x128xf32>, vector<128x256xf32>, vector<256x256xf32> -> vector<256x256xf32>
    %7 = arith.addf %3, %6 : vector<256x256xf32>
    %c0_6 = arith.constant 0 : index
    %c0_7 = arith.constant 0 : index
    %8 = vector.load %arg6[%c0_6, %c0_7] : memref<256x256xf32, #tpu.memory_space<vmem>>, vector<256x256xf32>
    tpu.vector_store %arg6[%c0_6, %c0_7], %7 {strides = array<i32>} : memref<256x256xf32, #tpu.memory_space<vmem>>, vector<256x256xf32>,
    return
  }
  func.func @transform_0(%arg0: i32, %arg1: i32, %arg2: i32) -> (i32, i32) {
    %c0_i32 = arith.constant 0 : i32
    return %arg0, %arg2 : i32, i32
  }
  func.func @transform_1(%arg0: i32, %arg1: i32, %arg2: i32) -> (i32, i32) {
    %c0_i32 = arith.constant 0 : i32
    return %arg2, %arg1 : i32, i32
  }
  func.func @transform_2(%arg0: i32, %arg1: i32, %arg2: i32) -> (i32, i32) {
    %c0_i32 = arith.constant 0 : i32
    %c0_i32_0 = arith.constant 0 : i32
    return %c0_i32, %arg1 : i32, i32
  }
  func.func @transform_3(%arg0: i32, %arg1: i32, %arg2: i32) -> (i32, i32) {
    %c0_i32 = arith.constant 0 : i32
    return %arg0, %arg1 : i32, i32
  }
}

module attributes {stable_mosaic.version = 11 : i64} {
  func.func @_gemm_bias_kernel(%arg0: i32, %arg1: i32, %arg2: i32, %arg3: memref<256x256xf32, #tpu.memory_space<vmem>>, %arg4: memref<256x128xf32, #tpu.memory_space<vmem>>, %arg5: memref<1x128xf32, #tpu.memory_space<vmem>>, %arg6: memref<256x128xf32, #tpu.memory_space<vmem>>) attributes {dimension_semantics = [#tpu.dimension_semantics<parallel>, #tpu.dimension_semantics<parallel>, #tpu.dimension_semantics<arbitrary>], iteration_bounds = array<i64: 2, 1, 1>, scalar_prefetch = 0 : i64, scratch_operands = 0 : i64, tpu.core_type = #tpu.core_type<tc>, window_params = [{transform_indices = @transform_0, window_bounds = array<i64: 256, 256>}, {transform_indices = @transform_1, window_bounds = array<i64: 256, 128>}, {transform_indices = @transform_2, window_bounds = array<i64: 1, 128>}, {transform_indices = @transform_3, window_bounds = array<i64: 256, 128>}]} {
    %c0_i32 = arith.constant 0 : i32
    %0 = arith.cmpi eq, %arg2, %c0_i32 : i32
    %1 = arith.extui %0 : i1 to i32
    %c0_i32_0 = arith.constant 0 : i32
    %2 = arith.cmpi ne, %1, %c0_i32_0 : i32
    scf.if %2 {
      %c0_8 = arith.constant 0 : index
      %c0_9 = arith.constant 0 : index
      %9 = vector.load %arg5[%c0_8, %c0_9] : memref<1x128xf32, #tpu.memory_space<vmem>>, vector<1x128xf32>
      %10 = vector.shape_cast %9 : vector<1x128xf32> to vector<1x128xf32>
      %11 = vector.broadcast %10 : vector<1x128xf32> to vector<256x128xf32>
      %c0_10 = arith.constant 0 : index
      %c0_11 = arith.constant 0 : index
      %12 = vector.load %arg6[%c0_10, %c0_11] : memref<256x128xf32, #tpu.memory_space<vmem>>, vector<256x128xf32>
      tpu.vector_store %arg6[%c0_10, %c0_11], %11 {strides = array<i32>} : memref<256x128xf32, #tpu.memory_space<vmem>>, vector<256x128xf32>,
    } else {
    }
    %c0 = arith.constant 0 : index
    %c0_1 = arith.constant 0 : index
    %3 = vector.load %arg6[%c0, %c0_1] : memref<256x128xf32, #tpu.memory_space<vmem>>, vector<256x128xf32>
    %c0_2 = arith.constant 0 : index
    %c0_3 = arith.constant 0 : index
    %4 = vector.load %arg3[%c0_2, %c0_3] : memref<256x256xf32, #tpu.memory_space<vmem>>, vector<256x256xf32>
    %c0_4 = arith.constant 0 : index
    %c0_5 = arith.constant 0 : index
    %5 = vector.load %arg4[%c0_4, %c0_5] : memref<256x128xf32, #tpu.memory_space<vmem>>, vector<256x128xf32>
    %cst = arith.constant dense<0.000000e+00> : vector<256x128xf32>
    %6 = tpu.matmul %4, %5, %cst {dimension_numbers = #tpu.dot_dimension_numbers<[1], [0], [0], [1], [0, 0, 1, 1], [], []>} : vector<256x256xf32>, vector<256x128xf32>, vector<256x128xf32> -> vector<256x128xf32>
    %7 = arith.addf %3, %6 : vector<256x128xf32>
    %c0_6 = arith.constant 0 : index
    %c0_7 = arith.constant 0 : index
    %8 = vector.load %arg6[%c0_6, %c0_7] : memref<256x128xf32, #tpu.memory_space<vmem>>, vector<256x128xf32>
    tpu.vector_store %arg6[%c0_6, %c0_7], %7 {strides = array<i32>} : memref<256x128xf32, #tpu.memory_space<vmem>>, vector<256x128xf32>,
    return
  }
  func.func @transform_0(%arg0: i32, %arg1: i32, %arg2: i32) -> (i32, i32) {
    %c0_i32 = arith.constant 0 : i32
    return %arg0, %arg2 : i32, i32
  }
  func.func @transform_1(%arg0: i32, %arg1: i32, %arg2: i32) -> (i32, i32) {
    %c0_i32 = arith.constant 0 : i32
    return %arg2, %arg1 : i32, i32
  }
  func.func @transform_2(%arg0: i32, %arg1: i32, %arg2: i32) -> (i32, i32) {
    %c0_i32 = arith.constant 0 : i32
    %c0_i32_0 = arith.constant 0 : i32
    return %c0_i32, %arg1 : i32, i32
  }
  func.func @transform_3(%arg0: i32, %arg1: i32, %arg2: i32) -> (i32, i32) {
    %c0_i32 = arith.constant 0 : i32
    return %arg0, %arg1 : i32, i32
  }
}

</mosaic_0001>

<bundles_post_ra>
// kernel: head_forward.11
= control target key start
LH: loop header
LB: loop body
LE: loop exit
PB: predicated region body
PF: predicated region fallthrough
CT: control target
= control target key end

     0   :  { %s2067_s0 = inlined_call_operand.vmem [shape: f32[32,2048], index: 0, kind: input, shape index: {}]   ;;  %s2068_s1 = inlined_call_operand.vmem [shape: f32[2048,2304], index: 1, kind: input, shape index: {}]   ;;  %s2069_s2 = inlined_call_operand.vmem [shape: f32[1,2304], index: 2, kind: input, shape index: {}]   ;;  %s2070_s3 = inlined_call_operand.vmem [shape: f32[32,2304], index: 3, kind: output, shape index: {}]  }
   0x1   :  { %2072 = sst [smem:[#allocation6_spill]] %s2067_s0 }
   0x2   :  { %2073 = sst [smem:[#allocation7_spill]] %s2068_s1 }
   0x3   :  { %s1444_s12 = smov 0   ;;  %s1446_s13 = smov 0  }
   0x4   :  { %s1448_s14 = smov 0   ;;  %s1450_s15 = smov 0  }
   0x5   :  { %s1452_s16 = smov 0   ;;  %s1454_s17 = smov 0  }
   0x6   :  { %s1456_s18 = smov 0   ;;  %s1458_s19 = smov 0  }
   0x7   :  { %s1460_s20 = smov 0   ;;  %s1462_s21 = smov 0  }
   0x8   :  { %s1464_s22 = smov 0  }
   0x9 LB: > { %s1086_s23 = sadd.s32 4294967295, %s1422_s22   ;;  %s25_s24 = sadd.s32 1, %s1414_s20  ;;  %s1422_s22 = sphi %s1464_s22, %s13_s22   ;;  %s1418_s21 = sphi %s1462_s21, %s2090_s21   ;;  %s1414_s20 = sphi %s1460_s20, %s2089_s20   ;;  %s1410_s19 = sphi %s1458_s19, %s2088_s19   ;;  %s1406_s18 = sphi %s1456_s18, %s2087_s18   ;;  %s1402_s17 = sphi %s1454_s17, %s2086_s17   ;;  %s1398_s16 = sphi %s1452_s16, %s2085_s16   ;;  %s1394_s15 = sphi %s1450_s15, %s2084_s15   ;;  %s1390_s14 = sphi %s1448_s14, %s2083_s14   ;;  %s1386_s13 = sphi %s1446_s13, %s2082_s13   ;;  %s1382_s12 = sphi %s1444_s12, %s2081_s12  }
   0xa   : > { %p26_p0 = scmp.ge.s32.totalorder %s25_s24, 4  ;;  %s28_s25 = sadd.s32 1, %s1418_s21 }
   0xb   : > { %s41_s26 = sadd.s32 1, %s1402_s17  ;;  %p48_p1 = scmp.ne.s32.totalorder %s1402_s17, %s1398_s16 }
   0xc   : > { %s2092_s24 = smov (%p26_p0, %s25_s24), 0  ;;  %s2094_s25 = smov (!%p26_p0, %s28_s25), %s1418_s21 }
   0xd   : > { %s37_s27 = ssub.s32 %s1414_s20, %s2092_s24  ;;  %p49_p2 = scmp.eq.s32.totalorder %s1422_s22, 0 }
   0xe   : > { %p30_p3 = scmp.ge.s32.totalorder %s2094_s25, 9  ;;  %p39_p4 = scmp.eq.s32.totalorder %s37_s27, 0 }
   0xf   : > { %p1511_p5 = por %p49_p2, %p48_p1  ;;  %s69_s29 = sadd.s32 1, %s1394_s15 }
  0x10   : > { %s2096_s25 = smov (%p30_p3, %s2094_s25), 0  ;;  %p76_p6 = scmp.ne.s32.totalorder %s1394_s15, %s1390_s14 }
  0x11   : > { %2075 = sst [smem:[#allocation5_spill]] %s2096_s25  ;;  %s65_s4 = ssub.s32 %s1418_s21, %s2096_s25 }
  0x12   : > { %s1519_s30 = scalar_select %p39_p4, %s1402_s17, %s41_s26  }
  0x13   : > { %s66_s5 = sor.u32 %s65_s4, %s37_s27  ;;  %p121_p7 = scmp.eq.s32.totalorder %s65_s4, 0 }
  0x14   : > { %p67_p8 = scmp.eq.s32.totalorder %s66_s5, 0  ;;  %p1525_p9 = por %p76_p6, %p49_p2 }
  0x15   : > { %s123_s7 = sadd.s32 1, %s1386_s13  ;;  %p133_p10 = scmp.ne.s32.totalorder %s1386_s13, %s1382_s12 }
  0x16   : > { %s1533_s8 = scalar_select %p67_p8, %s1394_s15, %s69_s29  }
  0x17   : > { %s1536_s9 = scalar_select %p121_p7, %s1386_s13, %s123_s7  }
  0x18   : > { %p134_p11 = scmp.eq.s32.totalorder %s1086_s23, 35  ;;  %p1089_p13 = scmp.ge.s32.totalorder %s1422_s22, 36 }
  0x1a   : > { %p1538_p12 = por %p134_p11, %p133_p10  ;;  %156 = sbr.rel (%p1089_p13) target bundleno = 125 (0x7d), region = 16 }
  0x21   : > { %159 = sbr.rel (!%p1511_p5) target bundleno = 51 (0x33), region = 20  ;;  %s161_s11 = sand.u32 (%p1511_p5), 1, %s1402_s17  }
  0x22   : > { %s1109_s26 = sshll.u32 (%p1511_p5), %s1414_s20, 5  ;;  %s1090_s27 = sshll.u32 (%p1511_p5), %s161_s11, 7 }
  0x23   : > { %s2078_s0 = sld [smem:[#allocation6_spill]] (%p1511_p5)  ;;  %s163_s23 = scalar_lea.vmem (%p1511_p5), [#allocation2], %s1090_s27 }
  0x29   : > { %s1550_s5 = scalar_lea.vmem %s2078_s0, %s1109_s26 }
  0x2a   : > { %v182_v0 = vld [vmem:[%s1550_s5] sm:$0xff]  ;;  %v184_v1 = vld [vmem:[%s1550_s5 + $0x8] sm:$0xff]  ;;  %v186_v2 = vld [vmem:[%s1550_s5 + $0x10] sm:$0xff] }
  0x2b   : > { %183 = vst [vmem:[%s163_s23] sm:$0xff] %v182_v0  ;;  %185 = vst [vmem:[%s163_s23 + $0x8] sm:$0xff] %v184_v1  ;;  %v188_v3 = vld [vmem:[%s1550_s5 + $0x18] sm:$0xff]  ;;  %v190_v4 = vld [vmem:[%s1550_s5 + $0x80] sm:$0xff] }
  0x2c   : > { %187 = vst [vmem:[%s163_s23 + $0x10] sm:$0xff] %v186_v2  ;;  %v192_v5 = vld [vmem:[%s1550_s5 + $0x88] sm:$0xff]  ;;  %189 = vst [vmem:[%s163_s23 + $0x18] sm:$0xff] %v188_v3  ;;  %v194_v6 = vld [vmem:[%s1550_s5 + $0x90] sm:$0xff] }
  0x2d   : > { %191 = vst [vmem:[%s163_s23 + $0x20] sm:$0xff] %v190_v4  ;;  %193 = vst [vmem:[%s163_s23 + $0x28] sm:$0xff] %v192_v5  ;;  %v196_v7 = vld [vmem:[%s1550_s5 + $0x98] sm:$0xff]  ;;  %v198_v8 = vld [vmem:[%s1550_s5 + $0x100] sm:$0xff] }
  0x2e   : > { %195 = vst [vmem:[%s163_s23 + $0x30] sm:$0xff] %v194_v6  ;;  %197 = vst [vmem:[%s163_s23 + $0x38] sm:$0xff] %v196_v7  ;;  %v200_v9 = vld [vmem:[%s1550_s5 + $0x108] sm:$0xff]  ;;  %v202_v10 = vld [vmem:[%s1550_s5 + $0x110] sm:$0xff] }
  0x2f   : > { %199 = vst [vmem:[%s163_s23 + $0x40] sm:$0xff] %v198_v8  ;;  %v204_v11 = vld [vmem:[%s1550_s5 + $0x118] sm:$0xff]  ;;  %201 = vst [vmem:[%s163_s23 + $0x48] sm:$0xff] %v200_v9  ;;  %v206_v12 = vld [vmem:[%s1550_s5 + $0x180] sm:$0xff] }
  0x30   : > { %203 = vst [vmem:[%s163_s23 + $0x50] sm:$0xff] %v202_v10  ;;  %205 = vst [vmem:[%s163_s23 + $0x58] sm:$0xff] %v204_v11  ;;  %v208_v13 = vld [vmem:[%s1550_s5 + $0x188] sm:$0xff]  ;;  %v210_v14 = vld [vmem:[%s1550_s5 + $0x190] sm:$0xff] }
  0x31   : > { %207 = vst [vmem:[%s163_s23 + $0x60] sm:$0xff] %v206_v12  ;;  %209 = vst [vmem:[%s163_s23 + $0x68] sm:$0xff] %v208_v13  ;;  %v212_v15 = vld [vmem:[%s1550_s5 + $0x198] sm:$0xff] }
  0x32   : > { %211 = vst [vmem:[%s163_s23 + $0x70] sm:$0xff] %v210_v14  ;;  %213 = vst [vmem:[%s163_s23 + $0x78] sm:$0xff] %v212_v15 }
  0x33 PF: > { %219 = sbr.rel (!%p1525_p9) target bundleno = 125 (0x7d), region = 43  ;;  %s221_s28 = sand.u32 (%p1525_p9), 1, %s1394_s15  }
  0x34   : > { %s1095_s7 = sshll.u32 (%p1525_p9), %s1418_s21, 1  ;;  %s1093_s11 = sshll.u32 (%p1525_p9), %s221_s28, 10 }
  0x35   : > { %s1247_s26 = smul.u32 (%p1525_p9), 1152, %s1414_s20  ;;  %s2079_s1 = sld [smem:[#allocation7_spill]] (%p1525_p9) }
  0x36   : > { %s1581_s6 = scalar_lea.vmem (%p1525_p9), [#allocation3], %s1093_s11 }
  0x37   : > { %s227_s27 = sadd.s32 (%p1525_p9), %s1247_s26, %s1095_s7 }
  0x38   : > { %s1097_s29 = sshll.u32 (%p1525_p9), %s227_s27, 3 }
  0x3b   : > { %s1576_s25 = scalar_lea.vmem %s2079_s1, %s1097_s29 }
  0x3c   : > { %v242_v16 = vld [vmem:[%s1576_s25] sm:$0xff]  ;;  %v244_v17 = vld [vmem:[%s1576_s25 + $0x8] sm:$0xff]  ;;  %v246_v18 = vld [vmem:[%s1576_s25 + $0x90] sm:$0xff] }
  0x3d   : > { %243 = vst [vmem:[%s1581_s6] sm:$0xff] %v242_v16  ;;  %245 = vst [vmem:[%s1581_s6 + $0x8] sm:$0xff] %v244_v17  ;;  %v248_v19 = vld [vmem:[%s1576_s25 + $0x98] sm:$0xff]  ;;  %v250_v20 = vld [vmem:[%s1576_s25 + $0x120] sm:$0xff] }
  0x3e   : > { %247 = vst [vmem:[%s1581_s6 + $0x10] sm:$0xff] %v246_v18  ;;  %v252_v21 = vld [vmem:[%s1576_s25 + $0x128] sm:$0xff]  ;;  %249 = vst [vmem:[%s1581_s6 + $0x18] sm:$0xff] %v248_v19  ;;  %v254_v22 = vld [vmem:[%s1576_s25 + $0x1b0] sm:$0xff] }
  0x3f   : > { %251 = vst [vmem:[%s1581_s6 + $0x20] sm:$0xff] %v250_v20  ;;  %253 = vst [vmem:[%s1581_s6 + $0x28] sm:$0xff] %v252_v21  ;;  %v256_v23 = vld [vmem:[%s1576_s25 + $0x1b8] sm:$0xff]  ;;  %v258_v24 = vld [vmem:[%s1576_s25 + $0x240] sm:$0xff] }
  0x40   : > { %255 = vst [vmem:[%s1581_s6 + $0x30] sm:$0xff] %v254_v22  ;;  %257 = vst [vmem:[%s1581_s6 + $0x38] sm:$0xff] %v256_v23  ;;  %v260_v25 = vld [vmem:[%s1576_s25 + $0x248] sm:$0xff]  ;;  %v262_v26 = vld [vmem:[%s1576_s25 + $0x2d0] sm:$0xff] }
  0x41   : > { %259 = vst [vmem:[%s1581_s6 + $0x40] sm:$0xff] %v258_v24  ;;  %v264_v27 = vld [vmem:[%s1576_s25 + $0x2d8] sm:$0xff]  ;;  %261 = vst [vmem:[%s1581_s6 + $0x48] sm:$0xff] %v260_v25  ;;  %v266_v28 = vld [vmem:[%s1576_s25 + $0x360] sm:$0xff] }
  0x42   : > { %263 = vst [vmem:[%s1581_s6 + $0x50] sm:$0xff] %v262_v26  ;;  %265 = vst [vmem:[%s1581_s6 + $0x58] sm:$0xff] %v264_v27  ;;  %v268_v29 = vld [vmem:[%s1576_s25 + $0x368] sm:$0xff]  ;;  %v270_v30 = vld [vmem:[%s1576_s25 + $0x3f0] sm:$0xff] }
  0x43   : > { %267 = vst [vmem:[%s1581_s6 + $0x60] sm:$0xff] %v266_v28  ;;  %269 = vst [vmem:[%s1581_s6 + $0x68] sm:$0xff] %v268_v29  ;;  %v272_v31 = vld [vmem:[%s1576_s25 + $0x3f8] sm:$0xff]  ;;  %v274_v32 = vld [vmem:[%s1576_s25 + $0x480] sm:$0xff] }
  0x44   : > { %271 = vst [vmem:[%s1581_s6 + $0x70] sm:$0xff] %v270_v30  ;;  %v276_v33 = vld [vmem:[%s1576_s25 + $0x488] sm:$0xff]  ;;  %273 = vst [vmem:[%s1581_s6 + $0x78] sm:$0xff] %v272_v31  ;;  %v278_v34 = vld [vmem:[%s1576_s25 + $0x510] sm:$0xff] }
  0x45   : > { %275 = vst [vmem:[%s1581_s6 + $0x80] sm:$0xff] %v274_v32  ;;  %277 = vst [vmem:[%s1581_s6 + $0x88] sm:$0xff] %v276_v33  ;;  %v280_v35 = vld [vmem:[%s1576_s25 + $0x518] sm:$0xff]  ;;  %v282_v36 = vld [vmem:[%s1576_s25 + $0x5a0] sm:$0xff] }
  0x46   : > { %279 = vst [vmem:[%s1581_s6 + $0x90] sm:$0xff] %v278_v34  ;;  %281 = vst [vmem:[%s1581_s6 + $0x98] sm:$0xff] %v280_v35  ;;  %v284_v37 = vld [vmem:[%s1576_s25 + $0x5a8] sm:$0xff]  ;;  %v286_v38 = vld [vmem:[%s1576_s25 + $0x630] sm:$0xff] }
  0x47   : > { %283 = vst [vmem:[%s1581_s6 + $0xa0] sm:$0xff] %v282_v36  ;;  %v288_v39 = vld [vmem:[%s1576_s25 + $0x638] sm:$0xff]  ;;  %285 = vst [vmem:[%s1581_s6 + $0xa8] sm:$0xff] %v284_v37  ;;  %v290_v40 = vld [vmem:[%s1576_s25 + $0x6c0] sm:$0xff] }
  0x48   : > { %287 = vst [vmem:[%s1581_s6 + $0xb0] sm:$0xff] %v286_v38  ;;  %289 = vst [vmem:[%s1581_s6 + $0xb8] sm:$0xff] %v288_v39  ;;  %v292_v41 = vld [vmem:[%s1576_s25 + $0x6c8] sm:$0xff]  ;;  %v294_v42 = vld [vmem:[%s1576_s25 + $0x750] sm:$0xff] }
  0x49   : > { %291 = vst [vmem:[%s1581_s6 + $0xc0] sm:$0xff] %v290_v40  ;;  %293 = vst [vmem:[%s1581_s6 + $0xc8] sm:$0xff] %v292_v41  ;;  %v296_v43 = vld [vmem:[%s1576_s25 + $0x758] sm:$0xff]  ;;  %v298_v44 = vld [vmem:[%s1576_s25 + $0x7e0] sm:$0xff] }
  0x4a   : > { %295 = vst [vmem:[%s1581_s6 + $0xd0] sm:$0xff] %v294_v42  ;;  %v300_v45 = vld [vmem:[%s1576_s25 + $0x7e8] sm:$0xff]  ;;  %297 = vst [vmem:[%s1581_s6 + $0xd8] sm:$0xff] %v296_v43  ;;  %v302_v46 = vld [vmem:[%s1576_s25 + $0x870] sm:$0xff] }
  0x4b   : > { %299 = vst [vmem:[%s1581_s6 + $0xe0] sm:$0xff] %v298_v44  ;;  %301 = vst [vmem:[%s1581_s6 + $0xe8] sm:$0xff] %v300_v45  ;;  %v304_v47 = vld [vmem:[%s1576_s25 + $0x878] sm:$0xff]  ;;  %v306_v48 = vld [vmem:[%s1576_s25 + $0x900] sm:$0xff] }
  0x4c   : > { %303 = vst [vmem:[%s1581_s6 + $0xf0] sm:$0xff] %v302_v46  ;;  %305 = vst [vmem:[%s1581_s6 + $0xf8] sm:$0xff] %v304_v47  ;;  %v308_v49 = vld [vmem:[%s1576_s25 + $0x908] sm:$0xff]  ;;  %v310_v50 = vld [vmem:[%s1576_s25 + $0x990] sm:$0xff] }
  0x4d   : > { %307 = vst [vmem:[%s1581_s6 + $0x100] sm:$0xff] %v306_v48  ;;  %v312_v51 = vld [vmem:[%s1576_s25 + $0x998] sm:$0xff]  ;;  %309 = vst [vmem:[%s1581_s6 + $0x108] sm:$0xff] %v308_v49  ;;  %v314_v52 = vld [vmem:[%s1576_s25 + $0xa20] sm:$0xff] }
  0x4e   : > { %311 = vst [vmem:[%s1581_s6 + $0x110] sm:$0xff] %v310_v50  ;;  %313 = vst [vmem:[%s1581_s6 + $0x118] sm:$0xff] %v312_v51  ;;  %v316_v53 = vld [vmem:[%s1576_s25 + $0xa28] sm:$0xff]  ;;  %v318_v54 = vld [vmem:[%s1576_s25 + $0xab0] sm:$0xff] }
  0x4f   : > { %315 = vst [vmem:[%s1581_s6 + $0x120] sm:$0xff] %v314_v52  ;;  %317 = vst [vmem:[%s1581_s6 + $0x128] sm:$0xff] %v316_v53  ;;  %v320_v55 = vld [vmem:[%s1576_s25 + $0xab8] sm:$0xff]  ;;  %v322_v56 = vld [vmem:[%s1576_s25 + $0xb40] sm:$0xff] }
  0x50   : > { %319 = vst [vmem:[%s1581_s6 + $0x130] sm:$0xff] %v318_v54  ;;  %v324_v57 = vld [vmem:[%s1576_s25 + $0xb48] sm:$0xff]  ;;  %321 = vst [vmem:[%s1581_s6 + $0x138] sm:$0xff] %v320_v55  ;;  %v326_v58 = vld [vmem:[%s1576_s25 + $0xbd0] sm:$0xff] }
  0x51   : > { %323 = vst [vmem:[%s1581_s6 + $0x140] sm:$0xff] %v322_v56  ;;  %325 = vst [vmem:[%s1581_s6 + $0x148] sm:$0xff] %v324_v57  ;;  %v328_v59 = vld [vmem:[%s1576_s25 + $0xbd8] sm:$0xff]  ;;  %v330_v60 = vld [vmem:[%s1576_s25 + $0xc60] sm:$0xff] }
  0x52   : > { %327 = vst [vmem:[%s1581_s6 + $0x150] sm:$0xff] %v326_v58  ;;  %329 = vst [vmem:[%s1581_s6 + $0x158] sm:$0xff] %v328_v59  ;;  %v332_v61 = vld [vmem:[%s1576_s25 + $0xc68] sm:$0xff]  ;;  %v334_v62 = vld [vmem:[%s1576_s25 + $0xcf0] sm:$0xff] }
  0x53   : > { %331 = vst [vmem:[%s1581_s6 + $0x160] sm:$0xff] %v330_v60  ;;  %v336_v63 = vld [vmem:[%s1576_s25 + $0xcf8] sm:$0xff]  ;;  %333 = vst [vmem:[%s1581_s6 + $0x168] sm:$0xff] %v332_v61  ;;  %v338_v0 = vld [vmem:[%s1576_s25 + $0xd80] sm:$0xff] }
  0x54   : > { %335 = vst [vmem:[%s1581_s6 + $0x170] sm:$0xff] %v334_v62  ;;  %337 = vst [vmem:[%s1581_s6 + $0x178] sm:$0xff] %v336_v63  ;;  %v340_v1 = vld [vmem:[%s1576_s25 + $0xd88] sm:$0xff]  ;;  %v342_v2 = vld [vmem:[%s1576_s25 + $0xe10] sm:$0xff] }
  0x55   : > { %339 = vst [vmem:[%s1581_s6 + $0x180] sm:$0xff] %v338_v0  ;;  %341 = vst [vmem:[%s1581_s6 + $0x188] sm:$0xff] %v340_v1  ;;  %v344_v3 = vld [vmem:[%s1576_s25 + $0xe18] sm:$0xff]  ;;  %v346_v4 = vld [vmem:[%s1576_s25 + $0xea0] sm:$0xff] }
  0x56   : > { %343 = vst [vmem:[%s1581_s6 + $0x190] sm:$0xff] %v342_v2  ;;  %v348_v5 = vld [vmem:[%s1576_s25 + $0xea8] sm:$0xff]  ;;  %345 = vst [vmem:[%s1581_s6 + $0x198] sm:$0xff] %v344_v3  ;;  %v350_v6 = vld [vmem:[%s1576_s25 + $0xf30] sm:$0xff] }
  0x57   : > { %347 = vst [vmem:[%s1581_s6 + $0x1a0] sm:$0xff] %v346_v4  ;;  %349 = vst [vmem:[%s1581_s6 + $0x1a8] sm:$0xff] %v348_v5  ;;  %v352_v7 = vld [vmem:[%s1576_s25 + $0xf38] sm:$0xff]  ;;  %v354_v8 = vld [vmem:[%s1576_s25 + $0xfc0] sm:$0xff] }
  0x58   : > { %351 = vst [vmem:[%s1581_s6 + $0x1b0] sm:$0xff] %v350_v6  ;;  %353 = vst [vmem:[%s1581_s6 + $0x1b8] sm:$0xff] %v352_v7  ;;  %v356_v9 = vld [vmem:[%s1576_s25 + $0xfc8] sm:$0xff]  ;;  %v358_v10 = vld [vmem:[%s1576_s25 + $0x1050] sm:$0xff] }
  0x59   : > { %355 = vst [vmem:[%s1581_s6 + $0x1c0] sm:$0xff] %v354_v8  ;;  %v360_v11 = vld [vmem:[%s1576_s25 + $0x1058] sm:$0xff]  ;;  %357 = vst [vmem:[%s1581_s6 + $0x1c8] sm:$0xff] %v356_v9  ;;  %v362_v12 = vld [vmem:[%s1576_s25 + $0x10e0] sm:$0xff] }
  0x5a   : > { %359 = vst [vmem:[%s1581_s6 + $0x1d0] sm:$0xff] %v358_v10  ;;  %361 = vst [vmem:[%s1581_s6 + $0x1d8] sm:$0xff] %v360_v11  ;;  %v364_v13 = vld [vmem:[%s1576_s25 + $0x10e8] sm:$0xff]  ;;  %v366_v14 = vld [vmem:[%s1576_s25 + $0x1170] sm:$0xff] }
  0x5b   : > { %363 = vst [vmem:[%s1581_s6 + $0x1e0] sm:$0xff] %v362_v12  ;;  %365 = vst [vmem:[%s1581_s6 + $0x1e8] sm:$0xff] %v364_v13  ;;  %v368_v15 = vld [vmem:[%s1576_s25 + $0x1178] sm:$0xff]  ;;  %v370_v16 = vld [vmem:[%s1576_s25 + $0x1200] sm:$0xff] }
  0x5c   : > { %367 = vst [vmem:[%s1581_s6 + $0x1f0] sm:$0xff] %v366_v14  ;;  %v372_v17 = vld [vmem:[%s1576_s25 + $0x1208] sm:$0xff]  ;;  %369 = vst [vmem:[%s1581_s6 + $0x1f8] sm:$0xff] %v368_v15  ;;  %v374_v18 = vld [vmem:[%s1576_s25 + $0x1290] sm:$0xff] }
  0x5d   : > { %371 = vst [vmem:[%s1581_s6 + $0x200] sm:$0xff] %v370_v16  ;;  %373 = vst [vmem:[%s1581_s6 + $0x208] sm:$0xff] %v372_v17  ;;  %v376_v19 = vld [vmem:[%s1576_s25 + $0x1298] sm:$0xff]  ;;  %v378_v20 = vld [vmem:[%s1576_s25 + $0x1320] sm:$0xff] }
  0x5e   : > { %375 = vst [vmem:[%s1581_s6 + $0x210] sm:$0xff] %v374_v18  ;;  %377 = vst [vmem:[%s1581_s6 + $0x218] sm:$0xff] %v376_v19  ;;  %v380_v21 = vld [vmem:[%s1576_s25 + $0x1328] sm:$0xff]  ;;  %v382_v22 = vld [vmem:[%s1576_s25 + $0x13b0] sm:$0xff] }
  0x5f   : > { %379 = vst [vmem:[%s1581_s6 + $0x220] sm:$0xff] %v378_v20  ;;  %v384_v23 = vld [vmem:[%s1576_s25 + $0x13b8] sm:$0xff]  ;;  %381 = vst [vmem:[%s1581_s6 + $0x228] sm:$0xff] %v380_v21  ;;  %v386_v24 = vld [vmem:[%s1576_s25 + $0x1440] sm:$0xff] }
  0x60   : > { %383 = vst [vmem:[%s1581_s6 + $0x230] sm:$0xff] %v382_v22  ;;  %385 = vst [vmem:[%s1581_s6 + $0x238] sm:$0xff] %v384_v23  ;;  %v388_v25 = vld [vmem:[%s1576_s25 + $0x1448] sm:$0xff]  ;;  %v390_v26 = vld [vmem:[%s1576_s25 + $0x14d0] sm:$0xff] }
  0x61   : > { %387 = vst [vmem:[%s1581_s6 + $0x240] sm:$0xff] %v386_v24  ;;  %389 = vst [vmem:[%s1581_s6 + $0x248] sm:$0xff] %v388_v25  ;;  %v392_v27 = vld [vmem:[%s1576_s25 + $0x14d8] sm:$0xff]  ;;  %v394_v28 = vld [vmem:[%s1576_s25 + $0x1560] sm:$0xff] }
  0x62   : > { %391 = vst [vmem:[%s1581_s6 + $0x250] sm:$0xff] %v390_v26  ;;  %v396_v29 = vld [vmem:[%s1576_s25 + $0x1568] sm:$0xff]  ;;  %393 = vst [vmem:[%s1581_s6 + $0x258] sm:$0xff] %v392_v27  ;;  %v398_v30 = vld [vmem:[%s1576_s25 + $0x15f0] sm:$0xff] }
  0x63   : > { %395 = vst [vmem:[%s1581_s6 + $0x260] sm:$0xff] %v394_v28  ;;  %397 = vst [vmem:[%s1581_s6 + $0x268] sm:$0xff] %v396_v29  ;;  %v400_v31 = vld [vmem:[%s1576_s25 + $0x15f8] sm:$0xff]  ;;  %v402_v32 = vld [vmem:[%s1576_s25 + $0x1680] sm:$0xff] }
  0x64   : > { %399 = vst [vmem:[%s1581_s6 + $0x270] sm:$0xff] %v398_v30  ;;  %401 = vst [vmem:[%s1581_s6 + $0x278] sm:$0xff] %v400_v31  ;;  %v404_v33 = vld [vmem:[%s1576_s25 + $0x1688] sm:$0xff]  ;;  %v406_v34 = vld [vmem:[%s1576_s25 + $0x1710] sm:$0xff] }
  0x65   : > { %403 = vst [vmem:[%s1581_s6 + $0x280] sm:$0xff] %v402_v32  ;;  %v408_v35 = vld [vmem:[%s1576_s25 + $0x1718] sm:$0xff]  ;;  %405 = vst [vmem:[%s1581_s6 + $0x288] sm:$0xff] %v404_v33  ;;  %v410_v36 = vld [vmem:[%s1576_s25 + $0x17a0] sm:$0xff] }
  0x66   : > { %407 = vst [vmem:[%s1581_s6 + $0x290] sm:$0xff] %v406_v34  ;;  %409 = vst [vmem:[%s1581_s6 + $0x298] sm:$0xff] %v408_v35  ;;  %v412_v37 = vld [vmem:[%s1576_s25 + $0x17a8] sm:$0xff]  ;;  %v414_v38 = vld [vmem:[%s1576_s25 + $0x1830] sm:$0xff] }
  0x67   : > { %411 = vst [vmem:[%s1581_s6 + $0x2a0] sm:$0xff] %v410_v36  ;;  %413 = vst [vmem:[%s1581_s6 + $0x2a8] sm:$0xff] %v412_v37  ;;  %v416_v39 = vld [vmem:[%s1576_s25 + $0x1838] sm:$0xff]  ;;  %v418_v40 = vld [vmem:[%s1576_s25 + $0x18c0] sm:$0xff] }
  0x68   : > { %415 = vst [vmem:[%s1581_s6 + $0x2b0] sm:$0xff] %v414_v38  ;;  %v420_v41 = vld [vmem:[%s1576_s25 + $0x18c8] sm:$0xff]  ;;  %417 = vst [vmem:[%s1581_s6 + $0x2b8] sm:$0xff] %v416_v39  ;;  %v422_v42 = vld [vmem:[%s1576_s25 + $0x1950] sm:$0xff] }
  0x69   : > { %419 = vst [vmem:[%s1581_s6 + $0x2c0] sm:$0xff] %v418_v40  ;;  %421 = vst [vmem:[%s1581_s6 + $0x2c8] sm:$0xff] %v420_v41  ;;  %v424_v43 = vld [vmem:[%s1576_s25 + $0x1958] sm:$0xff]  ;;  %v426_v44 = vld [vmem:[%s1576_s25 + $0x19e0] sm:$0xff] }
  0x6a   : > { %423 = vst [vmem:[%s1581_s6 + $0x2d0] sm:$0xff] %v422_v42  ;;  %425 = vst [vmem:[%s1581_s6 + $0x2d8] sm:$0xff] %v424_v43  ;;  %v428_v45 = vld [vmem:[%s1576_s25 + $0x19e8] sm:$0xff]  ;;  %v430_v46 = vld [vmem:[%s1576_s25 + $0x1a70] sm:$0xff] }
  0x6b   : > { %427 = vst [vmem:[%s1581_s6 + $0x2e0] sm:$0xff] %v426_v44  ;;  %v432_v47 = vld [vmem:[%s1576_s25 + $0x1a78] sm:$0xff]  ;;  %429 = vst [vmem:[%s1581_s6 + $0x2e8] sm:$0xff] %v428_v45  ;;  %v434_v48 = vld [vmem:[%s1576_s25 + $0x1b00] sm:$0xff] }
  0x6c   : > { %431 = vst [vmem:[%s1581_s6 + $0x2f0] sm:$0xff] %v430_v46  ;;  %433 = vst [vmem:[%s1581_s6 + $0x2f8] sm:$0xff] %v432_v47  ;;  %v436_v49 = vld [vmem:[%s1576_s25 + $0x1b08] sm:$0xff]  ;;  %v438_v50 = vld [vmem:[%s1576_s25 + $0x1b90] sm:$0xff] }
  0x6d   : > { %435 = vst [vmem:[%s1581_s6 + $0x300] sm:$0xff] %v434_v48  ;;  %437 = vst [vmem:[%s1581_s6 + $0x308] sm:$0xff] %v436_v49  ;;  %v440_v51 = vld [vmem:[%s1576_s25 + $0x1b98] sm:$0xff]  ;;  %v442_v52 = vld [vmem:[%s1576_s25 + $0x1c20] sm:$0xff] }
  0x6e   : > { %439 = vst [vmem:[%s1581_s6 + $0x310] sm:$0xff] %v438_v50  ;;  %v444_v53 = vld [vmem:[%s1576_s25 + $0x1c28] sm:$0xff]  ;;  %441 = vst [vmem:[%s1581_s6 + $0x318] sm:$0xff] %v440_v51  ;;  %v446_v54 = vld [vmem:[%s1576_s25 + $0x1cb0] sm:$0xff] }
  0x6f   : > { %443 = vst [vmem:[%s1581_s6 + $0x320] sm:$0xff] %v442_v52  ;;  %445 = vst [vmem:[%s1581_s6 + $0x328] sm:$0xff] %v444_v53  ;;  %v448_v55 = vld [vmem:[%s1576_s25 + $0x1cb8] sm:$0xff]  ;;  %v450_v56 = vld [vmem:[%s1576_s25 + $0x1d40] sm:$0xff] }
  0x70   : > { %447 = vst [vmem:[%s1581_s6 + $0x330] sm:$0xff] %v446_v54  ;;  %449 = vst [vmem:[%s1581_s6 + $0x338] sm:$0xff] %v448_v55  ;;  %v452_v57 = vld [vmem:[%s1576_s25 + $0x1d48] sm:$0xff]  ;;  %v454_v58 = vld [vmem:[%s1576_s25 + $0x1dd0] sm:$0xff] }
  0x71   : > { %451 = vst [vmem:[%s1581_s6 + $0x340] sm:$0xff] %v450_v56  ;;  %v456_v59 = vld [vmem:[%s1576_s25 + $0x1dd8] sm:$0xff]  ;;  %453 = vst [vmem:[%s1581_s6 + $0x348] sm:$0xff] %v452_v57  ;;  %v458_v60 = vld [vmem:[%s1576_s25 + $0x1e60] sm:$0xff] }
  0x72   : > { %455 = vst [vmem:[%s1581_s6 + $0x350] sm:$0xff] %v454_v58  ;;  %457 = vst [vmem:[%s1581_s6 + $0x358] sm:$0xff] %v456_v59  ;;  %v460_v61 = vld [vmem:[%s1576_s25 + $0x1e68] sm:$0xff]  ;;  %v462_v62 = vld [vmem:[%s1576_s25 + $0x1ef0] sm:$0xff] }
  0x73   : > { %459 = vst [vmem:[%s1581_s6 + $0x360] sm:$0xff] %v458_v60  ;;  %461 = vst [vmem:[%s1581_s6 + $0x368] sm:$0xff] %v460_v61  ;;  %v464_v63 = vld [vmem:[%s1576_s25 + $0x1ef8] sm:$0xff]  ;;  %v466_v0 = vld [vmem:[%s1576_s25 + $0x1f80] sm:$0xff] }
  0x74   : > { %463 = vst [vmem:[%s1581_s6 + $0x370] sm:$0xff] %v462_v62  ;;  %v468_v1 = vld [vmem:[%s1576_s25 + $0x1f88] sm:$0xff]  ;;  %465 = vst [vmem:[%s1581_s6 + $0x378] sm:$0xff] %v464_v63  ;;  %v470_v2 = vld [vmem:[%s1576_s25 + $0x2010] sm:$0xff] }
  0x75   : > { %467 = vst [vmem:[%s1581_s6 + $0x380] sm:$0xff] %v466_v0  ;;  %469 = vst [vmem:[%s1581_s6 + $0x388] sm:$0xff] %v468_v1  ;;  %v472_v3 = vld [vmem:[%s1576_s25 + $0x2018] sm:$0xff]  ;;  %v474_v4 = vld [vmem:[%s1576_s25 + $0x20a0] sm:$0xff] }
  0x76   : > { %471 = vst [vmem:[%s1581_s6 + $0x390] sm:$0xff] %v470_v2  ;;  %473 = vst [vmem:[%s1581_s6 + $0x398] sm:$0xff] %v472_v3  ;;  %v476_v5 = vld [vmem:[%s1576_s25 + $0x20a8] sm:$0xff]  ;;  %v478_v6 = vld [vmem:[%s1576_s25 + $0x2130] sm:$0xff] }
  0x77   : > { %475 = vst [vmem:[%s1581_s6 + $0x3a0] sm:$0xff] %v474_v4  ;;  %v480_v7 = vld [vmem:[%s1576_s25 + $0x2138] sm:$0xff]  ;;  %477 = vst [vmem:[%s1581_s6 + $0x3a8] sm:$0xff] %v476_v5  ;;  %v482_v8 = vld [vmem:[%s1576_s25 + $0x21c0] sm:$0xff] }
  0x78   : > { %479 = vst [vmem:[%s1581_s6 + $0x3b0] sm:$0xff] %v478_v6  ;;  %481 = vst [vmem:[%s1581_s6 + $0x3b8] sm:$0xff] %v480_v7  ;;  %v484_v9 = vld [vmem:[%s1576_s25 + $0x21c8] sm:$0xff]  ;;  %v486_v10 = vld [vmem:[%s1576_s25 + $0x2250] sm:$0xff] }
  0x79   : > { %483 = vst [vmem:[%s1581_s6 + $0x3c0] sm:$0xff] %v482_v8  ;;  %485 = vst [vmem:[%s1581_s6 + $0x3c8] sm:$0xff] %v484_v9  ;;  %v488_v11 = vld [vmem:[%s1576_s25 + $0x2258] sm:$0xff]  ;;  %v490_v12 = vld [vmem:[%s1576_s25 + $0x22e0] sm:$0xff] }
  0x7a   : > { %487 = vst [vmem:[%s1581_s6 + $0x3d0] sm:$0xff] %v486_v10  ;;  %v492_v13 = vld [vmem:[%s1576_s25 + $0x22e8] sm:$0xff]  ;;  %489 = vst [vmem:[%s1581_s6 + $0x3d8] sm:$0xff] %v488_v11  ;;  %v494_v14 = vld [vmem:[%s1576_s25 + $0x2370] sm:$0xff] }
  0x7b   : > { %491 = vst [vmem:[%s1581_s6 + $0x3e0] sm:$0xff] %v490_v12  ;;  %493 = vst [vmem:[%s1581_s6 + $0x3e8] sm:$0xff] %v492_v13  ;;  %v496_v15 = vld [vmem:[%s1576_s25 + $0x2378] sm:$0xff] }
  0x7c   : > { %495 = vst [vmem:[%s1581_s6 + $0x3f0] sm:$0xff] %v494_v14  ;;  %497 = vst [vmem:[%s1581_s6 + $0x3f8] sm:$0xff] %v496_v15 }
  0x7d PF: > { %p1098_p0 = scmp.ge.s32.totalorder %s1422_s22, 1  ;;  %p510_p1 = scmp.lt.s32.totalorder %s1422_s22, 37 }
  0x7f   : > { %p511_p2 = pnand %p1098_p0, %p510_p1 }
  0x80   : > { %s517_s0 = sand.u32 (!%p511_p2), 1, %s1398_s16   ;;  %s524_s5 = sand.u32 (!%p511_p2), 1, %s1390_s14  }
  0x81   : > { %514 = sbr.rel (%p511_p2) target bundleno = 455 (0x1c7), region = 70  ;;  %s1099_s23 = sshll.u32 (!%p511_p2), %s517_s0, 7 }
  0x82   : > { %s1100_s28 = sshll.u32 (!%p511_p2), %s524_s5, 10  ;;  %s551_s7 = sand.u32 (!%p511_p2), 1, %s1382_s12  }
  0x83   : > { %s1102_s25 = sshll.u32 (!%p511_p2), %s1410_s19, 1  ;;  %s1101_s11 = sshll.u32 (!%p511_p2), %s551_s7, 6 }
  0x84   : > { %p559_p3 = scmp.lt.s32.totalorder (!%p511_p2), %s1102_s25, 17  ;;  %s1845_s4 = scalar_lea.vmem (!%p511_p2), [#allocation2], %s1099_s23 }
  0x85   : > { %s1847_s6 = scalar_lea.vmem (!%p511_p2), [#allocation3], %s1100_s28  ;;  %s1849_s1 = scalar_lea.vmem (!%p511_p2), [#allocation4], %s1101_s11 }
  0x86   : > { %p1103_p4 = scmp.ne.s32.totalorder (!%p511_p2), %s1406_s18, 0 }
  0x88   : > { %s2098_s25 = smov (!%p559_p3, %s1102_s25), 17  ;;  %568 = sbr.rel (%p1103_p4) target bundleno = 149 (0x95), region = 82 }
  0x89   : > { %s561_s29 = scalar_lea.vmem %s2069_s2, %s2098_s25  ;;  %v571_v16 = vlaneseq (!%p1103_p4) }
  0x8a   : > { %v569_v18 = vld [vmem:[%s561_s29] sm:$0x3] (!%p1103_p4) }
  0x8b   : > { %v572_v17 = vshrl.u32 (!%p1103_p4), %v571_v16, 7 }
  0x8d   : > { %v573_v19 = vsub.s32 (!%p1103_p4), 0, %v572_v17  ;;  %v577_v20 = vsub.s32 (!%p1103_p4), 1, %v572_v17 }
  0x8f   : > { %v574_v21 = vrot.slane %v569_v18, %v573_v19  ;;  %v578_v22 = vrot.slane %v569_v18, %v577_v20 }
  0x91   : > { %581 = vst [vmem:[%s1849_s1] sm:$0xff] %v574_v21  ;;  %583 = vst [vmem:[%s1849_s1 + $0x10] sm:$0xff] %v574_v21 }
  0x92   : > { %585 = vst [vmem:[%s1849_s1 + $0x20] sm:$0xff] %v574_v21  ;;  %587 = vst [vmem:[%s1849_s1 + $0x30] sm:$0xff] %v574_v21 }
  0x93   : > { %582 = vst [vmem:[%s1849_s1 + $0x8] sm:$0xff] %v578_v22  ;;  %584 = vst [vmem:[%s1849_s1 + $0x18] sm:$0xff] %v578_v22 }
  0x94   : > { %586 = vst [vmem:[%s1849_s1 + $0x28] sm:$0xff] %v578_v22  ;;  %588 = vst [vmem:[%s1849_s1 + $0x38] sm:$0xff] %v578_v22 }
  0x95 PF: > { %v614_v23 = vld [vmem:[%s1847_s6 + $0x8] sm:$0xff]  ;;  %v616_v24 = vld [vmem:[%s1847_s6 + $0x18] sm:$0xff]  ;;  %v613_v28 = vld [vmem:[%s1847_s6] sm:$0xff]  ;;  %s1110_s12 = sshll.u32 (%p1538_p12), %s1410_s19, 4 }
  0x96   : > { %v678_v25 = vld [vmem:[%s1847_s6 + $0x208] sm:$0xff]  ;;  %v1111_v26 = vpack.c.bf16 %v616_v24, %v614_v23  ;;  %v680_v27 = vld [vmem:[%s1847_s6 + $0x218] sm:$0xff]  ;;  %v615_v29 = vld [vmem:[%s1847_s6 + $0x10] sm:$0xff]  ;;  %s947_s18 = scalar_lea.vmem (%p1538_p12), %s2070_s3, %s1110_s12 }
  0x97   : > { %v1175_v30 = vpack.c.bf16 %v680_v27, %v678_v25  ;;  %v1113_v31 = vpack.c.bf16 %v615_v29, %v613_v28  ;;  %v677_v32 = vld [vmem:[%s1847_s6 + $0x200] sm:$0xff]  ;;  %v679_v33 = vld [vmem:[%s1847_s6 + $0x210] sm:$0xff]  ;;  %v618_v34 = vld [vmem:[%s1847_s6 + $0x28] sm:$0xff] }
  0x98   : > { %1112 = vmatprep.subr.bf16.mxu1 %v1111_v26  ;;  %v1177_v35 = vpack.c.bf16 %v679_v33, %v677_v32  ;;  %v620_v36 = vld [vmem:[%s1847_s6 + $0x38] sm:$0xff]  ;;  %v682_v37 = vld [vmem:[%s1847_s6 + $0x228] sm:$0xff]  ;;  %v617_v41 = vld [vmem:[%s1847_s6 + $0x20] sm:$0xff] }
  0x99   : > { %v684_v38 = vld [vmem:[%s1847_s6 + $0x238] sm:$0xff]  ;;  %1176 = vmatprep.subr.bf16.mxu0 %v1175_v30  ;;  %1114 = vmatpush1.bf16.msra.mxu1 %v1113_v31  ;;  %v1115_v39 = vpack.c.bf16 %v620_v36, %v618_v34  ;;  %v619_v42 = vld [vmem:[%s1847_s6 + $0x30] sm:$0xff]  ;;  %v681_v43 = vld [vmem:[%s1847_s6 + $0x220] sm:$0xff] }
  0x9a   : > { %v1179_v40 = vpack.c.bf16 %v684_v38, %v682_v37  ;;  %1178 = vmatpush1.bf16.msra.mxu0 %v1177_v35  ;;  %v1117_v44 = vpack.c.bf16 %v619_v42, %v617_v41  ;;  %v683_v45 = vld [vmem:[%s1847_s6 + $0x230] sm:$0xff]  ;;  %v622_v46 = vld [vmem:[%s1847_s6 + $0x48] sm:$0xff]  ;;  %v624_v47 = vld [vmem:[%s1847_s6 + $0x58] sm:$0xff] }
  0x9b   : > { %1116 = vmatprep.subr.bf16.mxu1 %v1115_v39  ;;  %v1181_v48 = vpack.c.bf16 %v683_v45, %v681_v43  ;;  %v1119_v49 = vpack.c.bf16 %v624_v47, %v622_v46  ;;  %v686_v50 = vld [vmem:[%s1847_s6 + $0x248] sm:$0xff]  ;;  %v688_v51 = vld [vmem:[%s1847_s6 + $0x258] sm:$0xff]  ;;  %v621_v52 = vld [vmem:[%s1847_s6 + $0x40] sm:$0xff] }
  0x9c   : > { %1180 = vmatprep.subr.bf16.mxu0 %v1179_v40  ;;  %v1183_v53 = vpack.c.bf16 %v688_v51, %v686_v50  ;;  %v623_v54 = vld [vmem:[%s1847_s6 + $0x50] sm:$0xff]  ;;  %v685_v55 = vld [vmem:[%s1847_s6 + $0x240] sm:$0xff]  ;;  %v626_v58 = vld [vmem:[%s1847_s6 + $0x68] sm:$0xff] }
  0x9d   : > { %v687_v56 = vld [vmem:[%s1847_s6 + $0x250] sm:$0xff]  ;;  %1118 = vmatpush1.bf16.msra.mxu1 %v1117_v44  ;;  %v1121_v57 = vpack.c.bf16 %v623_v54, %v621_v52  ;;  %v628_v59 = vld [vmem:[%s1847_s6 + $0x78] sm:$0xff]  ;;  %v690_v60 = vld [vmem:[%s1847_s6 + $0x268] sm:$0xff] }
  0x9e   : > { %1182 = vmatpush1.bf16.msra.mxu0 %v1181_v48  ;;  %1120 = vmatprep.subr.bf16.mxu1 %v1119_v49  ;;  %v1185_v61 = vpack.c.bf16 %v687_v56, %v685_v55  ;;  %v1123_v62 = vpack.c.bf16 %v628_v59, %v626_v58  ;;  %v692_v63 = vld [vmem:[%s1847_s6 + $0x278] sm:$0xff]  ;;  %v625_v0 = vld [vmem:[%s1847_s6 + $0x60] sm:$0xff]  ;;  %v627_v1 = vld [vmem:[%s1847_s6 + $0x70] sm:$0xff] }
  0x9f   : > { %1184 = vmatprep.subr.bf16.mxu0 %v1183_v53  ;;  %v1187_v2 = vpack.c.bf16 %v692_v63, %v690_v60  ;;  %v689_v3 = vld [vmem:[%s1847_s6 + $0x260] sm:$0xff]  ;;  %v691_v4 = vld [vmem:[%s1847_s6 + $0x270] sm:$0xff]  ;;  %v630_v5 = vld [vmem:[%s1847_s6 + $0x88] sm:$0xff]  ;;  %v1125_v9 = vpack.c.bf16 %v627_v1, %v625_v0 }
  0xa0   : > { %v632_v6 = vld [vmem:[%s1847_s6 + $0x98] sm:$0xff]  ;;  %v694_v7 = vld [vmem:[%s1847_s6 + $0x288] sm:$0xff]  ;;  %v1189_v10 = vpack.c.bf16 %v691_v4, %v689_v3  ;;  %v629_v12 = vld [vmem:[%s1847_s6 + $0x80] sm:$0xff] }
  0xa1   : > { %v696_v8 = vld [vmem:[%s1847_s6 + $0x298] sm:$0xff]  ;;  %1122 = vmatpush1.bf16.msra.mxu1 %v1121_v57  ;;  %v1127_v11 = vpack.c.bf16 %v632_v6, %v630_v5  ;;  %v631_v13 = vld [vmem:[%s1847_s6 + $0x90] sm:$0xff]  ;;  %v693_v14 = vld [vmem:[%s1847_s6 + $0x280] sm:$0xff] }
  0xa2   : > { %1186 = vmatpush1.bf16.msra.mxu0 %v1185_v61  ;;  %1124 = vmatprep.subr.bf16.mxu1 %v1123_v62  ;;  %v1191_v15 = vpack.c.bf16 %v696_v8, %v694_v7  ;;  %v695_v16 = vld [vmem:[%s1847_s6 + $0x290] sm:$0xff]  ;;  %v634_v17 = vld [vmem:[%s1847_s6 + $0xa8] sm:$0xff]  ;;  %v636_v18 = vld [vmem:[%s1847_s6 + $0xb8] sm:$0xff]  ;;  %v1129_v21 = vpack.c.bf16 %v631_v13, %v629_v12 }
  0xa3   : > { %1188 = vmatprep.subr.bf16.mxu0 %v1187_v2  ;;  %v698_v19 = vld [vmem:[%s1847_s6 + $0x2a8] sm:$0xff]  ;;  %v700_v20 = vld [vmem:[%s1847_s6 + $0x2b8] sm:$0xff]  ;;  %v1193_v22 = vpack.c.bf16 %v695_v16, %v693_v14  ;;  %v1131_v23 = vpack.c.bf16 %v636_v18, %v634_v17  ;;  %v633_v24 = vld [vmem:[%s1847_s6 + $0xa0] sm:$0xff] }
  0xa4   : > { %v635_v25 = vld [vmem:[%s1847_s6 + $0xb0] sm:$0xff]  ;;  %v697_v26 = vld [vmem:[%s1847_s6 + $0x2a0] sm:$0xff]  ;;  %v1195_v27 = vpack.c.bf16 %v700_v20, %v698_v19  ;;  %v638_v29 = vld [vmem:[%s1847_s6 + $0xc8] sm:$0xff] }
  0xa5   : > { %1126 = vmatpush1.bf16.msra.mxu1 %v1125_v9  ;;  %v699_v28 = vld [vmem:[%s1847_s6 + $0x2b0] sm:$0xff]  ;;  %v640_v30 = vld [vmem:[%s1847_s6 + $0xd8] sm:$0xff]  ;;  %v702_v31 = vld [vmem:[%s1847_s6 + $0x2c8] sm:$0xff]  ;;  %v1133_v33 = vpack.c.bf16 %v635_v25, %v633_v24 }
  0xa6   : > { %1190 = vmatpush1.bf16.msra.mxu0 %v1189_v10  ;;  %1128 = vmatprep.subr.bf16.mxu1 %v1127_v11  ;;  %v704_v32 = vld [vmem:[%s1847_s6 + $0x2d8] sm:$0xff]  ;;  %v1197_v34 = vpack.c.bf16 %v699_v28, %v697_v26  ;;  %v1135_v35 = vpack.c.bf16 %v640_v30, %v638_v29  ;;  %v637_v36 = vld [vmem:[%s1847_s6 + $0xc0] sm:$0xff]  ;;  %v639_v37 = vld [vmem:[%s1847_s6 + $0xd0] sm:$0xff] }
  0xa7   : > { %1192 = vmatprep.subr.bf16.mxu0 %v1191_v15  ;;  %v701_v38 = vld [vmem:[%s1847_s6 + $0x2c0] sm:$0xff]  ;;  %v1199_v39 = vpack.c.bf16 %v704_v32, %v702_v31  ;;  %v703_v40 = vld [vmem:[%s1847_s6 + $0x2d0] sm:$0xff]  ;;  %v642_v41 = vld [vmem:[%s1847_s6 + $0xe8] sm:$0xff]  ;;  %v1137_v45 = vpack.c.bf16 %v639_v37, %v637_v36 }
  0xa8   : > { %v644_v42 = vld [vmem:[%s1847_s6 + $0xf8] sm:$0xff]  ;;  %v706_v43 = vld [vmem:[%s1847_s6 + $0x2e8] sm:$0xff]  ;;  %v1201_v46 = vpack.c.bf16 %v703_v40, %v701_v38  ;;  %v641_v48 = vld [vmem:[%s1847_s6 + $0xe0] sm:$0xff] }
  0xa9   : > { %1130 = vmatpush1.bf16.msra.mxu1 %v1129_v21  ;;  %v708_v44 = vld [vmem:[%s1847_s6 + $0x2f8] sm:$0xff]  ;;  %v1139_v47 = vpack.c.bf16 %v644_v42, %v642_v41  ;;  %v643_v49 = vld [vmem:[%s1847_s6 + $0xf0] sm:$0xff]  ;;  %v705_v50 = vld [vmem:[%s1847_s6 + $0x2e0] sm:$0xff] }
  0xaa   : > { %1194 = vmatpush1.bf16.msra.mxu0 %v1193_v22  ;;  %1132 = vmatprep.subr.bf16.mxu1 %v1131_v23  ;;  %v1203_v51 = vpack.c.bf16 %v708_v44, %v706_v43  ;;  %v707_v52 = vld [vmem:[%s1847_s6 + $0x2f0] sm:$0xff]  ;;  %v646_v53 = vld [vmem:[%s1847_s6 + $0x108] sm:$0xff]  ;;  %v648_v54 = vld [vmem:[%s1847_s6 + $0x118] sm:$0xff]  ;;  %v1141_v57 = vpack.c.bf16 %v643_v49, %v641_v48 }
  0xab   : > { %1196 = vmatprep.subr.bf16.mxu0 %v1195_v27  ;;  %v710_v55 = vld [vmem:[%s1847_s6 + $0x308] sm:$0xff]  ;;  %v712_v56 = vld [vmem:[%s1847_s6 + $0x318] sm:$0xff]  ;;  %v1205_v58 = vpack.c.bf16 %v707_v52, %v705_v50  ;;  %v1143_v59 = vpack.c.bf16 %v648_v54, %v646_v53  ;;  %v645_v60 = vld [vmem:[%s1847_s6 + $0x100] sm:$0xff] }
  0xac   : > { %v647_v61 = vld [vmem:[%s1847_s6 + $0x110] sm:$0xff]  ;;  %v709_v62 = vld [vmem:[%s1847_s6 + $0x300] sm:$0xff]  ;;  %v1207_v63 = vpack.c.bf16 %v712_v56, %v710_v55  ;;  %v650_v1 = vld [vmem:[%s1847_s6 + $0x128] sm:$0xff] }
  0xad   : > { %1134 = vmatpush1.bf16.msra.mxu1 %v1133_v33  ;;  %v711_v0 = vld [vmem:[%s1847_s6 + $0x310] sm:$0xff]  ;;  %v652_v2 = vld [vmem:[%s1847_s6 + $0x138] sm:$0xff]  ;;  %v714_v3 = vld [vmem:[%s1847_s6 + $0x328] sm:$0xff]  ;;  %v1145_v5 = vpack.c.bf16 %v647_v61, %v645_v60 }
  0xae   : > { %1198 = vmatpush1.bf16.msra.mxu0 %v1197_v34  ;;  %1136 = vmatprep.subr.bf16.mxu1 %v1135_v35  ;;  %v716_v4 = vld [vmem:[%s1847_s6 + $0x338] sm:$0xff]  ;;  %v1209_v6 = vpack.c.bf16 %v711_v0, %v709_v62  ;;  %v1147_v7 = vpack.c.bf16 %v652_v2, %v650_v1  ;;  %v649_v8 = vld [vmem:[%s1847_s6 + $0x120] sm:$0xff]  ;;  %v651_v9 = vld [vmem:[%s1847_s6 + $0x130] sm:$0xff] }
  0xaf   : > { %1200 = vmatprep.subr.bf16.mxu0 %v1199_v39  ;;  %v713_v10 = vld [vmem:[%s1847_s6 + $0x320] sm:$0xff]  ;;  %v1211_v11 = vpack.c.bf16 %v716_v4, %v714_v3  ;;  %v715_v12 = vld [vmem:[%s1847_s6 + $0x330] sm:$0xff]  ;;  %v654_v13 = vld [vmem:[%s1847_s6 + $0x148] sm:$0xff]  ;;  %v1149_v17 = vpack.c.bf16 %v651_v9, %v649_v8 }
  0xb0   : > { %v656_v14 = vld [vmem:[%s1847_s6 + $0x158] sm:$0xff]  ;;  %v718_v15 = vld [vmem:[%s1847_s6 + $0x348] sm:$0xff]  ;;  %v1213_v18 = vpack.c.bf16 %v715_v12, %v713_v10  ;;  %v653_v20 = vld [vmem:[%s1847_s6 + $0x140] sm:$0xff] }
  0xb1   : > { %1138 = vmatpush1.bf16.msra.mxu1 %v1137_v45  ;;  %v720_v16 = vld [vmem:[%s1847_s6 + $0x358] sm:$0xff]  ;;  %v1151_v19 = vpack.c.bf16 %v656_v14, %v654_v13  ;;  %v655_v21 = vld [vmem:[%s1847_s6 + $0x150] sm:$0xff]  ;;  %v717_v22 = vld [vmem:[%s1847_s6 + $0x340] sm:$0xff] }
  0xb2   : > { %1202 = vmatpush1.bf16.msra.mxu0 %v1201_v46  ;;  %1140 = vmatprep.subr.bf16.mxu1 %v1139_v47  ;;  %v1215_v23 = vpack.c.bf16 %v720_v16, %v718_v15  ;;  %v719_v24 = vld [vmem:[%s1847_s6 + $0x350] sm:$0xff]  ;;  %v658_v25 = vld [vmem:[%s1847_s6 + $0x168] sm:$0xff]  ;;  %v660_v26 = vld [vmem:[%s1847_s6 + $0x178] sm:$0xff]  ;;  %v1153_v29 = vpack.c.bf16 %v655_v21, %v653_v20 }
  0xb3   : > { %1204 = vmatprep.subr.bf16.mxu0 %v1203_v51  ;;  %v722_v27 = vld [vmem:[%s1847_s6 + $0x368] sm:$0xff]  ;;  %v724_v28 = vld [vmem:[%s1847_s6 + $0x378] sm:$0xff]  ;;  %v657_v30 = vld [vmem:[%s1847_s6 + $0x160] sm:$0xff]  ;;  %v1217_v31 = vpack.c.bf16 %v719_v24, %v717_v22  ;;  %v1155_v32 = vpack.c.bf16 %v660_v26, %v658_v25 }
  0xb4   : > { %v659_v33 = vld [vmem:[%s1847_s6 + $0x170] sm:$0xff]  ;;  %v721_v34 = vld [vmem:[%s1847_s6 + $0x360] sm:$0xff]  ;;  %v1219_v36 = vpack.c.bf16 %v724_v28, %v722_v27  ;;  %v662_v37 = vld [vmem:[%s1847_s6 + $0x188] sm:$0xff] }
  0xb5   : > { %1142 = vmatpush1.bf16.msra.mxu1 %v1141_v57  ;;  %v723_v35 = vld [vmem:[%s1847_s6 + $0x370] sm:$0xff]  ;;  %v664_v38 = vld [vmem:[%s1847_s6 + $0x198] sm:$0xff]  ;;  %v598_v39 = vld [vmem:[%s1845_s4 + $0x8] sm:$0xff]  ;;  %v1157_v43 = vpack.c.bf16 %v659_v33, %v657_v30 }
  0xb6   : > { %1206 = vmatpush1.bf16.msra.mxu0 %v1205_v58  ;;  %1144 = vmatprep.subr.bf16.mxu1 %v1143_v59  ;;  %v726_v40 = vld [vmem:[%s1847_s6 + $0x388] sm:$0xff]  ;;  %v728_v41 = vld [vmem:[%s1847_s6 + $0x398] sm:$0xff]  ;;  %v1221_v44 = vpack.c.bf16 %v723_v35, %v721_v34  ;;  %v1159_v45 = vpack.c.bf16 %v664_v38, %v662_v37  ;;  %v661_v46 = vld [vmem:[%s1847_s6 + $0x180] sm:$0xff] }
  0xb7   : > { %1208 = vmatprep.subr.bf16.mxu0 %v1207_v63  ;;  %805 = vmatprep.mubr.f32.mxu1 %v598_v39  ;;  %v600_v42 = vld [vmem:[%s1845_s4 + $0x18] sm:$0xff]  ;;  %v663_v47 = vld [vmem:[%s1847_s6 + $0x190] sm:$0xff]  ;;  %v725_v48 = vld [vmem:[%s1847_s6 + $0x380] sm:$0xff]  ;;  %v1223_v49 = vpack.c.bf16 %v728_v41, %v726_v40 }
  0xb8   : > { %894 = vmatprep.mubr.f32.mxu0 %v600_v42  ;;  %v727_v50 = vld [vmem:[%s1847_s6 + $0x390] sm:$0xff]  ;;  %v666_v51 = vld [vmem:[%s1847_s6 + $0x1a8] sm:$0xff]  ;;  %v668_v52 = vld [vmem:[%s1847_s6 + $0x1b8] sm:$0xff]  ;;  %v1161_v55 = vpack.c.bf16 %v663_v47, %v661_v46 }
  0xb9   : > { %1146 = vmatpush1.bf16.msra.mxu1 %v1145_v5  ;;  %v730_v53 = vld [vmem:[%s1847_s6 + $0x3a8] sm:$0xff]  ;;  %v732_v54 = vld [vmem:[%s1847_s6 + $0x3b8] sm:$0xff]  ;;  %v1225_v56 = vpack.c.bf16 %v727_v50, %v725_v48  ;;  %v1163_v57 = vpack.c.bf16 %v668_v52, %v666_v51  ;;  %v665_v58 = vld [vmem:[%s1847_s6 + $0x1a0] sm:$0xff] }
  0xba   : > { %1210 = vmatpush1.bf16.msra.mxu0 %v1209_v6  ;;  %1148 = vmatprep.subr.bf16.mxu1 %v1147_v7  ;;  %v667_v59 = vld [vmem:[%s1847_s6 + $0x1b0] sm:$0xff]  ;;  %v729_v60 = vld [vmem:[%s1847_s6 + $0x3a0] sm:$0xff]  ;;  %v1227_v61 = vpack.c.bf16 %v732_v54, %v730_v53  ;;  %v670_v63 = vld [vmem:[%s1847_s6 + $0x1c8] sm:$0xff] }
  0xbb   : > { %1212 = vmatprep.subr.bf16.mxu0 %v1211_v11  ;;  %v731_v62 = vld [vmem:[%s1847_s6 + $0x3b0] sm:$0xff]  ;;  %v672_v0 = vld [vmem:[%s1847_s6 + $0x1d8] sm:$0xff]  ;;  %v734_v1 = vld [vmem:[%s1847_s6 + $0x3c8] sm:$0xff]  ;;  %v1165_v3 = vpack.c.bf16 %v667_v59, %v665_v58 }
  0xbc   : > { %v736_v2 = vld [vmem:[%s1847_s6 + $0x3d8] sm:$0xff]  ;;  %v1229_v4 = vpack.c.bf16 %v731_v62, %v729_v60  ;;  %v1167_v5 = vpack.c.bf16 %v672_v0, %v670_v63  ;;  %v669_v6 = vld [vmem:[%s1847_s6 + $0x1c0] sm:$0xff]  ;;  %v671_v7 = vld [vmem:[%s1847_s6 + $0x1d0] sm:$0xff] }
  0xbd   : > { %1150 = vmatpush1.bf16.msra.mxu1 %v1149_v17  ;;  %v733_v8 = vld [vmem:[%s1847_s6 + $0x3c0] sm:$0xff]  ;;  %v1231_v9 = vpack.c.bf16 %v736_v2, %v734_v1  ;;  %v735_v10 = vld [vmem:[%s1847_s6 + $0x3d0] sm:$0xff]  ;;  %v674_v11 = vld [vmem:[%s1847_s6 + $0x1e8] sm:$0xff]  ;;  %v1169_v15 = vpack.c.bf16 %v671_v7, %v669_v6 }
  0xbe   : > { %1214 = vmatpush1.bf16.msra.mxu0 %v1213_v18  ;;  %1152 = vmatprep.subr.bf16.mxu1 %v1151_v19  ;;  %v676_v12 = vld [vmem:[%s1847_s6 + $0x1f8] sm:$0xff]  ;;  %v738_v13 = vld [vmem:[%s1847_s6 + $0x3e8] sm:$0xff]  ;;  %v1233_v16 = vpack.c.bf16 %v735_v10, %v733_v8  ;;  %v673_v18 = vld [vmem:[%s1847_s6 + $0x1e0] sm:$0xff] }
  0xbf   : > { %1216 = vmatprep.subr.bf16.mxu0 %v1215_v23  ;;  %v740_v14 = vld [vmem:[%s1847_s6 + $0x3f8] sm:$0xff]  ;;  %v1171_v17 = vpack.c.bf16 %v676_v12, %v674_v11  ;;  %v675_v19 = vld [vmem:[%s1847_s6 + $0x1f0] sm:$0xff]  ;;  %v737_v21 = vld [vmem:[%s1847_s6 + $0x3e0] sm:$0xff] }
  0xc0   : > { %v1235_v20 = vpack.c.bf16 %v740_v14, %v738_v13  ;;  %v739_v22 = vld [vmem:[%s1847_s6 + $0x3f0] sm:$0xff]  ;;  %v1173_v23 = vpack.c.bf16 %v675_v19, %v673_v18  ;;  %v597_v25 = vld [vmem:[%s1845_s4] sm:$0xff]  ;;  %v602_v27 = vld [vmem:[%s1845_s4 + $0x28] sm:$0xff] }
  0xc1   : > { %1154 = vmatpush1.bf16.msra.mxu1 %v1153_v29  ;;  %v1237_v24 = vpack.c.bf16 %v739_v22, %v737_v21  ;;  %v599_v26 = vld [vmem:[%s1845_s4 + $0x10] sm:$0xff]  ;;  %v604_v28 = vld [vmem:[%s1845_s4 + $0x38] sm:$0xff]  ;;  %v601_v29 = vld [vmem:[%s1845_s4 + $0x20] sm:$0xff] }
  0xc2   : > { %1218 = vmatpush1.bf16.msra.mxu0 %v1217_v31  ;;  %1156 = vmatprep.subr.bf16.mxu1 %v1155_v32  ;;  %v603_v30 = vld [vmem:[%s1845_s4 + $0x30] sm:$0xff]  ;;  %v606_v31 = vld [vmem:[%s1845_s4 + $0x48] sm:$0xff]  ;;  %v608_v32 = vld [vmem:[%s1845_s4 + $0x58] sm:$0xff] }
  0xc3   : > { %1220 = vmatprep.subr.bf16.mxu0 %v1219_v36  ;;  %v605_v33 = vld [vmem:[%s1845_s4 + $0x40] sm:$0xff]  ;;  %v607_v34 = vld [vmem:[%s1845_s4 + $0x50] sm:$0xff]  ;;  %v610_v35 = vld [vmem:[%s1845_s4 + $0x68] sm:$0xff] }
  0xc4   : > { %v612_v36 = vld [vmem:[%s1845_s4 + $0x78] sm:$0xff]  ;;  %v609_v37 = vld [vmem:[%s1845_s4 + $0x60] sm:$0xff]  ;;  %v611_v38 = vld [vmem:[%s1845_s4 + $0x70] sm:$0xff] }
  0xc5   : > { %1158 = vmatpush1.bf16.msra.mxu1 %v1157_v43  ;;  %v589_v40 = vld [vmem:[%s1849_s1] sm:$0xff]  ;;  %v591_v50 = vld [vmem:[%s1849_s1 + $0x10] sm:$0xff]  ;;  %v592_v54 = vld [vmem:[%s1849_s1 + $0x18] sm:$0xff] }
  0xc6   : > { %1222 = vmatpush1.bf16.msra.mxu0 %v1221_v44  ;;  %1160 = vmatprep.subr.bf16.mxu1 %v1159_v45  ;;  %v590_v44 = vld [vmem:[%s1849_s1 + $0x8] sm:$0xff]  ;;  %v593_v60 = vld [vmem:[%s1849_s1 + $0x20] sm:$0xff]  ;;  %v595_v6 = vld [vmem:[%s1849_s1 + $0x30] sm:$0xff] }
  0xc7   : > { %1224 = vmatprep.subr.bf16.mxu0 %v1223_v49  ;;  %v594_v0 = vld [vmem:[%s1849_s1 + $0x28] sm:$0xff]  ;;  %v596_v10 = vld [vmem:[%s1849_s1 + $0x38] sm:$0xff] }
  0xc9   : > { %1162 = vmatpush1.bf16.msra.mxu1 %v1161_v55 }
  0xca   : > { %1226 = vmatpush1.bf16.msra.mxu0 %v1225_v56  ;;  %1164 = vmatprep.subr.bf16.mxu1 %v1163_v57 }
  0xcb   : > { %1228 = vmatprep.subr.bf16.mxu0 %v1227_v61 }
  0xcd   : > { %1166 = vmatpush1.bf16.msra.mxu1 %v1165_v3 }
  0xce   : > { %1230 = vmatpush1.bf16.msra.mxu0 %v1229_v4  ;;  %1168 = vmatprep.subr.bf16.mxu1 %v1167_v5 }
  0xcf   : > { %1232 = vmatprep.subr.bf16.mxu0 %v1231_v9 }
  0xd1   : > { %1170 = vmatpush1.bf16.msra.mxu1 %v1169_v15 }
  0xd2   : > { %1234 = vmatpush1.bf16.msra.mxu0 %v1233_v16  ;;  %1172 = vmatprep.subr.bf16.mxu1 %v1171_v17 }
  0xd3   : > { %1236 = vmatprep.subr.bf16.mxu0 %v1235_v20 }
  0xd5   : > { %1174 = vmatpush1.bf16.msra.mxu1 %v1173_v23 }
  0xd6   : > { %1238 = vmatpush1.bf16.msra.mxu0 %v1237_v24 }
  0xd8   : > { %806 = vmatmul.mubr.f32.vlgmr.msra.gmra.mrb[0].mxu1 %v597_v25 }
  0xd9   : > { %895 = vmatmul.mubr.f32.vlgmr.msra.gmra.mrb[0].mxu0 %v599_v26  ;;  %811 = vmatprep.mubr.f32.mxu1 %v602_v27 }
  0xda   : > { %900 = vmatprep.mubr.f32.mxu0 %v604_v28 }
  0xdc   : > { %812 = vmatmul.mubr.f32.gmra.mrb[2].mxu1 %v601_v29 }
  0xdd   : > { %901 = vmatmul.mubr.f32.gmra.mrb[2].mxu0 %v603_v30  ;;  %817 = vmatprep.mubr.f32.mxu1 %v606_v31 }
  0xde   : > { %906 = vmatprep.mubr.f32.mxu0 %v608_v32 }
  0xe0   : > { %818 = vmatmul.mubr.f32.gmra.mrb[4].mxu1 %v605_v33 }
  0xe1   : > { %907 = vmatmul.mubr.f32.gmra.mrb[4].mxu0 %v607_v34  ;;  %823 = vmatprep.mubr.f32.mxu1 %v610_v35 }
  0xe2   : > { %912 = vmatprep.mubr.f32.mxu0 %v612_v36 }
  0xe4   : > { %824 = vmatmul.mubr.f32.gmra.mrb[6].mxu1 %v609_v37 }
  0xe5   : > { %913 = vmatmul.mubr.f32.gmra.mrb[6].mxu0 %v611_v38 }
 0x1ab   : > { %v807_v39 = vpop.f32.mrb[0].mxu1 }
 0x1ac   : > { %v896_v41 = vpop.f32.mrb[0].mxu0  ;;  %v809_v42 = vpop.f32.mrb[1].mxu1 }
 0x1ad   : > { %v897_v43 = vadd.f32 %v896_v41, %v807_v39  ;;  %v898_v45 = vpop.f32.mrb[1].mxu0 }
 0x1ae   : > { %v899_v46 = vadd.f32 %v898_v45, %v809_v42 }
 0x1af   : > { %v919_v47 = vadd.f32 %v897_v43, %v589_v40  ;;  %v813_v48 = vpop.f32.mrb[2].mxu1 }
 0x1b0   : > { %v920_v49 = vadd.f32 %v899_v46, %v590_v44  ;;  %v902_v51 = vpop.f32.mrb[2].mxu0  ;;  %v815_v52 = vpop.f32.mrb[3].mxu1 }
 0x1b1   : > { %927 = vst [vmem:[%s1849_s1] sm:$0xff] %v919_v47  ;;  %v903_v53 = vadd.f32 %v902_v51, %v813_v48  ;;  %v904_v55 = vpop.f32.mrb[3].mxu0 }
 0x1b2   : > { %928 = vst [vmem:[%s1849_s1 + $0x8] sm:$0xff] %v920_v49  ;;  %v905_v56 = vadd.f32 %v904_v55, %v815_v52 }
 0x1b3   : > { %v921_v57 = vadd.f32 %v903_v53, %v591_v50  ;;  %v819_v58 = vpop.f32.mrb[4].mxu1 }
 0x1b4   : > { %v922_v59 = vadd.f32 %v905_v56, %v592_v54  ;;  %v908_v61 = vpop.f32.mrb[4].mxu0  ;;  %v821_v62 = vpop.f32.mrb[5].mxu1 }
 0x1b5   : > { %929 = vst [vmem:[%s1849_s1 + $0x10] sm:$0xff] %v921_v57  ;;  %v909_v63 = vadd.f32 %v908_v61, %v819_v58  ;;  %v910_v1 = vpop.f32.mrb[5].mxu0 }
 0x1b6   : > { %930 = vst [vmem:[%s1849_s1 + $0x18] sm:$0xff] %v922_v59  ;;  %v911_v2 = vadd.f32 %v910_v1, %v821_v62 }
 0x1b7   : > { %v923_v3 = vadd.f32 %v909_v63, %v593_v60  ;;  %v825_v4 = vpop.f32.mrb[6].mxu1 }
 0x1b8   : > { %v924_v5 = vadd.f32 %v911_v2, %v594_v0  ;;  %v914_v7 = vpop.f32.mrb[6].mxu0  ;;  %v827_v8 = vpop.f32.mrb[7].mxu1  ;;  %941 = sbr.rel (!%p1538_p12) target bundleno = 455 (0x1c7), region = 86  ;;  %v960_v15 = vld [vmem:[%s1849_s1] sm:$0xff] (%p1538_p12) }
 0x1b9   : > { %931 = vst [vmem:[%s1849_s1 + $0x20] sm:$0xff] %v923_v3  ;;  %v915_v9 = vadd.f32 %v914_v7, %v825_v4  ;;  %v916_v11 = vpop.f32.mrb[7].mxu0  ;;  %v962_v16 = vld [vmem:[%s1849_s1 + $0x8] sm:$0xff] (%p1538_p12)  ;;  %961 = vst [vmem:[%s947_s18] sm:$0xff] (%p1538_p12), %v960_v15 }
 0x1ba   : > { %932 = vst [vmem:[%s1849_s1 + $0x28] sm:$0xff] %v924_v5  ;;  %v917_v12 = vadd.f32 %v916_v11, %v827_v8  ;;  %963 = vst [vmem:[%s947_s18 + $0x8] sm:$0xff] (%p1538_p12), %v962_v16 }
 0x1bb   : > { %v925_v13 = vadd.f32 %v915_v9, %v595_v6 }
 0x1bc   : > { %v926_v14 = vadd.f32 %v917_v12, %v596_v10  ;;  %v964_v17 = vld [vmem:[%s1849_s1 + $0x10] sm:$0xff] (%p1538_p12) }
 0x1bd   : > { %933 = vst [vmem:[%s1849_s1 + $0x30] sm:$0xff] %v925_v13  ;;  %v966_v18 = vld [vmem:[%s1849_s1 + $0x18] sm:$0xff] (%p1538_p12)  ;;  %965 = vst [vmem:[%s947_s18 + $0x90] sm:$0xff] (%p1538_p12), %v964_v17 }
 0x1be   : > { %934 = vst [vmem:[%s1849_s1 + $0x38] sm:$0xff] %v926_v14  ;;  %967 = vst [vmem:[%s947_s18 + $0x98] sm:$0xff] (%p1538_p12), %v966_v18 }
 0x1c0   : > { %v968_v19 = vld [vmem:[%s1849_s1 + $0x20] sm:$0xff] }
 0x1c1   : > { %v970_v20 = vld [vmem:[%s1849_s1 + $0x28] sm:$0xff]  ;;  %969 = vst [vmem:[%s947_s18 + $0x120] sm:$0xff] %v968_v19 }
 0x1c2   : > { %971 = vst [vmem:[%s947_s18 + $0x128] sm:$0xff] %v970_v20 }
 0x1c4   : > { %v972_v21 = vld [vmem:[%s1849_s1 + $0x30] sm:$0xff] }
 0x1c5   : > { %v974_v22 = vld [vmem:[%s1849_s1 + $0x38] sm:$0xff]  ;;  %973 = vst [vmem:[%s947_s18 + $0x1b0] sm:$0xff] %v972_v21 }
 0x1c6   : > { %975 = vst [vmem:[%s947_s18 + $0x1b8] sm:$0xff] %v974_v22 }
 0x1c7 PF: > { %s13_s22 = sadd.s32 1, %s1422_s22   ;;  %s2080_s10 = sld [smem:[#allocation5_spill]] }
 0x1c8   : > { %p10_p5 = scmp.ge.s32.totalorder %s13_s22, 38   ;;  %s2081_s12 = smov %s1386_s13 }
 0x1c9   : > { %s2082_s13 = smov %s1536_s9  ;;  %s2083_s14 = smov %s1394_s15 }
 0x1ca   : > { %s2084_s15 = smov %s1533_s8  ;;  %s2085_s16 = smov %s1402_s17 }
 0x1cb   : > { %s2086_s17 = smov %s1519_s30  ;;  %s2087_s18 = smov %s1414_s20 }
 0x1cc   : > { %s2088_s19 = smov %s1418_s21  ;;  %s2089_s20 = smov %s2092_s24 }
 0x1cd   : > { %s2090_s21 = smov %s2080_s10  ;;  %12 = sbr.rel (!%p10_p5) target bundleno = 9 (0x9), region = 151 }

// kernel: head_forward.10
= control target key start
LH: loop header
LB: loop body
LE: loop exit
PB: predicated region body
PF: predicated region fallthrough
CT: control target
= control target key end

     0   :  { %s1098_s12 = smov 0   ;;  %s1100_s13 = smov 0   ;;  %s1454_s0 = inlined_call_operand.vmem [shape: f32[32,2048], index: 0, kind: input, shape index: {}]   ;;  %s1455_s1 = inlined_call_operand.vmem [shape: f32[2048,256], index: 1, kind: input, shape index: {}]   ;;  %s1456_s2 = inlined_call_operand.vmem [shape: f32[1,256], index: 2, kind: input, shape index: {}]   ;;  %s1457_s3 = inlined_call_operand.vmem [shape: f32[32,256], index: 3, kind: output, shape index: {}]  }
   0x1   :  { %s1102_s14 = smov 0   ;;  %s1104_s15 = smov 0  }
   0x2   :  { %s1106_s16 = smov 0  }
   0x3 LB: > { %s25_s17 = sadd.s32 1, %s1072_s15  ;;  %p48_p1 = scmp.ne.s32.totalorder %s1064_s13, %s1060_s12  ;;  %s1076_s16 = sphi %s1106_s16, %s13_s16   ;;  %s1072_s15 = sphi %s1104_s15, %s1461_s15   ;;  %s1068_s14 = sphi %s1102_s14, %s1460_s14   ;;  %s1064_s13 = sphi %s1100_s13, %s1459_s13   ;;  %s1060_s12 = sphi %s1098_s12, %s1458_s12  }
   0x4   : > { %p26_p0 = scmp.ge.s32.totalorder %s25_s17, 4  ;;  %p49_p2 = scmp.eq.s32.totalorder %s1076_s16, 0 }
   0x5   : > { %s41_s19 = sadd.s32 1, %s1064_s13  ;;  %p845_p5 = scmp.ge.s32.totalorder %s1076_s16, 4 }
   0x6   : > { %s1463_s17 = smov (%p26_p0, %s25_s17), 0  ;;  %p50_p3 = por %p49_p2, %p48_p1 }
   0x7   : > { %s37_s18 = ssub.s32 %s1072_s15, %s1463_s17  ;;  %164 = sbr.rel (%p845_p5) target bundleno = 26 (0x1a), region = 20 }
   0x8   : > { %p39_p4 = scmp.eq.s32.totalorder %s37_s18, 0 }
   0xa   : > { %s1133_s20 = scalar_select %p39_p4, %s1064_s13, %s41_s19  }
   0xe   : > { %167 = sbr.rel (!%p50_p3) target bundleno = 26 (0x1a), region = 24  ;;  %s169_s21 = sand.u32 (%p50_p3), 1, %s1064_s13  }
   0xf   : > { %s860_s22 = sshll.u32 (%p50_p3), %s1072_s15, 5  ;;  %s846_s23 = sshll.u32 (%p50_p3), %s169_s21, 7 }
  0x10   : > { %s1141_s26 = scalar_lea.vmem (%p50_p3), %s1454_s0, %s860_s22  ;;  %s171_s27 = scalar_lea.vmem (%p50_p3), [#allocation2], %s846_s23 }
  0x11   : > { %v190_v0 = vld [vmem:[%s1141_s26] sm:$0xff] (%p50_p3)  ;;  %v192_v1 = vld [vmem:[%s1141_s26 + $0x8] sm:$0xff] (%p50_p3)  ;;  %v194_v2 = vld [vmem:[%s1141_s26 + $0x10] sm:$0xff] (%p50_p3) }
  0x12   : > { %191 = vst [vmem:[%s171_s27] sm:$0xff] (%p50_p3), %v190_v0  ;;  %193 = vst [vmem:[%s171_s27 + $0x8] sm:$0xff] (%p50_p3), %v192_v1  ;;  %v196_v3 = vld [vmem:[%s1141_s26 + $0x18] sm:$0xff] (%p50_p3)  ;;  %v198_v4 = vld [vmem:[%s1141_s26 + $0x80] sm:$0xff] (%p50_p3) }
  0x13   : > { %195 = vst [vmem:[%s171_s27 + $0x10] sm:$0xff] (%p50_p3), %v194_v2  ;;  %v200_v5 = vld [vmem:[%s1141_s26 + $0x88] sm:$0xff] (%p50_p3)  ;;  %197 = vst [vmem:[%s171_s27 + $0x18] sm:$0xff] (%p50_p3), %v196_v3  ;;  %v202_v6 = vld [vmem:[%s1141_s26 + $0x90] sm:$0xff] (%p50_p3) }
  0x14   : > { %199 = vst [vmem:[%s171_s27 + $0x20] sm:$0xff] (%p50_p3), %v198_v4  ;;  %201 = vst [vmem:[%s171_s27 + $0x28] sm:$0xff] (%p50_p3), %v200_v5  ;;  %v204_v7 = vld [vmem:[%s1141_s26 + $0x98] sm:$0xff] (%p50_p3)  ;;  %v206_v8 = vld [vmem:[%s1141_s26 + $0x100] sm:$0xff] (%p50_p3) }
  0x15   : > { %203 = vst [vmem:[%s171_s27 + $0x30] sm:$0xff] %v202_v6  ;;  %205 = vst [vmem:[%s171_s27 + $0x38] sm:$0xff] %v204_v7  ;;  %v208_v9 = vld [vmem:[%s1141_s26 + $0x108] sm:$0xff]  ;;  %v210_v10 = vld [vmem:[%s1141_s26 + $0x110] sm:$0xff] }
  0x16   : > { %207 = vst [vmem:[%s171_s27 + $0x40] sm:$0xff] %v206_v8  ;;  %v212_v11 = vld [vmem:[%s1141_s26 + $0x118] sm:$0xff]  ;;  %209 = vst [vmem:[%s171_s27 + $0x48] sm:$0xff] %v208_v9  ;;  %v214_v12 = vld [vmem:[%s1141_s26 + $0x180] sm:$0xff] }
  0x17   : > { %211 = vst [vmem:[%s171_s27 + $0x50] sm:$0xff] %v210_v10  ;;  %213 = vst [vmem:[%s171_s27 + $0x58] sm:$0xff] %v212_v11  ;;  %v216_v13 = vld [vmem:[%s1141_s26 + $0x188] sm:$0xff]  ;;  %v218_v14 = vld [vmem:[%s1141_s26 + $0x190] sm:$0xff] }
  0x18   : > { %215 = vst [vmem:[%s171_s27 + $0x60] sm:$0xff] %v214_v12  ;;  %217 = vst [vmem:[%s171_s27 + $0x68] sm:$0xff] %v216_v13  ;;  %v220_v15 = vld [vmem:[%s1141_s26 + $0x198] sm:$0xff] }
  0x19   : > { %219 = vst [vmem:[%s171_s27 + $0x70] sm:$0xff] %v218_v14  ;;  %221 = vst [vmem:[%s171_s27 + $0x78] sm:$0xff] %v220_v15 }
  0x1a PF: > { %p849_p6 = scmp.ge.s32.totalorder %s1076_s16, 1  ;;  %p241_p7 = scmp.lt.s32.totalorder %s1076_s16, 5 }
  0x1c   : > { %p242_p8 = pnand %p849_p6, %p241_p7 }
  0x1d   : > { %s248_s28 = sand.u32 (!%p242_p8), 1, %s1060_s12   ;;  %s851_s29 = sshll.u32 (!%p242_p8), %s1068_s14, 6 }
  0x1e   : > { %245 = sbr.rel (%p242_p8) target bundleno = 358 (0x166), region = 51  ;;  %s850_s30 = sshll.u32 (!%p242_p8), %s248_s28, 7 }
  0x1f   : > { %p294_p9 = scmp.lt.s32.totalorder (!%p242_p8), %s851_s29, 255  ;;  %s1168_s8 = scalar_lea.vmem (!%p242_p8), [#allocation2], %s850_s30 }
  0x20   : > { %p854_p10 = scmp.ne.s32.totalorder (!%p242_p8), %s1068_s14, 0 }
  0x25   : > { %s1465_s29 = smov (!%p294_p9, %s851_s29), 255  ;;  %324 = sbr.rel (%p854_p10) target bundleno = 50 (0x32), region = 59 }
  0x26   : > { %s861_s4 = sshll.u32 %s1465_s29, 4  ;;  %v327_v16 = vlaneseq (!%p854_p10)  ;;  %v325_v18 = vld [vmem:[%s1456_s2] sm:$0x3] (!%p854_p10) }
  0x27   : > { %s1166_s7 = scalar_lea.vmem %s1455_s1, %s861_s4 }
  0x28   : > { %v328_v17 = vshrl.u32 (!%p854_p10), %v327_v16, 7 }
  0x2a   : > { %v329_v19 = vsub.s32 (!%p854_p10), 0, %v328_v17  ;;  %v333_v20 = vsub.s32 (!%p854_p10), 1, %v328_v17 }
  0x2c   : > { %v330_v21 = vrot.slane %v325_v18, %v329_v19  ;;  %v334_v22 = vrot.slane %v325_v18, %v333_v20 }
  0x2e   : > { %337 = vst [vmem:[%s1457_s3] sm:$0xff] %v330_v21  ;;  %339 = vst [vmem:[%s1457_s3 + $0x10] sm:$0xff] %v330_v21 }
  0x2f   : > { %341 = vst [vmem:[%s1457_s3 + $0x20] sm:$0xff] %v330_v21  ;;  %343 = vst [vmem:[%s1457_s3 + $0x30] sm:$0xff] %v330_v21 }
  0x30   : > { %338 = vst [vmem:[%s1457_s3 + $0x8] sm:$0xff] %v334_v22  ;;  %340 = vst [vmem:[%s1457_s3 + $0x18] sm:$0xff] %v334_v22 }
  0x31   : > { %342 = vst [vmem:[%s1457_s3 + $0x28] sm:$0xff] %v334_v22  ;;  %344 = vst [vmem:[%s1457_s3 + $0x38] sm:$0xff] %v334_v22 }
  0x32 PF: > { %v370_v23 = vld [vmem:[%s1166_s7 + $0x8] sm:$0xff]  ;;  %v372_v24 = vld [vmem:[%s1166_s7 + $0x18] sm:$0xff]  ;;  %v369_v28 = vld [vmem:[%s1166_s7] sm:$0xff]  ;;  %p855_p11 = scmp.ne.s32.totalorder %s1068_s14, 3 }
  0x33   : > { %v434_v25 = vld [vmem:[%s1166_s7 + $0x208] sm:$0xff]  ;;  %v862_v26 = vpack.c.bf16 %v372_v24, %v370_v23  ;;  %v436_v27 = vld [vmem:[%s1166_s7 + $0x218] sm:$0xff]  ;;  %v371_v29 = vld [vmem:[%s1166_s7 + $0x10] sm:$0xff] }
  0x34   : > { %v926_v30 = vpack.c.bf16 %v436_v27, %v434_v25  ;;  %v864_v31 = vpack.c.bf16 %v371_v29, %v369_v28  ;;  %v433_v32 = vld [vmem:[%s1166_s7 + $0x200] sm:$0xff]  ;;  %v435_v33 = vld [vmem:[%s1166_s7 + $0x210] sm:$0xff]  ;;  %v374_v34 = vld [vmem:[%s1166_s7 + $0x28] sm:$0xff] }
  0x35   : > { %863 = vmatprep.subr.bf16.mxu1 %v862_v26  ;;  %v928_v35 = vpack.c.bf16 %v435_v33, %v433_v32  ;;  %v376_v36 = vld [vmem:[%s1166_s7 + $0x38] sm:$0xff]  ;;  %v438_v37 = vld [vmem:[%s1166_s7 + $0x228] sm:$0xff]  ;;  %v373_v41 = vld [vmem:[%s1166_s7 + $0x20] sm:$0xff] }
  0x36   : > { %v440_v38 = vld [vmem:[%s1166_s7 + $0x238] sm:$0xff]  ;;  %927 = vmatprep.subr.bf16.mxu0 %v926_v30  ;;  %865 = vmatpush1.bf16.msra.mxu1 %v864_v31  ;;  %v866_v39 = vpack.c.bf16 %v376_v36, %v374_v34  ;;  %v375_v42 = vld [vmem:[%s1166_s7 + $0x30] sm:$0xff]  ;;  %v437_v43 = vld [vmem:[%s1166_s7 + $0x220] sm:$0xff] }
  0x37   : > { %v930_v40 = vpack.c.bf16 %v440_v38, %v438_v37  ;;  %929 = vmatpush1.bf16.msra.mxu0 %v928_v35  ;;  %v868_v44 = vpack.c.bf16 %v375_v42, %v373_v41  ;;  %v439_v45 = vld [vmem:[%s1166_s7 + $0x230] sm:$0xff]  ;;  %v378_v46 = vld [vmem:[%s1166_s7 + $0x48] sm:$0xff]  ;;  %v380_v47 = vld [vmem:[%s1166_s7 + $0x58] sm:$0xff] }
  0x38   : > { %867 = vmatprep.subr.bf16.mxu1 %v866_v39  ;;  %v932_v48 = vpack.c.bf16 %v439_v45, %v437_v43  ;;  %v870_v49 = vpack.c.bf16 %v380_v47, %v378_v46  ;;  %v442_v50 = vld [vmem:[%s1166_s7 + $0x248] sm:$0xff]  ;;  %v444_v51 = vld [vmem:[%s1166_s7 + $0x258] sm:$0xff]  ;;  %v377_v52 = vld [vmem:[%s1166_s7 + $0x40] sm:$0xff] }
  0x39   : > { %931 = vmatprep.subr.bf16.mxu0 %v930_v40  ;;  %v934_v53 = vpack.c.bf16 %v444_v51, %v442_v50  ;;  %v379_v54 = vld [vmem:[%s1166_s7 + $0x50] sm:$0xff]  ;;  %v441_v55 = vld [vmem:[%s1166_s7 + $0x240] sm:$0xff]  ;;  %v382_v58 = vld [vmem:[%s1166_s7 + $0x68] sm:$0xff] }
  0x3a   : > { %v443_v56 = vld [vmem:[%s1166_s7 + $0x250] sm:$0xff]  ;;  %869 = vmatpush1.bf16.msra.mxu1 %v868_v44  ;;  %v872_v57 = vpack.c.bf16 %v379_v54, %v377_v52  ;;  %v384_v59 = vld [vmem:[%s1166_s7 + $0x78] sm:$0xff]  ;;  %v446_v60 = vld [vmem:[%s1166_s7 + $0x268] sm:$0xff] }
  0x3b   : > { %933 = vmatpush1.bf16.msra.mxu0 %v932_v48  ;;  %871 = vmatprep.subr.bf16.mxu1 %v870_v49  ;;  %v936_v61 = vpack.c.bf16 %v443_v56, %v441_v55  ;;  %v874_v62 = vpack.c.bf16 %v384_v59, %v382_v58  ;;  %v448_v63 = vld [vmem:[%s1166_s7 + $0x278] sm:$0xff]  ;;  %v381_v0 = vld [vmem:[%s1166_s7 + $0x60] sm:$0xff]  ;;  %v383_v1 = vld [vmem:[%s1166_s7 + $0x70] sm:$0xff] }
  0x3c   : > { %935 = vmatprep.subr.bf16.mxu0 %v934_v53  ;;  %v938_v2 = vpack.c.bf16 %v448_v63, %v446_v60  ;;  %v445_v3 = vld [vmem:[%s1166_s7 + $0x260] sm:$0xff]  ;;  %v447_v4 = vld [vmem:[%s1166_s7 + $0x270] sm:$0xff]  ;;  %v386_v5 = vld [vmem:[%s1166_s7 + $0x88] sm:$0xff]  ;;  %v876_v9 = vpack.c.bf16 %v383_v1, %v381_v0 }
  0x3d   : > { %v388_v6 = vld [vmem:[%s1166_s7 + $0x98] sm:$0xff]  ;;  %v450_v7 = vld [vmem:[%s1166_s7 + $0x288] sm:$0xff]  ;;  %v940_v10 = vpack.c.bf16 %v447_v4, %v445_v3  ;;  %v385_v12 = vld [vmem:[%s1166_s7 + $0x80] sm:$0xff] }
  0x3e   : > { %v452_v8 = vld [vmem:[%s1166_s7 + $0x298] sm:$0xff]  ;;  %873 = vmatpush1.bf16.msra.mxu1 %v872_v57  ;;  %v878_v11 = vpack.c.bf16 %v388_v6, %v386_v5  ;;  %v387_v13 = vld [vmem:[%s1166_s7 + $0x90] sm:$0xff]  ;;  %v449_v14 = vld [vmem:[%s1166_s7 + $0x280] sm:$0xff] }
  0x3f   : > { %937 = vmatpush1.bf16.msra.mxu0 %v936_v61  ;;  %875 = vmatprep.subr.bf16.mxu1 %v874_v62  ;;  %v942_v15 = vpack.c.bf16 %v452_v8, %v450_v7  ;;  %v451_v16 = vld [vmem:[%s1166_s7 + $0x290] sm:$0xff]  ;;  %v390_v17 = vld [vmem:[%s1166_s7 + $0xa8] sm:$0xff]  ;;  %v392_v18 = vld [vmem:[%s1166_s7 + $0xb8] sm:$0xff]  ;;  %v880_v21 = vpack.c.bf16 %v387_v13, %v385_v12 }
  0x40   : > { %939 = vmatprep.subr.bf16.mxu0 %v938_v2  ;;  %v454_v19 = vld [vmem:[%s1166_s7 + $0x2a8] sm:$0xff]  ;;  %v456_v20 = vld [vmem:[%s1166_s7 + $0x2b8] sm:$0xff]  ;;  %v944_v22 = vpack.c.bf16 %v451_v16, %v449_v14  ;;  %v882_v23 = vpack.c.bf16 %v392_v18, %v390_v17  ;;  %v389_v24 = vld [vmem:[%s1166_s7 + $0xa0] sm:$0xff] }
  0x41   : > { %v391_v25 = vld [vmem:[%s1166_s7 + $0xb0] sm:$0xff]  ;;  %v453_v26 = vld [vmem:[%s1166_s7 + $0x2a0] sm:$0xff]  ;;  %v946_v27 = vpack.c.bf16 %v456_v20, %v454_v19  ;;  %v394_v29 = vld [vmem:[%s1166_s7 + $0xc8] sm:$0xff] }
  0x42   : > { %877 = vmatpush1.bf16.msra.mxu1 %v876_v9  ;;  %v455_v28 = vld [vmem:[%s1166_s7 + $0x2b0] sm:$0xff]  ;;  %v396_v30 = vld [vmem:[%s1166_s7 + $0xd8] sm:$0xff]  ;;  %v458_v31 = vld [vmem:[%s1166_s7 + $0x2c8] sm:$0xff]  ;;  %v884_v33 = vpack.c.bf16 %v391_v25, %v389_v24 }
  0x43   : > { %941 = vmatpush1.bf16.msra.mxu0 %v940_v10  ;;  %879 = vmatprep.subr.bf16.mxu1 %v878_v11  ;;  %v460_v32 = vld [vmem:[%s1166_s7 + $0x2d8] sm:$0xff]  ;;  %v948_v34 = vpack.c.bf16 %v455_v28, %v453_v26  ;;  %v886_v35 = vpack.c.bf16 %v396_v30, %v394_v29  ;;  %v393_v36 = vld [vmem:[%s1166_s7 + $0xc0] sm:$0xff]  ;;  %v395_v37 = vld [vmem:[%s1166_s7 + $0xd0] sm:$0xff] }
  0x44   : > { %943 = vmatprep.subr.bf16.mxu0 %v942_v15  ;;  %v457_v38 = vld [vmem:[%s1166_s7 + $0x2c0] sm:$0xff]  ;;  %v950_v39 = vpack.c.bf16 %v460_v32, %v458_v31  ;;  %v459_v40 = vld [vmem:[%s1166_s7 + $0x2d0] sm:$0xff]  ;;  %v398_v41 = vld [vmem:[%s1166_s7 + $0xe8] sm:$0xff]  ;;  %v888_v45 = vpack.c.bf16 %v395_v37, %v393_v36 }
  0x45   : > { %v400_v42 = vld [vmem:[%s1166_s7 + $0xf8] sm:$0xff]  ;;  %v462_v43 = vld [vmem:[%s1166_s7 + $0x2e8] sm:$0xff]  ;;  %v952_v46 = vpack.c.bf16 %v459_v40, %v457_v38  ;;  %v397_v48 = vld [vmem:[%s1166_s7 + $0xe0] sm:$0xff] }
  0x46   : > { %881 = vmatpush1.bf16.msra.mxu1 %v880_v21  ;;  %v464_v44 = vld [vmem:[%s1166_s7 + $0x2f8] sm:$0xff]  ;;  %v890_v47 = vpack.c.bf16 %v400_v42, %v398_v41  ;;  %v399_v49 = vld [vmem:[%s1166_s7 + $0xf0] sm:$0xff]  ;;  %v461_v50 = vld [vmem:[%s1166_s7 + $0x2e0] sm:$0xff] }
  0x47   : > { %945 = vmatpush1.bf16.msra.mxu0 %v944_v22  ;;  %883 = vmatprep.subr.bf16.mxu1 %v882_v23  ;;  %v954_v51 = vpack.c.bf16 %v464_v44, %v462_v43  ;;  %v463_v52 = vld [vmem:[%s1166_s7 + $0x2f0] sm:$0xff]  ;;  %v402_v53 = vld [vmem:[%s1166_s7 + $0x108] sm:$0xff]  ;;  %v404_v54 = vld [vmem:[%s1166_s7 + $0x118] sm:$0xff]  ;;  %v892_v57 = vpack.c.bf16 %v399_v49, %v397_v48 }
  0x48   : > { %947 = vmatprep.subr.bf16.mxu0 %v946_v27  ;;  %v466_v55 = vld [vmem:[%s1166_s7 + $0x308] sm:$0xff]  ;;  %v468_v56 = vld [vmem:[%s1166_s7 + $0x318] sm:$0xff]  ;;  %v956_v58 = vpack.c.bf16 %v463_v52, %v461_v50  ;;  %v894_v59 = vpack.c.bf16 %v404_v54, %v402_v53  ;;  %v401_v60 = vld [vmem:[%s1166_s7 + $0x100] sm:$0xff] }
  0x49   : > { %v403_v61 = vld [vmem:[%s1166_s7 + $0x110] sm:$0xff]  ;;  %v465_v62 = vld [vmem:[%s1166_s7 + $0x300] sm:$0xff]  ;;  %v958_v63 = vpack.c.bf16 %v468_v56, %v466_v55  ;;  %v406_v1 = vld [vmem:[%s1166_s7 + $0x128] sm:$0xff] }
  0x4a   : > { %885 = vmatpush1.bf16.msra.mxu1 %v884_v33  ;;  %v467_v0 = vld [vmem:[%s1166_s7 + $0x310] sm:$0xff]  ;;  %v408_v2 = vld [vmem:[%s1166_s7 + $0x138] sm:$0xff]  ;;  %v470_v3 = vld [vmem:[%s1166_s7 + $0x328] sm:$0xff]  ;;  %v896_v5 = vpack.c.bf16 %v403_v61, %v401_v60 }
  0x4b   : > { %949 = vmatpush1.bf16.msra.mxu0 %v948_v34  ;;  %887 = vmatprep.subr.bf16.mxu1 %v886_v35  ;;  %v472_v4 = vld [vmem:[%s1166_s7 + $0x338] sm:$0xff]  ;;  %v960_v6 = vpack.c.bf16 %v467_v0, %v465_v62  ;;  %v898_v7 = vpack.c.bf16 %v408_v2, %v406_v1  ;;  %v405_v8 = vld [vmem:[%s1166_s7 + $0x120] sm:$0xff]  ;;  %v407_v9 = vld [vmem:[%s1166_s7 + $0x130] sm:$0xff] }
  0x4c   : > { %951 = vmatprep.subr.bf16.mxu0 %v950_v39  ;;  %v469_v10 = vld [vmem:[%s1166_s7 + $0x320] sm:$0xff]  ;;  %v962_v11 = vpack.c.bf16 %v472_v4, %v470_v3  ;;  %v471_v12 = vld [vmem:[%s1166_s7 + $0x330] sm:$0xff]  ;;  %v410_v13 = vld [vmem:[%s1166_s7 + $0x148] sm:$0xff]  ;;  %v900_v17 = vpack.c.bf16 %v407_v9, %v405_v8 }
  0x4d   : > { %v412_v14 = vld [vmem:[%s1166_s7 + $0x158] sm:$0xff]  ;;  %v474_v15 = vld [vmem:[%s1166_s7 + $0x348] sm:$0xff]  ;;  %v964_v18 = vpack.c.bf16 %v471_v12, %v469_v10  ;;  %v409_v20 = vld [vmem:[%s1166_s7 + $0x140] sm:$0xff] }
  0x4e   : > { %889 = vmatpush1.bf16.msra.mxu1 %v888_v45  ;;  %v476_v16 = vld [vmem:[%s1166_s7 + $0x358] sm:$0xff]  ;;  %v902_v19 = vpack.c.bf16 %v412_v14, %v410_v13  ;;  %v411_v21 = vld [vmem:[%s1166_s7 + $0x150] sm:$0xff]  ;;  %v473_v22 = vld [vmem:[%s1166_s7 + $0x340] sm:$0xff] }
  0x4f   : > { %953 = vmatpush1.bf16.msra.mxu0 %v952_v46  ;;  %891 = vmatprep.subr.bf16.mxu1 %v890_v47  ;;  %v966_v23 = vpack.c.bf16 %v476_v16, %v474_v15  ;;  %v475_v24 = vld [vmem:[%s1166_s7 + $0x350] sm:$0xff]  ;;  %v414_v25 = vld [vmem:[%s1166_s7 + $0x168] sm:$0xff]  ;;  %v416_v26 = vld [vmem:[%s1166_s7 + $0x178] sm:$0xff]  ;;  %v904_v29 = vpack.c.bf16 %v411_v21, %v409_v20 }
  0x50   : > { %955 = vmatprep.subr.bf16.mxu0 %v954_v51  ;;  %v478_v27 = vld [vmem:[%s1166_s7 + $0x368] sm:$0xff]  ;;  %v480_v28 = vld [vmem:[%s1166_s7 + $0x378] sm:$0xff]  ;;  %v413_v30 = vld [vmem:[%s1166_s7 + $0x160] sm:$0xff]  ;;  %v968_v31 = vpack.c.bf16 %v475_v24, %v473_v22  ;;  %v906_v32 = vpack.c.bf16 %v416_v26, %v414_v25 }
  0x51   : > { %v415_v33 = vld [vmem:[%s1166_s7 + $0x170] sm:$0xff]  ;;  %v477_v34 = vld [vmem:[%s1166_s7 + $0x360] sm:$0xff]  ;;  %v970_v36 = vpack.c.bf16 %v480_v28, %v478_v27  ;;  %v418_v37 = vld [vmem:[%s1166_s7 + $0x188] sm:$0xff] }
  0x52   : > { %893 = vmatpush1.bf16.msra.mxu1 %v892_v57  ;;  %v479_v35 = vld [vmem:[%s1166_s7 + $0x370] sm:$0xff]  ;;  %v420_v38 = vld [vmem:[%s1166_s7 + $0x198] sm:$0xff]  ;;  %v354_v39 = vld [vmem:[%s1168_s8 + $0x8] sm:$0xff]  ;;  %v908_v43 = vpack.c.bf16 %v415_v33, %v413_v30 }
  0x53   : > { %957 = vmatpush1.bf16.msra.mxu0 %v956_v58  ;;  %895 = vmatprep.subr.bf16.mxu1 %v894_v59  ;;  %v482_v40 = vld [vmem:[%s1166_s7 + $0x388] sm:$0xff]  ;;  %v484_v41 = vld [vmem:[%s1166_s7 + $0x398] sm:$0xff]  ;;  %v972_v44 = vpack.c.bf16 %v479_v35, %v477_v34  ;;  %v910_v45 = vpack.c.bf16 %v420_v38, %v418_v37  ;;  %v417_v46 = vld [vmem:[%s1166_s7 + $0x180] sm:$0xff] }
  0x54   : > { %959 = vmatprep.subr.bf16.mxu0 %v958_v63  ;;  %561 = vmatprep.mubr.f32.mxu1 %v354_v39  ;;  %v356_v42 = vld [vmem:[%s1168_s8 + $0x18] sm:$0xff]  ;;  %v419_v47 = vld [vmem:[%s1166_s7 + $0x190] sm:$0xff]  ;;  %v481_v48 = vld [vmem:[%s1166_s7 + $0x380] sm:$0xff]  ;;  %v974_v49 = vpack.c.bf16 %v484_v41, %v482_v40 }
  0x55   : > { %650 = vmatprep.mubr.f32.mxu0 %v356_v42  ;;  %v483_v50 = vld [vmem:[%s1166_s7 + $0x390] sm:$0xff]  ;;  %v422_v51 = vld [vmem:[%s1166_s7 + $0x1a8] sm:$0xff]  ;;  %v424_v52 = vld [vmem:[%s1166_s7 + $0x1b8] sm:$0xff]  ;;  %v912_v55 = vpack.c.bf16 %v419_v47, %v417_v46 }
  0x56   : > { %897 = vmatpush1.bf16.msra.mxu1 %v896_v5  ;;  %v486_v53 = vld [vmem:[%s1166_s7 + $0x3a8] sm:$0xff]  ;;  %v488_v54 = vld [vmem:[%s1166_s7 + $0x3b8] sm:$0xff]  ;;  %v976_v56 = vpack.c.bf16 %v483_v50, %v481_v48  ;;  %v914_v57 = vpack.c.bf16 %v424_v52, %v422_v51  ;;  %v421_v58 = vld [vmem:[%s1166_s7 + $0x1a0] sm:$0xff] }
  0x57   : > { %961 = vmatpush1.bf16.msra.mxu0 %v960_v6  ;;  %899 = vmatprep.subr.bf16.mxu1 %v898_v7  ;;  %v423_v59 = vld [vmem:[%s1166_s7 + $0x1b0] sm:$0xff]  ;;  %v485_v60 = vld [vmem:[%s1166_s7 + $0x3a0] sm:$0xff]  ;;  %v978_v61 = vpack.c.bf16 %v488_v54, %v486_v53  ;;  %v426_v63 = vld [vmem:[%s1166_s7 + $0x1c8] sm:$0xff] }
  0x58   : > { %963 = vmatprep.subr.bf16.mxu0 %v962_v11  ;;  %v487_v62 = vld [vmem:[%s1166_s7 + $0x3b0] sm:$0xff]  ;;  %v428_v0 = vld [vmem:[%s1166_s7 + $0x1d8] sm:$0xff]  ;;  %v490_v1 = vld [vmem:[%s1166_s7 + $0x3c8] sm:$0xff]  ;;  %v916_v3 = vpack.c.bf16 %v423_v59, %v421_v58 }
  0x59   : > { %v492_v2 = vld [vmem:[%s1166_s7 + $0x3d8] sm:$0xff]  ;;  %v980_v4 = vpack.c.bf16 %v487_v62, %v485_v60  ;;  %v918_v5 = vpack.c.bf16 %v428_v0, %v426_v63  ;;  %v425_v6 = vld [vmem:[%s1166_s7 + $0x1c0] sm:$0xff]  ;;  %v427_v7 = vld [vmem:[%s1166_s7 + $0x1d0] sm:$0xff] }
  0x5a   : > { %901 = vmatpush1.bf16.msra.mxu1 %v900_v17  ;;  %v489_v8 = vld [vmem:[%s1166_s7 + $0x3c0] sm:$0xff]  ;;  %v982_v9 = vpack.c.bf16 %v492_v2, %v490_v1  ;;  %v491_v10 = vld [vmem:[%s1166_s7 + $0x3d0] sm:$0xff]  ;;  %v430_v11 = vld [vmem:[%s1166_s7 + $0x1e8] sm:$0xff]  ;;  %v920_v15 = vpack.c.bf16 %v427_v7, %v425_v6 }
  0x5b   : > { %965 = vmatpush1.bf16.msra.mxu0 %v964_v18  ;;  %903 = vmatprep.subr.bf16.mxu1 %v902_v19  ;;  %v432_v12 = vld [vmem:[%s1166_s7 + $0x1f8] sm:$0xff]  ;;  %v494_v13 = vld [vmem:[%s1166_s7 + $0x3e8] sm:$0xff]  ;;  %v984_v16 = vpack.c.bf16 %v491_v10, %v489_v8  ;;  %v429_v18 = vld [vmem:[%s1166_s7 + $0x1e0] sm:$0xff] }
  0x5c   : > { %967 = vmatprep.subr.bf16.mxu0 %v966_v23  ;;  %v496_v14 = vld [vmem:[%s1166_s7 + $0x3f8] sm:$0xff]  ;;  %v922_v17 = vpack.c.bf16 %v432_v12, %v430_v11  ;;  %v431_v19 = vld [vmem:[%s1166_s7 + $0x1f0] sm:$0xff]  ;;  %v493_v21 = vld [vmem:[%s1166_s7 + $0x3e0] sm:$0xff] }
  0x5d   : > { %v986_v20 = vpack.c.bf16 %v496_v14, %v494_v13  ;;  %v495_v22 = vld [vmem:[%s1166_s7 + $0x3f0] sm:$0xff]  ;;  %v924_v23 = vpack.c.bf16 %v431_v19, %v429_v18  ;;  %v353_v25 = vld [vmem:[%s1168_s8] sm:$0xff]  ;;  %v358_v27 = vld [vmem:[%s1168_s8 + $0x28] sm:$0xff] }
  0x5e   : > { %905 = vmatpush1.bf16.msra.mxu1 %v904_v29  ;;  %v988_v24 = vpack.c.bf16 %v495_v22, %v493_v21  ;;  %v355_v26 = vld [vmem:[%s1168_s8 + $0x10] sm:$0xff]  ;;  %v360_v28 = vld [vmem:[%s1168_s8 + $0x38] sm:$0xff]  ;;  %v357_v29 = vld [vmem:[%s1168_s8 + $0x20] sm:$0xff] }
  0x5f   : > { %969 = vmatpush1.bf16.msra.mxu0 %v968_v31  ;;  %907 = vmatprep.subr.bf16.mxu1 %v906_v32  ;;  %v359_v30 = vld [vmem:[%s1168_s8 + $0x30] sm:$0xff]  ;;  %v362_v31 = vld [vmem:[%s1168_s8 + $0x48] sm:$0xff]  ;;  %v364_v32 = vld [vmem:[%s1168_s8 + $0x58] sm:$0xff] }
  0x60   : > { %971 = vmatprep.subr.bf16.mxu0 %v970_v36  ;;  %v361_v33 = vld [vmem:[%s1168_s8 + $0x40] sm:$0xff]  ;;  %v363_v34 = vld [vmem:[%s1168_s8 + $0x50] sm:$0xff]  ;;  %v366_v35 = vld [vmem:[%s1168_s8 + $0x68] sm:$0xff] }
  0x61   : > { %v368_v36 = vld [vmem:[%s1168_s8 + $0x78] sm:$0xff]  ;;  %v365_v37 = vld [vmem:[%s1168_s8 + $0x60] sm:$0xff]  ;;  %v367_v38 = vld [vmem:[%s1168_s8 + $0x70] sm:$0xff] }
  0x62   : > { %909 = vmatpush1.bf16.msra.mxu1 %v908_v43  ;;  %v345_v40 = vld [vmem:[%s1457_s3] sm:$0xff]  ;;  %v347_v50 = vld [vmem:[%s1457_s3 + $0x10] sm:$0xff]  ;;  %v348_v54 = vld [vmem:[%s1457_s3 + $0x18] sm:$0xff] }
  0x63   : > { %973 = vmatpush1.bf16.msra.mxu0 %v972_v44  ;;  %911 = vmatprep.subr.bf16.mxu1 %v910_v45  ;;  %v346_v44 = vld [vmem:[%s1457_s3 + $0x8] sm:$0xff]  ;;  %v349_v60 = vld [vmem:[%s1457_s3 + $0x20] sm:$0xff]  ;;  %v351_v6 = vld [vmem:[%s1457_s3 + $0x30] sm:$0xff] }
  0x64   : > { %975 = vmatprep.subr.bf16.mxu0 %v974_v49  ;;  %v350_v0 = vld [vmem:[%s1457_s3 + $0x28] sm:$0xff]  ;;  %v352_v10 = vld [vmem:[%s1457_s3 + $0x38] sm:$0xff] }
  0x66   : > { %913 = vmatpush1.bf16.msra.mxu1 %v912_v55 }
  0x67   : > { %977 = vmatpush1.bf16.msra.mxu0 %v976_v56  ;;  %915 = vmatprep.subr.bf16.mxu1 %v914_v57 }
  0x68   : > { %979 = vmatprep.subr.bf16.mxu0 %v978_v61 }
  0x6a   : > { %917 = vmatpush1.bf16.msra.mxu1 %v916_v3 }
  0x6b   : > { %981 = vmatpush1.bf16.msra.mxu0 %v980_v4  ;;  %919 = vmatprep.subr.bf16.mxu1 %v918_v5 }
  0x6c   : > { %983 = vmatprep.subr.bf16.mxu0 %v982_v9 }
  0x6e   : > { %921 = vmatpush1.bf16.msra.mxu1 %v920_v15 }
  0x6f   : > { %985 = vmatpush1.bf16.msra.mxu0 %v984_v16  ;;  %923 = vmatprep.subr.bf16.mxu1 %v922_v17 }
  0x70   : > { %987 = vmatprep.subr.bf16.mxu0 %v986_v20 }
  0x72   : > { %925 = vmatpush1.bf16.msra.mxu1 %v924_v23 }
  0x73   : > { %989 = vmatpush1.bf16.msra.mxu0 %v988_v24 }
  0x75   : > { %562 = vmatmul.mubr.f32.vlgmr.msra.gmra.mrb[0].mxu1 %v353_v25 }
  0x76   : > { %651 = vmatmul.mubr.f32.vlgmr.msra.gmra.mrb[0].mxu0 %v355_v26  ;;  %567 = vmatprep.mubr.f32.mxu1 %v358_v27 }
  0x77   : > { %656 = vmatprep.mubr.f32.mxu0 %v360_v28 }
  0x79   : > { %568 = vmatmul.mubr.f32.gmra.mrb[2].mxu1 %v357_v29 }
  0x7a   : > { %657 = vmatmul.mubr.f32.gmra.mrb[2].mxu0 %v359_v30  ;;  %573 = vmatprep.mubr.f32.mxu1 %v362_v31 }
  0x7b   : > { %662 = vmatprep.mubr.f32.mxu0 %v364_v32 }
  0x7d   : > { %574 = vmatmul.mubr.f32.gmra.mrb[4].mxu1 %v361_v33 }
  0x7e   : > { %663 = vmatmul.mubr.f32.gmra.mrb[4].mxu0 %v363_v34  ;;  %579 = vmatprep.mubr.f32.mxu1 %v366_v35 }
  0x7f   : > { %668 = vmatprep.mubr.f32.mxu0 %v368_v36 }
  0x81   : > { %580 = vmatmul.mubr.f32.gmra.mrb[6].mxu1 %v365_v37 }
  0x82   : > { %669 = vmatmul.mubr.f32.gmra.mrb[6].mxu0 %v367_v38 }
 0x148   : > { %v563_v39 = vpop.f32.mrb[0].mxu1 }
 0x149   : > { %v652_v41 = vpop.f32.mrb[0].mxu0  ;;  %v565_v42 = vpop.f32.mrb[1].mxu1 }
 0x14a   : > { %v653_v43 = vadd.f32 %v652_v41, %v563_v39  ;;  %v654_v45 = vpop.f32.mrb[1].mxu0 }
 0x14b   : > { %v655_v46 = vadd.f32 %v654_v45, %v565_v42 }
 0x14c   : > { %v675_v47 = vadd.f32 %v653_v43, %v345_v40  ;;  %v569_v48 = vpop.f32.mrb[2].mxu1 }
 0x14d   : > { %v676_v49 = vadd.f32 %v655_v46, %v346_v44  ;;  %v658_v51 = vpop.f32.mrb[2].mxu0  ;;  %v571_v52 = vpop.f32.mrb[3].mxu1 }
 0x14e   : > { %683 = vst [vmem:[%s1457_s3] sm:$0xff] %v675_v47  ;;  %v659_v53 = vadd.f32 %v658_v51, %v569_v48  ;;  %v660_v55 = vpop.f32.mrb[3].mxu0 }
 0x14f   : > { %684 = vst [vmem:[%s1457_s3 + $0x8] sm:$0xff] %v676_v49  ;;  %v661_v56 = vadd.f32 %v660_v55, %v571_v52 }
 0x150   : > { %v677_v57 = vadd.f32 %v659_v53, %v347_v50  ;;  %v575_v58 = vpop.f32.mrb[4].mxu1 }
 0x151   : > { %v678_v59 = vadd.f32 %v661_v56, %v348_v54  ;;  %v664_v61 = vpop.f32.mrb[4].mxu0  ;;  %v577_v62 = vpop.f32.mrb[5].mxu1 }
 0x152   : > { %685 = vst [vmem:[%s1457_s3 + $0x10] sm:$0xff] %v677_v57  ;;  %v665_v63 = vadd.f32 %v664_v61, %v575_v58  ;;  %v666_v1 = vpop.f32.mrb[5].mxu0 }
 0x153   : > { %686 = vst [vmem:[%s1457_s3 + $0x18] sm:$0xff] %v678_v59  ;;  %v667_v2 = vadd.f32 %v666_v1, %v577_v62 }
 0x154   : > { %v679_v3 = vadd.f32 %v665_v63, %v349_v60  ;;  %v581_v4 = vpop.f32.mrb[6].mxu1 }
 0x155   : > { %v680_v5 = vadd.f32 %v667_v2, %v350_v0  ;;  %v670_v7 = vpop.f32.mrb[6].mxu0  ;;  %v583_v8 = vpop.f32.mrb[7].mxu1  ;;  %694 = sbr.rel (%p855_p11) target bundleno = 358 (0x166), region = 63  ;;  %v695_v15 = vld [vmem:[%s1457_s3] sm:$0xff] (!%p855_p11) }
 0x156   : > { %687 = vst [vmem:[%s1457_s3 + $0x20] sm:$0xff] %v679_v3  ;;  %v671_v9 = vadd.f32 %v670_v7, %v581_v4  ;;  %v672_v11 = vpop.f32.mrb[7].mxu0  ;;  %v696_v16 = vld [vmem:[%s1457_s3 + $0x8] sm:$0xff] (!%p855_p11)  ;;  %v703_v18 = vmax.f32 (!%p855_p11), %v695_v15, 0.0 }
 0x157   : > { %688 = vst [vmem:[%s1457_s3 + $0x28] sm:$0xff] %v680_v5  ;;  %v673_v12 = vadd.f32 %v672_v11, %v583_v8  ;;  %v704_v19 = vmax.f32 (!%p855_p11), %v696_v16, 0.0 }
 0x158   : > { %v681_v13 = vadd.f32 %v671_v9, %v351_v6  ;;  %711 = vst [vmem:[%s1457_s3] sm:$0xff] (!%p855_p11), %v703_v18 }
 0x159   : > { %v682_v14 = vadd.f32 %v673_v12, %v352_v10  ;;  %v697_v17 = vld [vmem:[%s1457_s3 + $0x10] sm:$0xff] (!%p855_p11)  ;;  %712 = vst [vmem:[%s1457_s3 + $0x8] sm:$0xff] (!%p855_p11), %v704_v19 }
 0x15a   : > { %689 = vst [vmem:[%s1457_s3 + $0x30] sm:$0xff] %v681_v13  ;;  %v705_v20 = vmax.f32 (!%p855_p11), %v697_v17, 0.0  ;;  %v698_v21 = vld [vmem:[%s1457_s3 + $0x18] sm:$0xff] (!%p855_p11) }
 0x15b   : > { %690 = vst [vmem:[%s1457_s3 + $0x38] sm:$0xff] %v682_v14  ;;  %v706_v24 = vmax.f32 (!%p855_p11), %v698_v21, 0.0 }
 0x15c   : > { %713 = vst [vmem:[%s1457_s3 + $0x10] sm:$0xff] %v705_v20 }
 0x15d   : > { %v699_v22 = vld [vmem:[%s1457_s3 + $0x20] sm:$0xff]  ;;  %714 = vst [vmem:[%s1457_s3 + $0x18] sm:$0xff] %v706_v24 }
 0x15e   : > { %v700_v23 = vld [vmem:[%s1457_s3 + $0x28] sm:$0xff]  ;;  %v707_v25 = vmax.f32 %v699_v22, 0.0 }
 0x15f   : > { %v708_v26 = vmax.f32 %v700_v23, 0.0 }
 0x160   : > { %715 = vst [vmem:[%s1457_s3 + $0x20] sm:$0xff] %v707_v25 }
 0x161   : > { %v701_v27 = vld [vmem:[%s1457_s3 + $0x30] sm:$0xff]  ;;  %716 = vst [vmem:[%s1457_s3 + $0x28] sm:$0xff] %v708_v26 }
 0x162   : > { %v702_v28 = vld [vmem:[%s1457_s3 + $0x38] sm:$0xff]  ;;  %v709_v29 = vmax.f32 %v701_v27, 0.0 }
 0x163   : > { %v710_v30 = vmax.f32 %v702_v28, 0.0 }
 0x164   : > { %717 = vst [vmem:[%s1457_s3 + $0x30] sm:$0xff] %v709_v29 }
 0x165   : > { %718 = vst [vmem:[%s1457_s3 + $0x38] sm:$0xff] %v710_v30 }
 0x166 PF: > { %s13_s16 = sadd.s32 1, %s1076_s16   ;;  %s1458_s12 = smov %s1064_s13 }
 0x167   : > { %p10_p12 = scmp.ge.s32.totalorder %s13_s16, 6   ;;  %s1459_s13 = smov %s1133_s20 }
 0x168   : > { %s1460_s14 = smov %s1072_s15  ;;  %s1461_s15 = smov %s1463_s17 }
 0x169   :  { %12 = sbr.rel (!%p10_p12) target bundleno = 3 (0x3), region = 104 }

// kernel: head_forward.14
= control target key start
LH: loop header
LB: loop body
LE: loop exit
PB: predicated region body
PF: predicated region fallthrough
CT: control target
= control target key end

     0   :  { %s917_s12 = smov 0   ;;  %s919_s13 = smov 0   ;;  %s1125_s0 = inlined_call_operand.vmem [shape: f32[8,2048], index: 0, kind: input, shape index: {}]   ;;  %s1126_s1 = inlined_call_operand.vmem [shape: f32[2048,256], index: 1, kind: input, shape index: {}]   ;;  %s1127_s2 = inlined_call_operand.vmem [shape: f32[1,256], index: 2, kind: input, shape index: {}]   ;;  %s1128_s3 = inlined_call_operand.vmem [shape: f32[8,256], index: 3, kind: output, shape index: {}]  }
   0x1   :  { %s921_s14 = smov 0  }
   0x2 LB: > { %s25_s15 = sadd.s32 1, %s891_s13  ;;  %p706_p0 = scmp.ge.s32.totalorder %s895_s14, 1  ;;  %s895_s14 = sphi %s921_s14, %s13_s14   ;;  %s891_s13 = sphi %s919_s13, %s1130_s13   ;;  %s887_s12 = sphi %s917_s12, %s1129_s12  }
   0x3   : > { %p26_p1 = scmp.ge.s32.totalorder %s25_s15, 4  ;;  %p194_p2 = scmp.lt.s32.totalorder %s895_s14, 5 }
   0x5   : > { %s1132_s15 = smov (%p26_p1, %s25_s15), 0  ;;  %p195_p3 = pnand %p706_p0, %p194_p2 }
   0x6   : > { %s707_s16 = sshll.u32 (!%p195_p3), %s887_s12, 2  ;;  %s709_s17 = sshll.u32 (!%p195_p3), %s887_s12, 6 }
   0x7   : > { %198 = sbr.rel (%p195_p3) target bundleno = 320 (0x140), region = 32  ;;  %p243_p4 = scmp.lt.s32.totalorder (!%p195_p3), %s707_s16, 15 }
   0x8   : > { %p252_p5 = scmp.lt.s32.totalorder (!%p195_p3), %s709_s17, 255  ;;  %p712_p6 = scmp.ne.s32.totalorder (!%p195_p3), %s887_s12, 0 }
   0xe   : > { %s1134_s16 = smov (!%p243_p4, %s707_s16), 15  ;;  %s1136_s17 = smov (!%p252_p5, %s709_s17), 255 }
   0xf   : > { %s708_s18 = sshll.u32 %s1134_s16, 3  ;;  %s718_s22 = sshll.u32 %s1136_s17, 4  ;;  %v283_v0 = vlaneseq (!%p712_p6)  ;;  %v281_v2 = vld [vmem:[%s1127_s2] sm:$0x3] (!%p712_p6) }
  0x10   : > { %s942_s21 = scalar_lea.vmem %s1125_s0, %s708_s18  ;;  %s947_s25 = scalar_lea.vmem %s1126_s1, %s718_s22 }
  0x11   : > { %280 = sbr.rel (%p712_p6) target bundleno = 24 (0x18), region = 36  ;;  %v284_v1 = vshrl.u32 (!%p712_p6), %v283_v0, 7 }
  0x13   : > { %v285_v3 = vsub.s32 (!%p712_p6), 0, %v284_v1  ;;  %v289_v4 = vsub.s32 (!%p712_p6), 1, %v284_v1 }
  0x15   : > { %v286_v5 = vrot.slane (!%p712_p6), %v281_v2, %v285_v3  ;;  %v290_v6 = vrot.slane (!%p712_p6), %v281_v2, %v289_v4 }
  0x17   : > { %293 = vst [vmem:[%s1128_s3] sm:$0xff] (!%p712_p6), %v286_v5  ;;  %294 = vst [vmem:[%s1128_s3 + $0x8] sm:$0xff] (!%p712_p6), %v290_v6 }
  0x18 PF: > { %v302_v7 = vld [vmem:[%s947_s25 + $0x8] sm:$0xff]  ;;  %v304_v8 = vld [vmem:[%s947_s25 + $0x18] sm:$0xff]  ;;  %v301_v12 = vld [vmem:[%s947_s25] sm:$0xff]  ;;  %p713_p7 = scmp.ne.s32.totalorder %s887_s12, 3 }
  0x19   : > { %v366_v9 = vld [vmem:[%s947_s25 + $0x208] sm:$0xff]  ;;  %v719_v10 = vpack.c.bf16 %v304_v8, %v302_v7  ;;  %v368_v11 = vld [vmem:[%s947_s25 + $0x218] sm:$0xff]  ;;  %v303_v13 = vld [vmem:[%s947_s25 + $0x10] sm:$0xff] }
  0x1a   : > { %v783_v14 = vpack.c.bf16 %v368_v11, %v366_v9  ;;  %v721_v15 = vpack.c.bf16 %v303_v13, %v301_v12  ;;  %v365_v16 = vld [vmem:[%s947_s25 + $0x200] sm:$0xff]  ;;  %v367_v17 = vld [vmem:[%s947_s25 + $0x210] sm:$0xff]  ;;  %v306_v18 = vld [vmem:[%s947_s25 + $0x28] sm:$0xff] }
  0x1b   : > { %720 = vmatprep.subr.bf16.mxu1 %v719_v10  ;;  %v785_v19 = vpack.c.bf16 %v367_v17, %v365_v16  ;;  %v308_v20 = vld [vmem:[%s947_s25 + $0x38] sm:$0xff]  ;;  %v370_v21 = vld [vmem:[%s947_s25 + $0x228] sm:$0xff]  ;;  %v305_v25 = vld [vmem:[%s947_s25 + $0x20] sm:$0xff] }
  0x1c   : > { %v372_v22 = vld [vmem:[%s947_s25 + $0x238] sm:$0xff]  ;;  %784 = vmatprep.subr.bf16.mxu0 %v783_v14  ;;  %722 = vmatpush1.bf16.msra.mxu1 %v721_v15  ;;  %v723_v23 = vpack.c.bf16 %v308_v20, %v306_v18  ;;  %v307_v26 = vld [vmem:[%s947_s25 + $0x30] sm:$0xff]  ;;  %v369_v27 = vld [vmem:[%s947_s25 + $0x220] sm:$0xff] }
  0x1d   : > { %v787_v24 = vpack.c.bf16 %v372_v22, %v370_v21  ;;  %786 = vmatpush1.bf16.msra.mxu0 %v785_v19  ;;  %v725_v28 = vpack.c.bf16 %v307_v26, %v305_v25  ;;  %v371_v29 = vld [vmem:[%s947_s25 + $0x230] sm:$0xff]  ;;  %v310_v30 = vld [vmem:[%s947_s25 + $0x48] sm:$0xff]  ;;  %v312_v31 = vld [vmem:[%s947_s25 + $0x58] sm:$0xff] }
  0x1e   : > { %724 = vmatprep.subr.bf16.mxu1 %v723_v23  ;;  %v789_v32 = vpack.c.bf16 %v371_v29, %v369_v27  ;;  %v727_v33 = vpack.c.bf16 %v312_v31, %v310_v30  ;;  %v374_v34 = vld [vmem:[%s947_s25 + $0x248] sm:$0xff]  ;;  %v376_v35 = vld [vmem:[%s947_s25 + $0x258] sm:$0xff]  ;;  %v309_v36 = vld [vmem:[%s947_s25 + $0x40] sm:$0xff] }
  0x1f   : > { %788 = vmatprep.subr.bf16.mxu0 %v787_v24  ;;  %v791_v37 = vpack.c.bf16 %v376_v35, %v374_v34  ;;  %v311_v38 = vld [vmem:[%s947_s25 + $0x50] sm:$0xff]  ;;  %v373_v39 = vld [vmem:[%s947_s25 + $0x240] sm:$0xff]  ;;  %v314_v42 = vld [vmem:[%s947_s25 + $0x68] sm:$0xff] }
  0x20   : > { %v375_v40 = vld [vmem:[%s947_s25 + $0x250] sm:$0xff]  ;;  %726 = vmatpush1.bf16.msra.mxu1 %v725_v28  ;;  %v729_v41 = vpack.c.bf16 %v311_v38, %v309_v36  ;;  %v316_v43 = vld [vmem:[%s947_s25 + $0x78] sm:$0xff]  ;;  %v378_v44 = vld [vmem:[%s947_s25 + $0x268] sm:$0xff] }
  0x21   : > { %790 = vmatpush1.bf16.msra.mxu0 %v789_v32  ;;  %728 = vmatprep.subr.bf16.mxu1 %v727_v33  ;;  %v793_v45 = vpack.c.bf16 %v375_v40, %v373_v39  ;;  %v731_v46 = vpack.c.bf16 %v316_v43, %v314_v42  ;;  %v380_v47 = vld [vmem:[%s947_s25 + $0x278] sm:$0xff]  ;;  %v313_v48 = vld [vmem:[%s947_s25 + $0x60] sm:$0xff]  ;;  %v315_v49 = vld [vmem:[%s947_s25 + $0x70] sm:$0xff] }
  0x22   : > { %792 = vmatprep.subr.bf16.mxu0 %v791_v37  ;;  %v795_v50 = vpack.c.bf16 %v380_v47, %v378_v44  ;;  %v377_v51 = vld [vmem:[%s947_s25 + $0x260] sm:$0xff]  ;;  %v379_v52 = vld [vmem:[%s947_s25 + $0x270] sm:$0xff]  ;;  %v318_v53 = vld [vmem:[%s947_s25 + $0x88] sm:$0xff]  ;;  %v733_v57 = vpack.c.bf16 %v315_v49, %v313_v48 }
  0x23   : > { %v320_v54 = vld [vmem:[%s947_s25 + $0x98] sm:$0xff]  ;;  %v382_v55 = vld [vmem:[%s947_s25 + $0x288] sm:$0xff]  ;;  %v797_v58 = vpack.c.bf16 %v379_v52, %v377_v51  ;;  %v317_v60 = vld [vmem:[%s947_s25 + $0x80] sm:$0xff] }
  0x24   : > { %v384_v56 = vld [vmem:[%s947_s25 + $0x298] sm:$0xff]  ;;  %730 = vmatpush1.bf16.msra.mxu1 %v729_v41  ;;  %v735_v59 = vpack.c.bf16 %v320_v54, %v318_v53  ;;  %v319_v61 = vld [vmem:[%s947_s25 + $0x90] sm:$0xff]  ;;  %v381_v62 = vld [vmem:[%s947_s25 + $0x280] sm:$0xff] }
  0x25   : > { %794 = vmatpush1.bf16.msra.mxu0 %v793_v45  ;;  %732 = vmatprep.subr.bf16.mxu1 %v731_v46  ;;  %v799_v63 = vpack.c.bf16 %v384_v56, %v382_v55  ;;  %v383_v0 = vld [vmem:[%s947_s25 + $0x290] sm:$0xff]  ;;  %v322_v1 = vld [vmem:[%s947_s25 + $0xa8] sm:$0xff]  ;;  %v324_v2 = vld [vmem:[%s947_s25 + $0xb8] sm:$0xff]  ;;  %v737_v5 = vpack.c.bf16 %v319_v61, %v317_v60 }
  0x26   : > { %796 = vmatprep.subr.bf16.mxu0 %v795_v50  ;;  %v386_v3 = vld [vmem:[%s947_s25 + $0x2a8] sm:$0xff]  ;;  %v388_v4 = vld [vmem:[%s947_s25 + $0x2b8] sm:$0xff]  ;;  %v801_v6 = vpack.c.bf16 %v383_v0, %v381_v62  ;;  %v739_v7 = vpack.c.bf16 %v324_v2, %v322_v1  ;;  %v321_v8 = vld [vmem:[%s947_s25 + $0xa0] sm:$0xff] }
  0x27   : > { %v323_v9 = vld [vmem:[%s947_s25 + $0xb0] sm:$0xff]  ;;  %v385_v10 = vld [vmem:[%s947_s25 + $0x2a0] sm:$0xff]  ;;  %v803_v11 = vpack.c.bf16 %v388_v4, %v386_v3  ;;  %v326_v13 = vld [vmem:[%s947_s25 + $0xc8] sm:$0xff] }
  0x28   : > { %734 = vmatpush1.bf16.msra.mxu1 %v733_v57  ;;  %v387_v12 = vld [vmem:[%s947_s25 + $0x2b0] sm:$0xff]  ;;  %v328_v14 = vld [vmem:[%s947_s25 + $0xd8] sm:$0xff]  ;;  %v390_v15 = vld [vmem:[%s947_s25 + $0x2c8] sm:$0xff]  ;;  %v741_v17 = vpack.c.bf16 %v323_v9, %v321_v8 }
  0x29   : > { %798 = vmatpush1.bf16.msra.mxu0 %v797_v58  ;;  %736 = vmatprep.subr.bf16.mxu1 %v735_v59  ;;  %v392_v16 = vld [vmem:[%s947_s25 + $0x2d8] sm:$0xff]  ;;  %v805_v18 = vpack.c.bf16 %v387_v12, %v385_v10  ;;  %v743_v19 = vpack.c.bf16 %v328_v14, %v326_v13  ;;  %v325_v20 = vld [vmem:[%s947_s25 + $0xc0] sm:$0xff]  ;;  %v327_v21 = vld [vmem:[%s947_s25 + $0xd0] sm:$0xff] }
  0x2a   : > { %800 = vmatprep.subr.bf16.mxu0 %v799_v63  ;;  %v389_v22 = vld [vmem:[%s947_s25 + $0x2c0] sm:$0xff]  ;;  %v807_v23 = vpack.c.bf16 %v392_v16, %v390_v15  ;;  %v391_v24 = vld [vmem:[%s947_s25 + $0x2d0] sm:$0xff]  ;;  %v330_v25 = vld [vmem:[%s947_s25 + $0xe8] sm:$0xff]  ;;  %v745_v29 = vpack.c.bf16 %v327_v21, %v325_v20 }
  0x2b   : > { %v332_v26 = vld [vmem:[%s947_s25 + $0xf8] sm:$0xff]  ;;  %v394_v27 = vld [vmem:[%s947_s25 + $0x2e8] sm:$0xff]  ;;  %v809_v30 = vpack.c.bf16 %v391_v24, %v389_v22  ;;  %v329_v32 = vld [vmem:[%s947_s25 + $0xe0] sm:$0xff] }
  0x2c   : > { %738 = vmatpush1.bf16.msra.mxu1 %v737_v5  ;;  %v396_v28 = vld [vmem:[%s947_s25 + $0x2f8] sm:$0xff]  ;;  %v747_v31 = vpack.c.bf16 %v332_v26, %v330_v25  ;;  %v331_v33 = vld [vmem:[%s947_s25 + $0xf0] sm:$0xff]  ;;  %v393_v34 = vld [vmem:[%s947_s25 + $0x2e0] sm:$0xff] }
  0x2d   : > { %802 = vmatpush1.bf16.msra.mxu0 %v801_v6  ;;  %740 = vmatprep.subr.bf16.mxu1 %v739_v7  ;;  %v811_v35 = vpack.c.bf16 %v396_v28, %v394_v27  ;;  %v395_v36 = vld [vmem:[%s947_s25 + $0x2f0] sm:$0xff]  ;;  %v334_v37 = vld [vmem:[%s947_s25 + $0x108] sm:$0xff]  ;;  %v336_v38 = vld [vmem:[%s947_s25 + $0x118] sm:$0xff]  ;;  %v749_v41 = vpack.c.bf16 %v331_v33, %v329_v32 }
  0x2e   : > { %804 = vmatprep.subr.bf16.mxu0 %v803_v11  ;;  %v398_v39 = vld [vmem:[%s947_s25 + $0x308] sm:$0xff]  ;;  %v400_v40 = vld [vmem:[%s947_s25 + $0x318] sm:$0xff]  ;;  %v813_v42 = vpack.c.bf16 %v395_v36, %v393_v34  ;;  %v751_v43 = vpack.c.bf16 %v336_v38, %v334_v37  ;;  %v333_v44 = vld [vmem:[%s947_s25 + $0x100] sm:$0xff] }
  0x2f   : > { %v335_v45 = vld [vmem:[%s947_s25 + $0x110] sm:$0xff]  ;;  %v397_v46 = vld [vmem:[%s947_s25 + $0x300] sm:$0xff]  ;;  %v815_v47 = vpack.c.bf16 %v400_v40, %v398_v39  ;;  %v338_v49 = vld [vmem:[%s947_s25 + $0x128] sm:$0xff] }
  0x30   : > { %742 = vmatpush1.bf16.msra.mxu1 %v741_v17  ;;  %v399_v48 = vld [vmem:[%s947_s25 + $0x310] sm:$0xff]  ;;  %v340_v50 = vld [vmem:[%s947_s25 + $0x138] sm:$0xff]  ;;  %v402_v51 = vld [vmem:[%s947_s25 + $0x328] sm:$0xff]  ;;  %v753_v53 = vpack.c.bf16 %v335_v45, %v333_v44 }
  0x31   : > { %806 = vmatpush1.bf16.msra.mxu0 %v805_v18  ;;  %744 = vmatprep.subr.bf16.mxu1 %v743_v19  ;;  %v404_v52 = vld [vmem:[%s947_s25 + $0x338] sm:$0xff]  ;;  %v817_v54 = vpack.c.bf16 %v399_v48, %v397_v46  ;;  %v755_v55 = vpack.c.bf16 %v340_v50, %v338_v49  ;;  %v337_v56 = vld [vmem:[%s947_s25 + $0x120] sm:$0xff]  ;;  %v339_v57 = vld [vmem:[%s947_s25 + $0x130] sm:$0xff] }
  0x32   : > { %808 = vmatprep.subr.bf16.mxu0 %v807_v23  ;;  %v401_v58 = vld [vmem:[%s947_s25 + $0x320] sm:$0xff]  ;;  %v819_v59 = vpack.c.bf16 %v404_v52, %v402_v51  ;;  %v403_v60 = vld [vmem:[%s947_s25 + $0x330] sm:$0xff]  ;;  %v342_v61 = vld [vmem:[%s947_s25 + $0x148] sm:$0xff]  ;;  %v757_v1 = vpack.c.bf16 %v339_v57, %v337_v56 }
  0x33   : > { %v344_v62 = vld [vmem:[%s947_s25 + $0x158] sm:$0xff]  ;;  %v406_v63 = vld [vmem:[%s947_s25 + $0x348] sm:$0xff]  ;;  %v821_v2 = vpack.c.bf16 %v403_v60, %v401_v58  ;;  %v341_v4 = vld [vmem:[%s947_s25 + $0x140] sm:$0xff] }
  0x34   : > { %746 = vmatpush1.bf16.msra.mxu1 %v745_v29  ;;  %v408_v0 = vld [vmem:[%s947_s25 + $0x358] sm:$0xff]  ;;  %v759_v3 = vpack.c.bf16 %v344_v62, %v342_v61  ;;  %v343_v5 = vld [vmem:[%s947_s25 + $0x150] sm:$0xff]  ;;  %v405_v6 = vld [vmem:[%s947_s25 + $0x340] sm:$0xff] }
  0x35   : > { %810 = vmatpush1.bf16.msra.mxu0 %v809_v30  ;;  %748 = vmatprep.subr.bf16.mxu1 %v747_v31  ;;  %v823_v7 = vpack.c.bf16 %v408_v0, %v406_v63  ;;  %v407_v8 = vld [vmem:[%s947_s25 + $0x350] sm:$0xff]  ;;  %v346_v9 = vld [vmem:[%s947_s25 + $0x168] sm:$0xff]  ;;  %v348_v10 = vld [vmem:[%s947_s25 + $0x178] sm:$0xff]  ;;  %v761_v13 = vpack.c.bf16 %v343_v5, %v341_v4 }
  0x36   : > { %812 = vmatprep.subr.bf16.mxu0 %v811_v35  ;;  %v410_v11 = vld [vmem:[%s947_s25 + $0x368] sm:$0xff]  ;;  %v412_v12 = vld [vmem:[%s947_s25 + $0x378] sm:$0xff]  ;;  %v345_v14 = vld [vmem:[%s947_s25 + $0x160] sm:$0xff]  ;;  %v825_v15 = vpack.c.bf16 %v407_v8, %v405_v6  ;;  %v763_v16 = vpack.c.bf16 %v348_v10, %v346_v9 }
  0x37   : > { %v347_v17 = vld [vmem:[%s947_s25 + $0x170] sm:$0xff]  ;;  %v409_v18 = vld [vmem:[%s947_s25 + $0x360] sm:$0xff]  ;;  %v827_v20 = vpack.c.bf16 %v412_v12, %v410_v11  ;;  %v350_v21 = vld [vmem:[%s947_s25 + $0x188] sm:$0xff] }
  0x38   : > { %750 = vmatpush1.bf16.msra.mxu1 %v749_v41  ;;  %v411_v19 = vld [vmem:[%s947_s25 + $0x370] sm:$0xff]  ;;  %v352_v22 = vld [vmem:[%s947_s25 + $0x198] sm:$0xff]  ;;  %v298_v23 = vld [vmem:[%s942_s21 + $0x8] sm:$0xff]  ;;  %v765_v27 = vpack.c.bf16 %v347_v17, %v345_v14 }
  0x39   : > { %814 = vmatpush1.bf16.msra.mxu0 %v813_v42  ;;  %752 = vmatprep.subr.bf16.mxu1 %v751_v43  ;;  %v414_v24 = vld [vmem:[%s947_s25 + $0x388] sm:$0xff]  ;;  %v416_v25 = vld [vmem:[%s947_s25 + $0x398] sm:$0xff]  ;;  %v829_v28 = vpack.c.bf16 %v411_v19, %v409_v18  ;;  %v767_v29 = vpack.c.bf16 %v352_v22, %v350_v21  ;;  %v349_v30 = vld [vmem:[%s947_s25 + $0x180] sm:$0xff] }
  0x3a   : > { %816 = vmatprep.subr.bf16.mxu0 %v815_v47  ;;  %493 = vmatprep.mubr.f32.mxu1 %v298_v23  ;;  %v300_v26 = vld [vmem:[%s942_s21 + $0x18] sm:$0xff]  ;;  %v351_v31 = vld [vmem:[%s947_s25 + $0x190] sm:$0xff]  ;;  %v413_v32 = vld [vmem:[%s947_s25 + $0x380] sm:$0xff]  ;;  %v831_v33 = vpack.c.bf16 %v416_v25, %v414_v24 }
  0x3b   : > { %564 = vmatprep.mubr.f32.mxu0 %v300_v26  ;;  %v415_v34 = vld [vmem:[%s947_s25 + $0x390] sm:$0xff]  ;;  %v354_v35 = vld [vmem:[%s947_s25 + $0x1a8] sm:$0xff]  ;;  %v356_v36 = vld [vmem:[%s947_s25 + $0x1b8] sm:$0xff]  ;;  %v769_v39 = vpack.c.bf16 %v351_v31, %v349_v30 }
  0x3c   : > { %754 = vmatpush1.bf16.msra.mxu1 %v753_v53  ;;  %v418_v37 = vld [vmem:[%s947_s25 + $0x3a8] sm:$0xff]  ;;  %v420_v38 = vld [vmem:[%s947_s25 + $0x3b8] sm:$0xff]  ;;  %v833_v40 = vpack.c.bf16 %v415_v34, %v413_v32  ;;  %v771_v41 = vpack.c.bf16 %v356_v36, %v354_v35  ;;  %v353_v42 = vld [vmem:[%s947_s25 + $0x1a0] sm:$0xff] }
  0x3d   : > { %818 = vmatpush1.bf16.msra.mxu0 %v817_v54  ;;  %756 = vmatprep.subr.bf16.mxu1 %v755_v55  ;;  %v355_v43 = vld [vmem:[%s947_s25 + $0x1b0] sm:$0xff]  ;;  %v417_v44 = vld [vmem:[%s947_s25 + $0x3a0] sm:$0xff]  ;;  %v835_v45 = vpack.c.bf16 %v420_v38, %v418_v37  ;;  %v358_v47 = vld [vmem:[%s947_s25 + $0x1c8] sm:$0xff] }
  0x3e   : > { %820 = vmatprep.subr.bf16.mxu0 %v819_v59  ;;  %v419_v46 = vld [vmem:[%s947_s25 + $0x3b0] sm:$0xff]  ;;  %v360_v48 = vld [vmem:[%s947_s25 + $0x1d8] sm:$0xff]  ;;  %v422_v49 = vld [vmem:[%s947_s25 + $0x3c8] sm:$0xff]  ;;  %v773_v51 = vpack.c.bf16 %v355_v43, %v353_v42 }
  0x3f   : > { %v424_v50 = vld [vmem:[%s947_s25 + $0x3d8] sm:$0xff]  ;;  %v837_v52 = vpack.c.bf16 %v419_v46, %v417_v44  ;;  %v775_v53 = vpack.c.bf16 %v360_v48, %v358_v47  ;;  %v357_v54 = vld [vmem:[%s947_s25 + $0x1c0] sm:$0xff]  ;;  %v359_v55 = vld [vmem:[%s947_s25 + $0x1d0] sm:$0xff] }
  0x40   : > { %758 = vmatpush1.bf16.msra.mxu1 %v757_v1  ;;  %v421_v56 = vld [vmem:[%s947_s25 + $0x3c0] sm:$0xff]  ;;  %v839_v57 = vpack.c.bf16 %v424_v50, %v422_v49  ;;  %v423_v58 = vld [vmem:[%s947_s25 + $0x3d0] sm:$0xff]  ;;  %v362_v59 = vld [vmem:[%s947_s25 + $0x1e8] sm:$0xff]  ;;  %v777_v63 = vpack.c.bf16 %v359_v55, %v357_v54 }
  0x41   : > { %822 = vmatpush1.bf16.msra.mxu0 %v821_v2  ;;  %760 = vmatprep.subr.bf16.mxu1 %v759_v3  ;;  %v364_v60 = vld [vmem:[%s947_s25 + $0x1f8] sm:$0xff]  ;;  %v426_v61 = vld [vmem:[%s947_s25 + $0x3e8] sm:$0xff]  ;;  %v841_v0 = vpack.c.bf16 %v423_v58, %v421_v56  ;;  %v361_v2 = vld [vmem:[%s947_s25 + $0x1e0] sm:$0xff] }
  0x42   : > { %824 = vmatprep.subr.bf16.mxu0 %v823_v7  ;;  %v428_v62 = vld [vmem:[%s947_s25 + $0x3f8] sm:$0xff]  ;;  %v779_v1 = vpack.c.bf16 %v364_v60, %v362_v59  ;;  %v363_v3 = vld [vmem:[%s947_s25 + $0x1f0] sm:$0xff]  ;;  %v425_v5 = vld [vmem:[%s947_s25 + $0x3e0] sm:$0xff] }
  0x43   : > { %v843_v4 = vpack.c.bf16 %v428_v62, %v426_v61  ;;  %v427_v6 = vld [vmem:[%s947_s25 + $0x3f0] sm:$0xff]  ;;  %v781_v7 = vpack.c.bf16 %v363_v3, %v361_v2  ;;  %v297_v9 = vld [vmem:[%s942_s21] sm:$0xff] }
  0x44   : > { %762 = vmatpush1.bf16.msra.mxu1 %v761_v13  ;;  %v845_v8 = vpack.c.bf16 %v427_v6, %v425_v5  ;;  %v299_v10 = vld [vmem:[%s942_s21 + $0x10] sm:$0xff]  ;;  %v295_v12 = vld [vmem:[%s1128_s3] sm:$0xff] }
  0x45   : > { %826 = vmatpush1.bf16.msra.mxu0 %v825_v15  ;;  %764 = vmatprep.subr.bf16.mxu1 %v763_v16  ;;  %v296_v16 = vld [vmem:[%s1128_s3 + $0x8] sm:$0xff] }
  0x46   : > { %828 = vmatprep.subr.bf16.mxu0 %v827_v20 }
  0x48   : > { %766 = vmatpush1.bf16.msra.mxu1 %v765_v27 }
  0x49   : > { %830 = vmatpush1.bf16.msra.mxu0 %v829_v28  ;;  %768 = vmatprep.subr.bf16.mxu1 %v767_v29 }
  0x4a   : > { %832 = vmatprep.subr.bf16.mxu0 %v831_v33 }
  0x4c   : > { %770 = vmatpush1.bf16.msra.mxu1 %v769_v39 }
  0x4d   : > { %834 = vmatpush1.bf16.msra.mxu0 %v833_v40  ;;  %772 = vmatprep.subr.bf16.mxu1 %v771_v41 }
  0x4e   : > { %836 = vmatprep.subr.bf16.mxu0 %v835_v45 }
  0x50   : > { %774 = vmatpush1.bf16.msra.mxu1 %v773_v51 }
  0x51   : > { %838 = vmatpush1.bf16.msra.mxu0 %v837_v52  ;;  %776 = vmatprep.subr.bf16.mxu1 %v775_v53 }
  0x52   : > { %840 = vmatprep.subr.bf16.mxu0 %v839_v57 }
  0x54   : > { %778 = vmatpush1.bf16.msra.mxu1 %v777_v63 }
  0x55   : > { %842 = vmatpush1.bf16.msra.mxu0 %v841_v0  ;;  %780 = vmatprep.subr.bf16.mxu1 %v779_v1 }
  0x56   : > { %844 = vmatprep.subr.bf16.mxu0 %v843_v4 }
  0x58   : > { %782 = vmatpush1.bf16.msra.mxu1 %v781_v7 }
  0x59   : > { %846 = vmatpush1.bf16.msra.mxu0 %v845_v8 }
  0x5b   : > { %494 = vmatmul.mubr.f32.vlgmr.msra.gmra.mrb[0].mxu1 %v297_v9 }
  0x5c   : > { %565 = vmatmul.mubr.f32.vlgmr.msra.gmra.mrb[0].mxu0 %v299_v10 }
 0x12e   : > { %v495_v11 = vpop.f32.mrb[0].mxu1 }
 0x12f   : > { %v566_v13 = vpop.f32.mrb[0].mxu0  ;;  %v497_v14 = vpop.f32.mrb[1].mxu1  ;;  %578 = sbr.rel (%p713_p7) target bundleno = 320 (0x140), region = 40 }
 0x130   : > { %v567_v15 = vadd.f32 %v566_v13, %v495_v11  ;;  %v568_v17 = vpop.f32.mrb[1].mxu0 }
 0x131   : > { %v569_v18 = vadd.f32 %v568_v17, %v497_v14 }
 0x132   : > { %v571_v19 = vadd.f32 %v567_v15, %v295_v12 }
 0x133   : > { %v572_v20 = vadd.f32 %v569_v18, %v296_v16 }
 0x134   : > { %573 = vst [vmem:[%s1128_s3] sm:$0xff] %v571_v19 }
 0x135   : > { %574 = vst [vmem:[%s1128_s3 + $0x8] sm:$0xff] %v572_v20 }
 0x13b   : > { %v579_v21 = vld [vmem:[%s1128_s3] sm:$0xff] }
 0x13c   : > { %v580_v22 = vld [vmem:[%s1128_s3 + $0x8] sm:$0xff]  ;;  %v581_v23 = vmax.f32 %v579_v21, 0.0 }
 0x13d   : > { %v582_v24 = vmax.f32 %v580_v22, 0.0 }
 0x13e   : > { %583 = vst [vmem:[%s1128_s3] sm:$0xff] %v581_v23 }
 0x13f   : > { %584 = vst [vmem:[%s1128_s3 + $0x8] sm:$0xff] %v582_v24 }
 0x140 PF: > { %s13_s14 = sadd.s32 1, %s895_s14   ;;  %s1129_s12 = smov %s891_s13 }
 0x141   : > { %p10_p8 = scmp.ge.s32.totalorder %s13_s14, 6   ;;  %s1130_s13 = smov %s1132_s15 }
 0x143   :  { %12 = sbr.rel (!%p10_p8) target bundleno = 2 (0x2), region = 76 }

// kernel: head_forward.15
= control target key start
LH: loop header
LB: loop body
LE: loop exit
PB: predicated region body
PF: predicated region fallthrough
CT: control target
= control target key end

     0   :  { %s881_s12 = smov 0   ;;  %s883_s13 = smov 0   ;;  %s1147_s0 = inlined_call_operand.vmem [shape: f32[32,1280], index: 0, kind: input, shape index: {}]   ;;  %s1148_s1 = inlined_call_operand.vmem [shape: f32[1280,256], index: 1, kind: input, shape index: {}]   ;;  %s1149_s2 = inlined_call_operand.vmem [shape: f32[1,256], index: 2, kind: input, shape index: {}]   ;;  %s1150_s3 = inlined_call_operand.vmem [shape: f32[32,256], index: 3, kind: output, shape index: {}]  }
   0x1   :  { %s885_s14 = smov 0   ;;  %s887_s15 = smov 0  }
   0x2   :  { %s889_s16 = smov 0  }
   0x3 LB: > { %s25_s17 = sadd.s32 1, %s855_s15  ;;  %p48_p1 = scmp.ne.s32.totalorder %s847_s13, %s843_s12  ;;  %s859_s16 = sphi %s889_s16, %s13_s16   ;;  %s855_s15 = sphi %s887_s15, %s1154_s15   ;;  %s851_s14 = sphi %s885_s14, %s1153_s14   ;;  %s847_s13 = sphi %s883_s13, %s1152_s13   ;;  %s843_s12 = sphi %s881_s12, %s1151_s12  }
   0x4   : > { %p26_p0 = scmp.ge.s32.totalorder %s25_s17, 5  ;;  %p49_p2 = scmp.eq.s32.totalorder %s859_s16, 0 }
   0x5   : > { %s41_s19 = sadd.s32 1, %s847_s13  ;;  %p668_p5 = scmp.ge.s32.totalorder %s859_s16, 5 }
   0x6   : > { %s1156_s17 = smov (%p26_p0, %s25_s17), 0  ;;  %p50_p3 = por %p49_p2, %p48_p1 }
   0x7   : > { %s37_s18 = ssub.s32 %s855_s15, %s1156_s17  ;;  %164 = sbr.rel (%p668_p5) target bundleno = 22 (0x16), region = 20 }
   0x8   : > { %p39_p4 = scmp.eq.s32.totalorder %s37_s18, 0 }
   0xa   : > { %s916_s20 = scalar_select %p39_p4, %s847_s13, %s41_s19  }
   0xe   : > { %167 = sbr.rel (!%p50_p3) target bundleno = 22 (0x16), region = 24  ;;  %s169_s21 = sand.u32 (%p50_p3), 1, %s847_s13  }
   0xf   : > { %s683_s22 = sshll.u32 (%p50_p3), %s855_s15, 4  ;;  %s669_s23 = sshll.u32 (%p50_p3), %s169_s21, 6 }
  0x10   : > { %s177_s26 = scalar_lea.vmem (%p50_p3), %s1147_s0, %s683_s22  ;;  %s171_s27 = scalar_lea.vmem (%p50_p3), [#allocation2], %s669_s23 }
  0x11   : > { %v190_v0 = vld [vmem:[%s177_s26] sm:$0xff] (%p50_p3)  ;;  %v192_v1 = vld [vmem:[%s177_s26 + $0x8] sm:$0xff] (%p50_p3)  ;;  %v194_v2 = vld [vmem:[%s177_s26 + $0x50] sm:$0xff] (%p50_p3) }
  0x12   : > { %191 = vst [vmem:[%s171_s27] sm:$0xff] (%p50_p3), %v190_v0  ;;  %193 = vst [vmem:[%s171_s27 + $0x8] sm:$0xff] (%p50_p3), %v192_v1  ;;  %v196_v3 = vld [vmem:[%s177_s26 + $0x58] sm:$0xff] (%p50_p3)  ;;  %v198_v4 = vld [vmem:[%s177_s26 + $0xa0] sm:$0xff] (%p50_p3) }
  0x13   : > { %195 = vst [vmem:[%s171_s27 + $0x10] sm:$0xff] (%p50_p3), %v194_v2  ;;  %v200_v5 = vld [vmem:[%s177_s26 + $0xa8] sm:$0xff] (%p50_p3)  ;;  %197 = vst [vmem:[%s171_s27 + $0x18] sm:$0xff] (%p50_p3), %v196_v3  ;;  %v202_v6 = vld [vmem:[%s177_s26 + $0xf0] sm:$0xff] (%p50_p3) }
  0x14   : > { %199 = vst [vmem:[%s171_s27 + $0x20] sm:$0xff] (%p50_p3), %v198_v4  ;;  %201 = vst [vmem:[%s171_s27 + $0x28] sm:$0xff] (%p50_p3), %v200_v5  ;;  %v204_v7 = vld [vmem:[%s177_s26 + $0xf8] sm:$0xff] (%p50_p3) }
  0x15   : > { %203 = vst [vmem:[%s171_s27 + $0x30] sm:$0xff] %v202_v6  ;;  %205 = vst [vmem:[%s171_s27 + $0x38] sm:$0xff] %v204_v7 }
  0x16 PF: > { %p672_p6 = scmp.ge.s32.totalorder %s859_s16, 1  ;;  %p225_p7 = scmp.lt.s32.totalorder %s859_s16, 6 }
  0x18   : > { %p226_p8 = pnand %p672_p6, %p225_p7 }
  0x19   : > { %s232_s28 = sand.u32 (!%p226_p8), 1, %s843_s12   ;;  %s674_s29 = sshll.u32 (!%p226_p8), %s851_s14, 5 }
  0x1a   : > { %229 = sbr.rel (%p226_p8) target bundleno = 344 (0x158), region = 51  ;;  %s673_s30 = sshll.u32 (!%p226_p8), %s232_s28, 6 }
  0x1b   : > { %p278_p9 = scmp.lt.s32.totalorder (!%p226_p8), %s674_s29, 159  ;;  %s933_s8 = scalar_lea.vmem (!%p226_p8), [#allocation2], %s673_s30 }
  0x1c   : > { %p677_p10 = scmp.ne.s32.totalorder (!%p226_p8), %s851_s14, 0 }
  0x21   : > { %s1158_s29 = smov (!%p278_p9, %s674_s29), 159  ;;  %308 = sbr.rel (%p677_p10) target bundleno = 46 (0x2e), region = 59 }
  0x22   : > { %s684_s4 = sshll.u32 %s1158_s29, 4  ;;  %v311_v8 = vlaneseq (!%p677_p10)  ;;  %v309_v10 = vld [vmem:[%s1149_s2] sm:$0x3] (!%p677_p10) }
  0x23   : > { %s931_s7 = scalar_lea.vmem %s1148_s1, %s684_s4 }
  0x24   : > { %v312_v9 = vshrl.u32 (!%p677_p10), %v311_v8, 7 }
  0x26   : > { %v313_v11 = vsub.s32 (!%p677_p10), 0, %v312_v9  ;;  %v317_v12 = vsub.s32 (!%p677_p10), 1, %v312_v9 }
  0x28   : > { %v314_v13 = vrot.slane %v309_v10, %v313_v11  ;;  %v318_v14 = vrot.slane %v309_v10, %v317_v12 }
  0x2a   : > { %321 = vst [vmem:[%s1150_s3] sm:$0xff] %v314_v13  ;;  %323 = vst [vmem:[%s1150_s3 + $0x10] sm:$0xff] %v314_v13 }
  0x2b   : > { %325 = vst [vmem:[%s1150_s3 + $0x20] sm:$0xff] %v314_v13  ;;  %327 = vst [vmem:[%s1150_s3 + $0x30] sm:$0xff] %v314_v13 }
  0x2c   : > { %322 = vst [vmem:[%s1150_s3 + $0x8] sm:$0xff] %v318_v14  ;;  %324 = vst [vmem:[%s1150_s3 + $0x18] sm:$0xff] %v318_v14 }
  0x2d   : > { %326 = vst [vmem:[%s1150_s3 + $0x28] sm:$0xff] %v318_v14  ;;  %328 = vst [vmem:[%s1150_s3 + $0x38] sm:$0xff] %v318_v14 }
  0x2e PF: > { %v346_v15 = vld [vmem:[%s931_s7 + $0x8] sm:$0xff]  ;;  %v348_v16 = vld [vmem:[%s931_s7 + $0x18] sm:$0xff]  ;;  %v345_v17 = vld [vmem:[%s931_s7] sm:$0xff]  ;;  %p678_p11 = scmp.ne.s32.totalorder %s851_s14, 4 }
  0x2f   : > { %v685_v18 = vpack.c.bf16 %v348_v16, %v346_v15  ;;  %v347_v19 = vld [vmem:[%s931_s7 + $0x10] sm:$0xff]  ;;  %v350_v20 = vld [vmem:[%s931_s7 + $0x28] sm:$0xff]  ;;  %v352_v21 = vld [vmem:[%s931_s7 + $0x38] sm:$0xff] }
  0x30   : > { %v687_v22 = vpack.c.bf16 %v347_v19, %v345_v17  ;;  %v689_v23 = vpack.c.bf16 %v352_v21, %v350_v20  ;;  %v349_v24 = vld [vmem:[%s931_s7 + $0x20] sm:$0xff]  ;;  %v351_v25 = vld [vmem:[%s931_s7 + $0x30] sm:$0xff]  ;;  %v354_v26 = vld [vmem:[%s931_s7 + $0x48] sm:$0xff] }
  0x31   : > { %686 = vmatprep.subr.bf16.mxu0 %v685_v18  ;;  %749 = vmatprep.subr.bf16.mxu1 %v685_v18  ;;  %v356_v27 = vld [vmem:[%s931_s7 + $0x58] sm:$0xff]  ;;  %v691_v28 = vpack.c.bf16 %v351_v25, %v349_v24  ;;  %v353_v30 = vld [vmem:[%s931_s7 + $0x40] sm:$0xff]  ;;  %v355_v31 = vld [vmem:[%s931_s7 + $0x50] sm:$0xff] }
  0x32   : > { %688 = vmatpush1.bf16.msra.mxu0 %v687_v22  ;;  %765 = vmatpush1.bf16.msra.mxu1 %v687_v22  ;;  %v693_v29 = vpack.c.bf16 %v356_v27, %v354_v26  ;;  %v358_v32 = vld [vmem:[%s931_s7 + $0x68] sm:$0xff]  ;;  %v360_v33 = vld [vmem:[%s931_s7 + $0x78] sm:$0xff]  ;;  %v695_v34 = vpack.c.bf16 %v355_v31, %v353_v30  ;;  %v357_v36 = vld [vmem:[%s931_s7 + $0x60] sm:$0xff] }
  0x33   : > { %690 = vmatprep.subr.bf16.mxu0 %v689_v23  ;;  %750 = vmatprep.subr.bf16.mxu1 %v689_v23  ;;  %v697_v35 = vpack.c.bf16 %v360_v33, %v358_v32  ;;  %v359_v37 = vld [vmem:[%s931_s7 + $0x70] sm:$0xff]  ;;  %v362_v38 = vld [vmem:[%s931_s7 + $0x88] sm:$0xff]  ;;  %v364_v39 = vld [vmem:[%s931_s7 + $0x98] sm:$0xff] }
  0x34   : > { %v699_v40 = vpack.c.bf16 %v359_v37, %v357_v36  ;;  %v701_v41 = vpack.c.bf16 %v364_v39, %v362_v38  ;;  %v361_v42 = vld [vmem:[%s931_s7 + $0x80] sm:$0xff]  ;;  %v363_v43 = vld [vmem:[%s931_s7 + $0x90] sm:$0xff]  ;;  %v366_v44 = vld [vmem:[%s931_s7 + $0xa8] sm:$0xff] }
  0x35   : > { %v368_v45 = vld [vmem:[%s931_s7 + $0xb8] sm:$0xff]  ;;  %v703_v46 = vpack.c.bf16 %v363_v43, %v361_v42  ;;  %v365_v48 = vld [vmem:[%s931_s7 + $0xa0] sm:$0xff]  ;;  %v367_v49 = vld [vmem:[%s931_s7 + $0xb0] sm:$0xff] }
  0x36   : > { %692 = vmatpush1.bf16.msra.mxu0 %v691_v28  ;;  %766 = vmatpush1.bf16.msra.mxu1 %v691_v28  ;;  %v705_v47 = vpack.c.bf16 %v368_v45, %v366_v44  ;;  %v370_v50 = vld [vmem:[%s931_s7 + $0xc8] sm:$0xff]  ;;  %v372_v51 = vld [vmem:[%s931_s7 + $0xd8] sm:$0xff]  ;;  %v707_v52 = vpack.c.bf16 %v367_v49, %v365_v48  ;;  %v369_v53 = vld [vmem:[%s931_s7 + $0xc0] sm:$0xff] }
  0x37   : > { %694 = vmatprep.subr.bf16.mxu0 %v693_v29  ;;  %751 = vmatprep.subr.bf16.mxu1 %v693_v29  ;;  %v709_v54 = vpack.c.bf16 %v372_v51, %v370_v50  ;;  %v371_v55 = vld [vmem:[%s931_s7 + $0xd0] sm:$0xff]  ;;  %v338_v56 = vld [vmem:[%s933_s8 + $0x8] sm:$0xff]  ;;  %v376_v59 = vld [vmem:[%s931_s7 + $0xf8] sm:$0xff] }
  0x38   : > { %v342_v57 = vld [vmem:[%s933_s8 + $0x28] sm:$0xff]  ;;  %473 = vmatprep.mubr.f32.mxu0 %v338_v56  ;;  %v711_v60 = vpack.c.bf16 %v371_v55, %v369_v53  ;;  %v373_v62 = vld [vmem:[%s931_s7 + $0xe0] sm:$0xff]  ;;  %v375_v63 = vld [vmem:[%s931_s7 + $0xf0] sm:$0xff] }
  0x39   : > { %v374_v58 = vld [vmem:[%s931_s7 + $0xe8] sm:$0xff]  ;;  %485 = vmatprep.mubr.f32.mxu1 %v342_v57  ;;  %v380_v1 = vld [vmem:[%s931_s7 + $0x118] sm:$0xff]  ;;  %v715_v2 = vpack.c.bf16 %v375_v63, %v373_v62  ;;  %v377_v4 = vld [vmem:[%s931_s7 + $0x100] sm:$0xff] }
  0x3a   : > { %696 = vmatpush1.bf16.msra.mxu0 %v695_v34  ;;  %767 = vmatpush1.bf16.msra.mxu1 %v695_v34  ;;  %v713_v61 = vpack.c.bf16 %v376_v59, %v374_v58  ;;  %v378_v0 = vld [vmem:[%s931_s7 + $0x108] sm:$0xff]  ;;  %v379_v5 = vld [vmem:[%s931_s7 + $0x110] sm:$0xff]  ;;  %v384_v7 = vld [vmem:[%s931_s7 + $0x138] sm:$0xff] }
  0x3b   : > { %698 = vmatprep.subr.bf16.mxu0 %v697_v35  ;;  %752 = vmatprep.subr.bf16.mxu1 %v697_v35  ;;  %v717_v3 = vpack.c.bf16 %v380_v1, %v378_v0  ;;  %v382_v6 = vld [vmem:[%s931_s7 + $0x128] sm:$0xff]  ;;  %v719_v8 = vpack.c.bf16 %v379_v5, %v377_v4  ;;  %v381_v10 = vld [vmem:[%s931_s7 + $0x120] sm:$0xff]  ;;  %v383_v11 = vld [vmem:[%s931_s7 + $0x130] sm:$0xff] }
  0x3c   : > { %v721_v9 = vpack.c.bf16 %v384_v7, %v382_v6  ;;  %v386_v12 = vld [vmem:[%s931_s7 + $0x148] sm:$0xff]  ;;  %v388_v13 = vld [vmem:[%s931_s7 + $0x158] sm:$0xff]  ;;  %v723_v14 = vpack.c.bf16 %v383_v11, %v381_v10  ;;  %v385_v16 = vld [vmem:[%s931_s7 + $0x140] sm:$0xff] }
  0x3d   : > { %v725_v15 = vpack.c.bf16 %v388_v13, %v386_v12  ;;  %v387_v17 = vld [vmem:[%s931_s7 + $0x150] sm:$0xff]  ;;  %v390_v18 = vld [vmem:[%s931_s7 + $0x168] sm:$0xff]  ;;  %v392_v19 = vld [vmem:[%s931_s7 + $0x178] sm:$0xff] }
  0x3e   : > { %700 = vmatpush1.bf16.msra.mxu0 %v699_v40  ;;  %768 = vmatpush1.bf16.msra.mxu1 %v699_v40  ;;  %v727_v20 = vpack.c.bf16 %v387_v17, %v385_v16  ;;  %v729_v21 = vpack.c.bf16 %v392_v19, %v390_v18  ;;  %v389_v22 = vld [vmem:[%s931_s7 + $0x160] sm:$0xff]  ;;  %v391_v23 = vld [vmem:[%s931_s7 + $0x170] sm:$0xff]  ;;  %v394_v24 = vld [vmem:[%s931_s7 + $0x188] sm:$0xff] }
  0x3f   : > { %702 = vmatprep.subr.bf16.mxu0 %v701_v41  ;;  %753 = vmatprep.subr.bf16.mxu1 %v701_v41  ;;  %v396_v25 = vld [vmem:[%s931_s7 + $0x198] sm:$0xff]  ;;  %v731_v26 = vpack.c.bf16 %v391_v23, %v389_v22  ;;  %v393_v28 = vld [vmem:[%s931_s7 + $0x180] sm:$0xff]  ;;  %v395_v29 = vld [vmem:[%s931_s7 + $0x190] sm:$0xff] }
  0x40   : > { %v733_v27 = vpack.c.bf16 %v396_v25, %v394_v24  ;;  %v398_v30 = vld [vmem:[%s931_s7 + $0x1a8] sm:$0xff]  ;;  %v400_v31 = vld [vmem:[%s931_s7 + $0x1b8] sm:$0xff]  ;;  %v735_v32 = vpack.c.bf16 %v395_v29, %v393_v28  ;;  %v397_v34 = vld [vmem:[%s931_s7 + $0x1a0] sm:$0xff] }
  0x41   : > { %v737_v33 = vpack.c.bf16 %v400_v31, %v398_v30  ;;  %v399_v35 = vld [vmem:[%s931_s7 + $0x1b0] sm:$0xff]  ;;  %v402_v36 = vld [vmem:[%s931_s7 + $0x1c8] sm:$0xff]  ;;  %v404_v37 = vld [vmem:[%s931_s7 + $0x1d8] sm:$0xff] }
  0x42   : > { %704 = vmatpush1.bf16.msra.mxu0 %v703_v46  ;;  %769 = vmatpush1.bf16.msra.mxu1 %v703_v46  ;;  %v739_v38 = vpack.c.bf16 %v399_v35, %v397_v34  ;;  %v741_v39 = vpack.c.bf16 %v404_v37, %v402_v36  ;;  %v401_v40 = vld [vmem:[%s931_s7 + $0x1c0] sm:$0xff]  ;;  %v403_v41 = vld [vmem:[%s931_s7 + $0x1d0] sm:$0xff]  ;;  %v406_v42 = vld [vmem:[%s931_s7 + $0x1e8] sm:$0xff] }
  0x43   : > { %706 = vmatprep.subr.bf16.mxu0 %v705_v47  ;;  %754 = vmatprep.subr.bf16.mxu1 %v705_v47  ;;  %v408_v43 = vld [vmem:[%s931_s7 + $0x1f8] sm:$0xff]  ;;  %v743_v44 = vpack.c.bf16 %v403_v41, %v401_v40  ;;  %v405_v46 = vld [vmem:[%s931_s7 + $0x1e0] sm:$0xff]  ;;  %v407_v47 = vld [vmem:[%s931_s7 + $0x1f0] sm:$0xff] }
  0x44   : > { %v745_v45 = vpack.c.bf16 %v408_v43, %v406_v42  ;;  %v747_v48 = vpack.c.bf16 %v407_v47, %v405_v46  ;;  %v337_v49 = vld [vmem:[%s933_s8] sm:$0xff]  ;;  %v340_v51 = vld [vmem:[%s933_s8 + $0x18] sm:$0xff]  ;;  %v339_v53 = vld [vmem:[%s933_s8 + $0x10] sm:$0xff] }
  0x45   : > { %v341_v50 = vld [vmem:[%s933_s8 + $0x20] sm:$0xff]  ;;  %v330_v57 = vld [vmem:[%s1150_s3 + $0x8] sm:$0xff]  ;;  %v335_v4 = vld [vmem:[%s1150_s3 + $0x30] sm:$0xff] }
  0x46   : > { %708 = vmatpush1.bf16.msra.mxu0 %v707_v52  ;;  %770 = vmatpush1.bf16.msra.mxu1 %v707_v52  ;;  %v344_v52 = vld [vmem:[%s933_s8 + $0x38] sm:$0xff]  ;;  %v329_v55 = vld [vmem:[%s1150_s3] sm:$0xff]  ;;  %v334_v58 = vld [vmem:[%s1150_s3 + $0x28] sm:$0xff] }
  0x47   : > { %710 = vmatprep.subr.bf16.mxu0 %v709_v54  ;;  %755 = vmatprep.subr.bf16.mxu1 %v709_v54  ;;  %v343_v54 = vld [vmem:[%s933_s8 + $0x30] sm:$0xff]  ;;  %v333_v56 = vld [vmem:[%s1150_s3 + $0x20] sm:$0xff]  ;;  %v332_v5 = vld [vmem:[%s1150_s3 + $0x18] sm:$0xff] }
  0x48   : > { %v336_v6 = vld [vmem:[%s1150_s3 + $0x38] sm:$0xff] }
  0x4a   : > { %712 = vmatpush1.bf16.msra.mxu0 %v711_v60  ;;  %771 = vmatpush1.bf16.msra.mxu1 %v711_v60 }
  0x4b   : > { %714 = vmatprep.subr.bf16.mxu0 %v713_v61  ;;  %756 = vmatprep.subr.bf16.mxu1 %v713_v61 }
  0x4e   : > { %716 = vmatpush1.bf16.msra.mxu0 %v715_v2  ;;  %772 = vmatpush1.bf16.msra.mxu1 %v715_v2 }
  0x4f   : > { %718 = vmatprep.subr.bf16.mxu0 %v717_v3  ;;  %757 = vmatprep.subr.bf16.mxu1 %v717_v3  ;;  %v331_v3 = vld [vmem:[%s1150_s3 + $0x10] sm:$0xff] }
  0x52   : > { %720 = vmatpush1.bf16.msra.mxu0 %v719_v8  ;;  %773 = vmatpush1.bf16.msra.mxu1 %v719_v8 }
  0x53   : > { %722 = vmatprep.subr.bf16.mxu0 %v721_v9  ;;  %758 = vmatprep.subr.bf16.mxu1 %v721_v9 }
  0x56   : > { %724 = vmatpush1.bf16.msra.mxu0 %v723_v14  ;;  %774 = vmatpush1.bf16.msra.mxu1 %v723_v14 }
  0x57   : > { %726 = vmatprep.subr.bf16.mxu0 %v725_v15  ;;  %759 = vmatprep.subr.bf16.mxu1 %v725_v15 }
  0x5a   : > { %728 = vmatpush1.bf16.msra.mxu0 %v727_v20  ;;  %775 = vmatpush1.bf16.msra.mxu1 %v727_v20 }
  0x5b   : > { %730 = vmatprep.subr.bf16.mxu0 %v729_v21  ;;  %760 = vmatprep.subr.bf16.mxu1 %v729_v21 }
  0x5e   : > { %732 = vmatpush1.bf16.msra.mxu0 %v731_v26  ;;  %776 = vmatpush1.bf16.msra.mxu1 %v731_v26 }
  0x5f   : > { %734 = vmatprep.subr.bf16.mxu0 %v733_v27  ;;  %761 = vmatprep.subr.bf16.mxu1 %v733_v27 }
  0x62   : > { %736 = vmatpush1.bf16.msra.mxu0 %v735_v32  ;;  %777 = vmatpush1.bf16.msra.mxu1 %v735_v32 }
  0x63   : > { %738 = vmatprep.subr.bf16.mxu0 %v737_v33  ;;  %762 = vmatprep.subr.bf16.mxu1 %v737_v33 }
  0x66   : > { %740 = vmatpush1.bf16.msra.mxu0 %v739_v38  ;;  %778 = vmatpush1.bf16.msra.mxu1 %v739_v38 }
  0x67   : > { %742 = vmatprep.subr.bf16.mxu0 %v741_v39  ;;  %763 = vmatprep.subr.bf16.mxu1 %v741_v39 }
  0x6a   : > { %744 = vmatpush1.bf16.msra.mxu0 %v743_v44  ;;  %779 = vmatpush1.bf16.msra.mxu1 %v743_v44 }
  0x6b   : > { %746 = vmatprep.subr.bf16.mxu0 %v745_v45  ;;  %764 = vmatprep.subr.bf16.mxu1 %v745_v45 }
  0x6e   : > { %748 = vmatpush1.bf16.msra.mxu0 %v747_v48  ;;  %780 = vmatpush1.bf16.msra.mxu1 %v747_v48 }
  0x71   : > { %474 = vmatmul.mubr.f32.vlgmr.msra.gmra.mrb[0].mxu0 %v337_v49  ;;  %486 = vmatmul.mubr.f32.vlgmr.msra.gmra.mrb[0].mxu1 %v341_v50 }
  0x72   : > { %479 = vmatprep.mubr.f32.mxu0 %v340_v51  ;;  %491 = vmatprep.mubr.f32.mxu1 %v344_v52 }
  0x75   : > { %480 = vmatmul.mubr.f32.gmra.mrb[2].mxu0 %v339_v53  ;;  %492 = vmatmul.mubr.f32.gmra.mrb[2].mxu1 %v343_v54 }
 0x144   : > { %v475_v59 = vpop.f32.mrb[0].mxu0  ;;  %v487_v60 = vpop.f32.mrb[0].mxu1 }
 0x145   : > { %v498_v61 = vadd.f32 %v475_v59, %v329_v55  ;;  %v502_v62 = vadd.f32 %v487_v60, %v333_v56  ;;  %v477_v63 = vpop.f32.mrb[1].mxu0  ;;  %v489_v0 = vpop.f32.mrb[1].mxu1 }
 0x146   : > { %v499_v1 = vadd.f32 %v477_v63, %v330_v57  ;;  %v503_v2 = vadd.f32 %v489_v0, %v334_v58  ;;  %517 = sbr.rel (%p678_p11) target bundleno = 344 (0x158), region = 63 }
 0x147   : > { %506 = vst [vmem:[%s1150_s3] sm:$0xff] %v498_v61  ;;  %510 = vst [vmem:[%s1150_s3 + $0x20] sm:$0xff] %v502_v62 }
 0x148   : > { %507 = vst [vmem:[%s1150_s3 + $0x8] sm:$0xff] %v499_v1  ;;  %511 = vst [vmem:[%s1150_s3 + $0x28] sm:$0xff] %v503_v2  ;;  %v481_v7 = vpop.f32.mrb[2].mxu0  ;;  %v493_v8 = vpop.f32.mrb[2].mxu1 }
 0x149   : > { %v500_v9 = vadd.f32 %v481_v7, %v331_v3  ;;  %v504_v10 = vadd.f32 %v493_v8, %v335_v4  ;;  %v483_v11 = vpop.f32.mrb[3].mxu0  ;;  %v495_v12 = vpop.f32.mrb[3].mxu1 }
 0x14a   : > { %v501_v13 = vadd.f32 %v483_v11, %v332_v5  ;;  %v505_v14 = vadd.f32 %v495_v12, %v336_v6 }
 0x14b   : > { %508 = vst [vmem:[%s1150_s3 + $0x10] sm:$0xff] %v500_v9  ;;  %512 = vst [vmem:[%s1150_s3 + $0x30] sm:$0xff] %v504_v10 }
 0x14c   : > { %509 = vst [vmem:[%s1150_s3 + $0x18] sm:$0xff] %v501_v13  ;;  %513 = vst [vmem:[%s1150_s3 + $0x38] sm:$0xff] %v505_v14 }
 0x14e   : > { %v518_v15 = vld [vmem:[%s1150_s3] sm:$0xff] }
 0x14f   : > { %v519_v16 = vld [vmem:[%s1150_s3 + $0x8] sm:$0xff]  ;;  %v526_v18 = vmax.f32 %v518_v15, 0.0  ;;  %v522_v22 = vld [vmem:[%s1150_s3 + $0x20] sm:$0xff] }
 0x150   : > { %v527_v19 = vmax.f32 %v519_v16, 0.0  ;;  %v523_v23 = vld [vmem:[%s1150_s3 + $0x28] sm:$0xff]  ;;  %v530_v25 = vmax.f32 %v522_v22, 0.0 }
 0x151   : > { %v531_v26 = vmax.f32 %v523_v23, 0.0  ;;  %534 = vst [vmem:[%s1150_s3] sm:$0xff] %v526_v18 }
 0x152   : > { %v520_v17 = vld [vmem:[%s1150_s3 + $0x10] sm:$0xff]  ;;  %535 = vst [vmem:[%s1150_s3 + $0x8] sm:$0xff] %v527_v19  ;;  %538 = vst [vmem:[%s1150_s3 + $0x20] sm:$0xff] %v530_v25 }
 0x153   : > { %v528_v20 = vmax.f32 %v520_v17, 0.0  ;;  %v521_v21 = vld [vmem:[%s1150_s3 + $0x18] sm:$0xff]  ;;  %v524_v27 = vld [vmem:[%s1150_s3 + $0x30] sm:$0xff]  ;;  %539 = vst [vmem:[%s1150_s3 + $0x28] sm:$0xff] %v531_v26 }
 0x154   : > { %v529_v24 = vmax.f32 %v521_v21, 0.0  ;;  %v525_v28 = vld [vmem:[%s1150_s3 + $0x38] sm:$0xff]  ;;  %v532_v29 = vmax.f32 %v524_v27, 0.0 }
 0x155   : > { %536 = vst [vmem:[%s1150_s3 + $0x10] sm:$0xff] %v528_v20  ;;  %v533_v30 = vmax.f32 %v525_v28, 0.0 }
 0x156   : > { %537 = vst [vmem:[%s1150_s3 + $0x18] sm:$0xff] %v529_v24  ;;  %540 = vst [vmem:[%s1150_s3 + $0x30] sm:$0xff] %v532_v29 }
 0x157   : > { %541 = vst [vmem:[%s1150_s3 + $0x38] sm:$0xff] %v533_v30 }
 0x158 PF: > { %s13_s16 = sadd.s32 1, %s859_s16   ;;  %s1151_s12 = smov %s847_s13 }
 0x159   : > { %p10_p12 = scmp.ge.s32.totalorder %s13_s16, 7   ;;  %s1152_s13 = smov %s916_s20 }
 0x15a   : > { %s1153_s14 = smov %s855_s15  ;;  %s1154_s15 = smov %s1156_s17 }
 0x15b   :  { %12 = sbr.rel (!%p10_p12) target bundleno = 3 (0x3), region = 104 }

// kernel: head_forward.9
= control target key start
LH: loop header
LB: loop body
LE: loop exit
PB: predicated region body
PF: predicated region fallthrough
CT: control target
= control target key end

     0   :  { %s1139_s12 = smov 0   ;;  %s1141_s13 = smov 0   ;;  %s1332_s0 = inlined_call_operand.vmem [shape: f32[512,128], index: 0, kind: input, shape index: {}]   ;;  %s1333_s1 = inlined_call_operand.vmem [shape: f32[128,128], index: 1, kind: input, shape index: {}]   ;;  %s1334_s2 = inlined_call_operand.vmem [shape: f32[1,128], index: 2, kind: input, shape index: {}]   ;;  %s1335_s3 = inlined_call_operand.vmem [shape: f32[512,128], index: 3, kind: output, shape index: {}]  }
   0x1   :  { %s1143_s14 = smov 0  }
   0x2 LB: > { %s32_s15 = sadd.s32 1, %s1113_s13  ;;  %p887_p0 = scmp.ge.s32.totalorder %s1117_s14, 1  ;;  %s1117_s14 = sphi %s1143_s14, %s13_s14   ;;  %s1113_s13 = sphi %s1141_s13, %s1337_s13   ;;  %s1109_s12 = sphi %s1139_s12, %s1336_s12  }
   0x3   : > { %p34_p1 = scmp.ge.s32.totalorder %s32_s15, 2  ;;  %p188_p2 = scmp.lt.s32.totalorder %s1117_s14, 3 }
   0x5   : > { %s1339_s15 = smov (%p34_p1, %s32_s15), 0  ;;  %p189_p3 = pnand %p887_p0, %p188_p2 }
   0x6   : > { %v366_v0 = vld [vmem:[%s1333_s1] sm:$0xff] (!%p189_p3)  ;;  %v367_v1 = vld [vmem:[%s1333_s1 + $0x8] sm:$0xff] (!%p189_p3)  ;;  %v368_v2 = vld [vmem:[%s1333_s1 + $0x10] sm:$0xff] (!%p189_p3)  ;;  %s888_s22 = sshll.u32 (!%p189_p3), %s1109_s12, 5 }
   0x7   : > { %192 = sbr.rel (%p189_p3) target bundleno = 288 (0x120), region = 32  ;;  %v1023_v3 = vpack.c.bf16 (!%p189_p3), %v367_v1, %v366_v0  ;;  %v369_v4 = vld [vmem:[%s1333_s1 + $0x18] sm:$0xff] (!%p189_p3)  ;;  %p230_p4 = scmp.lt.s32.totalorder (!%p189_p3), %s888_s22, 63  ;;  %v370_v6 = vld [vmem:[%s1333_s1 + $0x20] sm:$0xff] (!%p189_p3)  ;;  %v371_v7 = vld [vmem:[%s1333_s1 + $0x28] sm:$0xff] (!%p189_p3) }
   0x8   : > { %v1027_v5 = vpack.c.bf16 (!%p189_p3), %v369_v4, %v368_v2  ;;  %v1031_v8 = vpack.c.bf16 (!%p189_p3), %v371_v7, %v370_v6  ;;  %v372_v9 = vld [vmem:[%s1333_s1 + $0x30] sm:$0xff] (!%p189_p3)  ;;  %v373_v10 = vld [vmem:[%s1333_s1 + $0x38] sm:$0xff] (!%p189_p3)  ;;  %v374_v14 = vld [vmem:[%s1333_s1 + $0x40] sm:$0xff] (!%p189_p3) }
   0x9   : > { %1024 = vmatprep.subr.bf16.mxu0 (!%p189_p3), %v1023_v3  ;;  %1055 = vmatprep.subr.bf16.mxu1 (!%p189_p3), %v1023_v3  ;;  %v1035_v13 = vpack.c.bf16 (!%p189_p3), %v373_v10, %v372_v9  ;;  %v375_v15 = vld [vmem:[%s1333_s1 + $0x48] sm:$0xff] (!%p189_p3)  ;;  %v376_v17 = vld [vmem:[%s1333_s1 + $0x50] sm:$0xff] (!%p189_p3)  ;;  %v377_v18 = vld [vmem:[%s1333_s1 + $0x58] sm:$0xff] (!%p189_p3) }
   0xa   : > { %1026 = vmatpush3.bf16.msra.mxu0 (!%p189_p3), %v1023_v3  ;;  %1063 = vmatpush3.bf16.msra.mxu1 (!%p189_p3), %v1023_v3  ;;  %v1039_v16 = vpack.c.bf16 (!%p189_p3), %v375_v15, %v374_v14  ;;  %v1043_v19 = vpack.c.bf16 (!%p189_p3), %v377_v18, %v376_v17  ;;  %v378_v20 = vld [vmem:[%s1333_s1 + $0x60] sm:$0xff] (!%p189_p3)  ;;  %v379_v21 = vld [vmem:[%s1333_s1 + $0x68] sm:$0xff] (!%p189_p3)  ;;  %v380_v23 = vld [vmem:[%s1333_s1 + $0x70] sm:$0xff] (!%p189_p3) }
   0xb   : > { %1028 = vmatprep.subr.bf16.mxu0 (!%p189_p3), %v1027_v5  ;;  %1056 = vmatprep.subr.bf16.mxu1 (!%p189_p3), %v1027_v5  ;;  %v1047_v22 = vpack.c.bf16 (!%p189_p3), %v379_v21, %v378_v20  ;;  %v381_v24 = vld [vmem:[%s1333_s1 + $0x78] sm:$0xff] (!%p189_p3)  ;;  %v1250_v56 = vld [vmem:[%s1334_s2] ss:$0 sm:$0xff] (!%p189_p3) }
   0xc   : > { %v1051_v25 = vpack.c.bf16 (!%p189_p3), %v381_v24, %v380_v23 }
   0xe   : > { %s1341_s22 = smov (!%p230_p4, %s888_s22), 63  ;;  %1030 = vmatpush3.bf16.msra.mxu0 %v1027_v5  ;;  %1064 = vmatpush3.bf16.msra.mxu1 %v1027_v5 }
   0xf   : > { %s889_s29 = sshll.u32 %s1341_s22, 3  ;;  %1032 = vmatprep.subr.bf16.mxu0 %v1031_v8  ;;  %1057 = vmatprep.subr.bf16.mxu1 %v1031_v8 }
  0x10   : > { %s1189_s9 = scalar_lea.vmem %s1332_s0, %s889_s29  ;;  %s1259_s8 = scalar_lea.vmem %s1335_s3, %s889_s29 }
  0x11   : > { %v334_v11 = vld [vmem:[%s1189_s9] sm:$0xff]  ;;  %v335_v26 = vld [vmem:[%s1189_s9 + $0x8] sm:$0xff]  ;;  %v336_v28 = vld [vmem:[%s1189_s9 + $0x10] sm:$0xff] }
  0x12   : > { %v350_v12 = vld [vmem:[%s1189_s9 + $0x80] sm:$0xff]  ;;  %975 = vmatprep.mubr.f32.mxu0 %v334_v11  ;;  %1034 = vmatpush3.bf16.msra.mxu0 %v1031_v8  ;;  %v351_v27 = vld [vmem:[%s1189_s9 + $0x88] sm:$0xff]  ;;  %v352_v29 = vld [vmem:[%s1189_s9 + $0x90] sm:$0xff] }
  0x13   : > { %999 = vmatprep.mubr.f32.mxu1 %v350_v12  ;;  %1065 = vmatpush3.bf16.msra.mxu1 %v1031_v8  ;;  %v337_v30 = vld [vmem:[%s1189_s9 + $0x18] sm:$0xff]  ;;  %v338_v32 = vld [vmem:[%s1189_s9 + $0x20] sm:$0xff]  ;;  %v339_v34 = vld [vmem:[%s1189_s9 + $0x28] sm:$0xff] }
  0x14   : > { %1036 = vmatprep.subr.bf16.mxu0 %v1035_v13  ;;  %1058 = vmatprep.subr.bf16.mxu1 %v1035_v13  ;;  %v353_v31 = vld [vmem:[%s1189_s9 + $0x98] sm:$0xff]  ;;  %v354_v33 = vld [vmem:[%s1189_s9 + $0xa0] sm:$0xff]  ;;  %v355_v35 = vld [vmem:[%s1189_s9 + $0xa8] sm:$0xff] }
  0x15   : > { %v340_v36 = vld [vmem:[%s1189_s9 + $0x30] sm:$0xff]  ;;  %v341_v38 = vld [vmem:[%s1189_s9 + $0x38] sm:$0xff]  ;;  %v342_v40 = vld [vmem:[%s1189_s9 + $0x40] sm:$0xff] }
  0x16   : > { %1038 = vmatpush3.bf16.msra.mxu0 %v1035_v13  ;;  %v356_v37 = vld [vmem:[%s1189_s9 + $0xb0] sm:$0xff]  ;;  %v357_v39 = vld [vmem:[%s1189_s9 + $0xb8] sm:$0xff]  ;;  %v358_v41 = vld [vmem:[%s1189_s9 + $0xc0] sm:$0xff] }
  0x17   : > { %1066 = vmatpush3.bf16.msra.mxu1 %v1035_v13  ;;  %1040 = vmatprep.subr.bf16.mxu0 %v1039_v16  ;;  %v343_v42 = vld [vmem:[%s1189_s9 + $0x48] sm:$0xff]  ;;  %v344_v44 = vld [vmem:[%s1189_s9 + $0x50] sm:$0xff]  ;;  %v345_v46 = vld [vmem:[%s1189_s9 + $0x58] sm:$0xff] }
  0x18   : > { %1059 = vmatprep.subr.bf16.mxu1 %v1039_v16  ;;  %v359_v43 = vld [vmem:[%s1189_s9 + $0xc8] sm:$0xff]  ;;  %v360_v45 = vld [vmem:[%s1189_s9 + $0xd0] sm:$0xff]  ;;  %v361_v47 = vld [vmem:[%s1189_s9 + $0xd8] sm:$0xff] }
  0x19   : > { %v346_v48 = vld [vmem:[%s1189_s9 + $0x60] sm:$0xff]  ;;  %v347_v50 = vld [vmem:[%s1189_s9 + $0x68] sm:$0xff]  ;;  %v348_v52 = vld [vmem:[%s1189_s9 + $0x70] sm:$0xff] }
  0x1a   : > { %1042 = vmatpush3.bf16.msra.mxu0 %v1039_v16  ;;  %v362_v49 = vld [vmem:[%s1189_s9 + $0xe0] sm:$0xff]  ;;  %v363_v51 = vld [vmem:[%s1189_s9 + $0xe8] sm:$0xff]  ;;  %v364_v53 = vld [vmem:[%s1189_s9 + $0xf0] sm:$0xff] }
  0x1b   : > { %1067 = vmatpush3.bf16.msra.mxu1 %v1039_v16  ;;  %1044 = vmatprep.subr.bf16.mxu0 %v1043_v19  ;;  %v349_v54 = vld [vmem:[%s1189_s9 + $0x78] sm:$0xff] }
  0x1c   : > { %1060 = vmatprep.subr.bf16.mxu1 %v1043_v19  ;;  %v365_v55 = vld [vmem:[%s1189_s9 + $0xf8] sm:$0xff] }
  0x1e   : > { %1046 = vmatpush3.bf16.msra.mxu0 %v1043_v19 }
  0x1f   : > { %1068 = vmatpush3.bf16.msra.mxu1 %v1043_v19  ;;  %1048 = vmatprep.subr.bf16.mxu0 %v1047_v22 }
  0x20   : > { %1061 = vmatprep.subr.bf16.mxu1 %v1047_v22 }
  0x22   : > { %1050 = vmatpush3.bf16.msra.mxu0 %v1047_v22 }
  0x23   : > { %1069 = vmatpush3.bf16.msra.mxu1 %v1047_v22  ;;  %1052 = vmatprep.subr.bf16.mxu0 %v1051_v25 }
  0x24   : > { %1062 = vmatprep.subr.bf16.mxu1 %v1051_v25 }
  0x26   : > { %1054 = vmatpush3.bf16.msra.mxu0 %v1051_v25 }
  0x27   : > { %1070 = vmatpush3.bf16.msra.mxu1 %v1051_v25 }
  0x29   : > { %976 = vmatmul.mubr.f32.vlgmr.msra.gmra.mrb[0].mxu0 %v335_v26 }
  0x2a   : > { %1000 = vmatmul.mubr.f32.vlgmr.msra.gmra.mrb[0].mxu1 %v351_v27  ;;  %978 = vmatprep.mubr.f32.mxu0 %v336_v28 }
  0x2b   : > { %1002 = vmatprep.mubr.f32.mxu1 %v352_v29 }
  0x2d   : > { %979 = vmatmul.mubr.f32.gmra.mrb[2].mxu0 %v337_v30 }
  0x2e   : > { %1003 = vmatmul.mubr.f32.gmra.mrb[2].mxu1 %v353_v31  ;;  %981 = vmatprep.mubr.f32.mxu0 %v338_v32 }
  0x2f   : > { %1005 = vmatprep.mubr.f32.mxu1 %v354_v33 }
  0x31   : > { %982 = vmatmul.mubr.f32.gmra.mrb[4].mxu0 %v339_v34 }
  0x32   : > { %1006 = vmatmul.mubr.f32.gmra.mrb[4].mxu1 %v355_v35  ;;  %984 = vmatprep.mubr.f32.mxu0 %v340_v36 }
  0x33   : > { %1008 = vmatprep.mubr.f32.mxu1 %v356_v37 }
  0x35   : > { %985 = vmatmul.mubr.f32.gmra.mrb[6].mxu0 %v341_v38 }
  0x36   : > { %1009 = vmatmul.mubr.f32.gmra.mrb[6].mxu1 %v357_v39  ;;  %987 = vmatprep.mubr.f32.mxu0 %v342_v40 }
  0x37   : > { %1011 = vmatprep.mubr.f32.mxu1 %v358_v41 }
  0x39   : > { %988 = vmatmul.mubr.f32.gmra.mrb[8].mxu0 %v343_v42 }
  0x3a   : > { %1012 = vmatmul.mubr.f32.gmra.mrb[8].mxu1 %v359_v43  ;;  %990 = vmatprep.mubr.f32.mxu0 %v344_v44 }
  0x3b   : > { %1014 = vmatprep.mubr.f32.mxu1 %v360_v45 }
  0x3d   : > { %991 = vmatmul.mubr.f32.gmra.mrb[10].mxu0 %v345_v46 }
  0x3e   : > { %1015 = vmatmul.mubr.f32.gmra.mrb[10].mxu1 %v361_v47  ;;  %993 = vmatprep.mubr.f32.mxu0 %v346_v48 }
  0x3f   : > { %1017 = vmatprep.mubr.f32.mxu1 %v362_v49 }
  0x41   : > { %994 = vmatmul.mubr.f32.gmra.mrb[12].mxu0 %v347_v50 }
  0x42   : > { %1018 = vmatmul.mubr.f32.gmra.mrb[12].mxu1 %v363_v51  ;;  %996 = vmatprep.mubr.f32.mxu0 %v348_v52 }
  0x43   : > { %1020 = vmatprep.mubr.f32.mxu1 %v364_v53 }
  0x45   : > { %997 = vmatmul.mubr.f32.gmra.mrb[14].mxu0 %v349_v54 }
  0x46   : > { %1021 = vmatmul.mubr.f32.gmra.mrb[14].mxu1 %v365_v55 }
  0xfc   : > { %v977_v57 = vpop.f32.mrb[0].mxu0 }
  0xfd   : > { %v1001_v58 = vpop.f32.mrb[0].mxu1  ;;  %v608_v59 = vadd.f32 %v977_v57, %v1250_v56  ;;  %v448_v61 = vpop.f32.mrb[1].mxu0 }
  0xfe   : > { %v624_v60 = vadd.f32 %v1001_v58, %v1250_v56  ;;  %v528_v62 = vpop.f32.mrb[1].mxu1  ;;  %v607_v63 = vadd.f32 %v1250_v56, %v448_v61 }
  0xff   : > { %v623_v0 = vadd.f32 %v1250_v56, %v528_v62  ;;  %v707_v1 = vmax.f32 %v608_v59, 0.0 }
 0x100   : > { %v723_v2 = vmax.f32 %v624_v60, 0.0  ;;  %v706_v3 = vmax.f32 %v607_v63, 0.0  ;;  %v980_v5 = vpop.f32.mrb[2].mxu0 }
 0x101   : > { %v722_v4 = vmax.f32 %v623_v0, 0.0  ;;  %v1004_v6 = vpop.f32.mrb[2].mxu1  ;;  %739 = vst [vmem:[%s1259_s8 + $0x8] sm:$0xff] %v707_v1  ;;  %v610_v7 = vadd.f32 %v980_v5, %v1250_v56  ;;  %v458_v9 = vpop.f32.mrb[3].mxu0 }
 0x102   : > { %755 = vst [vmem:[%s1259_s8 + $0x88] sm:$0xff] %v723_v2  ;;  %v626_v8 = vadd.f32 %v1004_v6, %v1250_v56  ;;  %v538_v10 = vpop.f32.mrb[3].mxu1  ;;  %738 = vst [vmem:[%s1259_s8] sm:$0xff] %v706_v3  ;;  %v609_v11 = vadd.f32 %v1250_v56, %v458_v9 }
 0x103   : > { %754 = vst [vmem:[%s1259_s8 + $0x80] sm:$0xff] %v722_v4  ;;  %v625_v12 = vadd.f32 %v1250_v56, %v538_v10  ;;  %v709_v13 = vmax.f32 %v610_v7, 0.0 }
 0x104   : > { %v725_v14 = vmax.f32 %v626_v8, 0.0  ;;  %v708_v15 = vmax.f32 %v609_v11, 0.0  ;;  %v983_v17 = vpop.f32.mrb[4].mxu0 }
 0x105   : > { %v724_v16 = vmax.f32 %v625_v12, 0.0  ;;  %v1007_v18 = vpop.f32.mrb[4].mxu1  ;;  %741 = vst [vmem:[%s1259_s8 + $0x18] sm:$0xff] %v709_v13  ;;  %v612_v19 = vadd.f32 %v983_v17, %v1250_v56  ;;  %v468_v21 = vpop.f32.mrb[5].mxu0 }
 0x106   : > { %757 = vst [vmem:[%s1259_s8 + $0x98] sm:$0xff] %v725_v14  ;;  %v628_v20 = vadd.f32 %v1007_v18, %v1250_v56  ;;  %v548_v22 = vpop.f32.mrb[5].mxu1  ;;  %740 = vst [vmem:[%s1259_s8 + $0x10] sm:$0xff] %v708_v15  ;;  %v611_v23 = vadd.f32 %v1250_v56, %v468_v21 }
 0x107   : > { %756 = vst [vmem:[%s1259_s8 + $0x90] sm:$0xff] %v724_v16  ;;  %v627_v24 = vadd.f32 %v1250_v56, %v548_v22  ;;  %v711_v25 = vmax.f32 %v612_v19, 0.0 }
 0x108   : > { %v727_v26 = vmax.f32 %v628_v20, 0.0  ;;  %v710_v27 = vmax.f32 %v611_v23, 0.0  ;;  %v986_v29 = vpop.f32.mrb[6].mxu0 }
 0x109   : > { %v726_v28 = vmax.f32 %v627_v24, 0.0  ;;  %v1010_v30 = vpop.f32.mrb[6].mxu1  ;;  %743 = vst [vmem:[%s1259_s8 + $0x28] sm:$0xff] %v711_v25  ;;  %v614_v31 = vadd.f32 %v986_v29, %v1250_v56  ;;  %v478_v33 = vpop.f32.mrb[7].mxu0 }
 0x10a   : > { %759 = vst [vmem:[%s1259_s8 + $0xa8] sm:$0xff] %v727_v26  ;;  %v630_v32 = vadd.f32 %v1010_v30, %v1250_v56  ;;  %v558_v34 = vpop.f32.mrb[7].mxu1  ;;  %742 = vst [vmem:[%s1259_s8 + $0x20] sm:$0xff] %v710_v27  ;;  %v613_v35 = vadd.f32 %v1250_v56, %v478_v33 }
 0x10b   : > { %758 = vst [vmem:[%s1259_s8 + $0xa0] sm:$0xff] %v726_v28  ;;  %v629_v36 = vadd.f32 %v1250_v56, %v558_v34  ;;  %v713_v37 = vmax.f32 %v614_v31, 0.0 }
 0x10c   : > { %v729_v38 = vmax.f32 %v630_v32, 0.0  ;;  %v712_v39 = vmax.f32 %v613_v35, 0.0  ;;  %v989_v41 = vpop.f32.mrb[8].mxu0 }
 0x10d   : > { %v728_v40 = vmax.f32 %v629_v36, 0.0  ;;  %v1013_v42 = vpop.f32.mrb[8].mxu1  ;;  %745 = vst [vmem:[%s1259_s8 + $0x38] sm:$0xff] %v713_v37  ;;  %v616_v43 = vadd.f32 %v989_v41, %v1250_v56  ;;  %v488_v45 = vpop.f32.mrb[9].mxu0 }
 0x10e   : > { %761 = vst [vmem:[%s1259_s8 + $0xb8] sm:$0xff] %v729_v38  ;;  %v632_v44 = vadd.f32 %v1013_v42, %v1250_v56  ;;  %v568_v46 = vpop.f32.mrb[9].mxu1  ;;  %744 = vst [vmem:[%s1259_s8 + $0x30] sm:$0xff] %v712_v39  ;;  %v615_v47 = vadd.f32 %v1250_v56, %v488_v45 }
 0x10f   : > { %760 = vst [vmem:[%s1259_s8 + $0xb0] sm:$0xff] %v728_v40  ;;  %v631_v48 = vadd.f32 %v1250_v56, %v568_v46  ;;  %v715_v49 = vmax.f32 %v616_v43, 0.0 }
 0x110   : > { %v731_v50 = vmax.f32 %v632_v44, 0.0  ;;  %v714_v51 = vmax.f32 %v615_v47, 0.0  ;;  %v992_v53 = vpop.f32.mrb[10].mxu0 }
 0x111   : > { %v730_v52 = vmax.f32 %v631_v48, 0.0  ;;  %v1016_v54 = vpop.f32.mrb[10].mxu1  ;;  %747 = vst [vmem:[%s1259_s8 + $0x48] sm:$0xff] %v715_v49  ;;  %v618_v55 = vadd.f32 %v992_v53, %v1250_v56  ;;  %v498_v58 = vpop.f32.mrb[11].mxu0 }
 0x112   : > { %763 = vst [vmem:[%s1259_s8 + $0xc8] sm:$0xff] %v731_v50  ;;  %v634_v57 = vadd.f32 %v1016_v54, %v1250_v56  ;;  %v578_v59 = vpop.f32.mrb[11].mxu1  ;;  %746 = vst [vmem:[%s1259_s8 + $0x40] sm:$0xff] %v714_v51  ;;  %v617_v60 = vadd.f32 %v1250_v56, %v498_v58 }
 0x113   : > { %762 = vst [vmem:[%s1259_s8 + $0xc0] sm:$0xff] %v730_v52  ;;  %v633_v61 = vadd.f32 %v1250_v56, %v578_v59  ;;  %v717_v62 = vmax.f32 %v618_v55, 0.0 }
 0x114   : > { %v733_v63 = vmax.f32 %v634_v57, 0.0  ;;  %v716_v0 = vmax.f32 %v617_v60, 0.0  ;;  %v995_v2 = vpop.f32.mrb[12].mxu0 }
 0x115   : > { %v732_v1 = vmax.f32 %v633_v61, 0.0  ;;  %v1019_v3 = vpop.f32.mrb[12].mxu1  ;;  %749 = vst [vmem:[%s1259_s8 + $0x58] sm:$0xff] %v717_v62  ;;  %v620_v4 = vadd.f32 %v995_v2, %v1250_v56  ;;  %v508_v6 = vpop.f32.mrb[13].mxu0 }
 0x116   : > { %765 = vst [vmem:[%s1259_s8 + $0xd8] sm:$0xff] %v733_v63  ;;  %v636_v5 = vadd.f32 %v1019_v3, %v1250_v56  ;;  %v588_v7 = vpop.f32.mrb[13].mxu1  ;;  %748 = vst [vmem:[%s1259_s8 + $0x50] sm:$0xff] %v716_v0  ;;  %v619_v8 = vadd.f32 %v1250_v56, %v508_v6 }
 0x117   : > { %764 = vst [vmem:[%s1259_s8 + $0xd0] sm:$0xff] %v732_v1  ;;  %v635_v9 = vadd.f32 %v1250_v56, %v588_v7  ;;  %v719_v10 = vmax.f32 %v620_v4, 0.0 }
 0x118   : > { %v735_v11 = vmax.f32 %v636_v5, 0.0  ;;  %v718_v12 = vmax.f32 %v619_v8, 0.0  ;;  %v998_v14 = vpop.f32.mrb[14].mxu0 }
 0x119   : > { %v734_v13 = vmax.f32 %v635_v9, 0.0  ;;  %v1022_v15 = vpop.f32.mrb[14].mxu1  ;;  %751 = vst [vmem:[%s1259_s8 + $0x68] sm:$0xff] %v719_v10  ;;  %v622_v16 = vadd.f32 %v998_v14, %v1250_v56  ;;  %v518_v18 = vpop.f32.mrb[15].mxu0 }
 0x11a   : > { %767 = vst [vmem:[%s1259_s8 + $0xe8] sm:$0xff] %v735_v11  ;;  %v638_v17 = vadd.f32 %v1022_v15, %v1250_v56  ;;  %v598_v19 = vpop.f32.mrb[15].mxu1  ;;  %750 = vst [vmem:[%s1259_s8 + $0x60] sm:$0xff] %v718_v12  ;;  %v621_v20 = vadd.f32 %v1250_v56, %v518_v18 }
 0x11b   : > { %766 = vst [vmem:[%s1259_s8 + $0xe0] sm:$0xff] %v734_v13  ;;  %v637_v21 = vadd.f32 %v1250_v56, %v598_v19  ;;  %v721_v22 = vmax.f32 %v622_v16, 0.0 }
 0x11c   : > { %v737_v23 = vmax.f32 %v638_v17, 0.0  ;;  %v720_v24 = vmax.f32 %v621_v20, 0.0 }
 0x11d   : > { %v736_v25 = vmax.f32 %v637_v21, 0.0  ;;  %753 = vst [vmem:[%s1259_s8 + $0x78] sm:$0xff] %v721_v22 }
 0x11e   : > { %769 = vst [vmem:[%s1259_s8 + $0xf8] sm:$0xff] %v737_v23  ;;  %752 = vst [vmem:[%s1259_s8 + $0x70] sm:$0xff] %v720_v24 }
 0x11f   : > { %768 = vst [vmem:[%s1259_s8 + $0xf0] sm:$0xff] %v736_v25 }
 0x120 PF: > { %s13_s14 = sadd.s32 1, %s1117_s14   ;;  %s1336_s12 = smov %s1113_s13 }
 0x121   : > { %p10_p5 = scmp.ge.s32.totalorder %s13_s14, 4   ;;  %s1337_s13 = smov %s1339_s15 }
 0x123   :  { %12 = sbr.rel (!%p10_p5) target bundleno = 2 (0x2), region = 76 }

// kernel: head_forward.16
= control target key start
LH: loop header
LB: loop body
LE: loop exit
PB: predicated region body
PF: predicated region fallthrough
CT: control target
= control target key end

     0   :  { %s2438_s0 = inlined_call_operand.vmem [shape: f32[512,384], index: 0, kind: input, shape index: {}]   ;;  %s2439_s1 = inlined_call_operand.vmem [shape: f32[384,2304], index: 1, kind: input, shape index: {}]   ;;  %s2440_s2 = inlined_call_operand.vmem [shape: f32[1,2304], index: 2, kind: input, shape index: {}]   ;;  %s2441_s3 = inlined_call_operand.vmem [shape: f32[512,2304], index: 3, kind: output, shape index: {}]  }
   0x1   :  { %2444 = sst [smem:[#allocation8_spill]] %s2438_s0 }
   0x2   :  { %2445 = sst [smem:[#allocation9_spill]] %s2439_s1 }
   0x3   :  { %2446 = sst [smem:[#allocation10_spill]] %s2441_s3 }
   0x4   :  { %s1645_s12 = smov 0   ;;  %s1647_s13 = smov 0  }
   0x5   :  { %s1649_s14 = smov 0   ;;  %s1651_s15 = smov 0  }
   0x6   :  { %s1653_s16 = smov 0   ;;  %s1655_s17 = smov 0  }
   0x7   :  { %s1657_s18 = smov 0   ;;  %s1659_s19 = smov 0  }
   0x8   :  { %s1661_s20 = smov 0   ;;  %s1663_s21 = smov 0  }
   0x9   :  { %s1665_s22 = smov 0   ;;  %s1667_s23 = smov 0  }
   0xa   :  { %s1669_s24 = smov 0  }
   0xb LB: > { %2447 = sst [smem:[#allocation5_spill]] %s1606_s20  ;;  %s25_s26 = sadd.s32 1, %s1610_s21  ;;  %s1622_s24 = sphi %s1669_s24, %s13_s24   ;;  %s1618_s23 = sphi %s1667_s23, %s2472_s23   ;;  %s1614_s22 = sphi %s1665_s22, %s2471_s22   ;;  %s1610_s21 = sphi %s1663_s21, %s2470_s21   ;;  %s1606_s20 = sphi %s1661_s20, %s2469_s20   ;;  %s1602_s19 = sphi %s1659_s19, %s2468_s19   ;;  %s1598_s18 = sphi %s1657_s18, %s2467_s18   ;;  %s1594_s17 = sphi %s1655_s17, %s2466_s17   ;;  %s1590_s16 = sphi %s1653_s16, %s2465_s16   ;;  %s1586_s15 = sphi %s1651_s15, %s2464_s15   ;;  %s1582_s14 = sphi %s1649_s14, %s2463_s14   ;;  %s1578_s13 = sphi %s1647_s13, %s2462_s13   ;;  %s1574_s12 = sphi %s1645_s12, %s2461_s12  }
   0xc   : > { %p26_p0 = scmp.ge.s32.totalorder %s25_s26, 3  ;;  %s28_s27 = sadd.s32 1, %s1614_s22 }
   0xd   : > { %s32_s28 = sadd.s32 1, %s1618_s23  ;;  %s41_s29 = sadd.s32 1, %s1594_s17 }
   0xe   : > { %s2474_s26 = smov (%p26_p0, %s25_s26), 0  ;;  %s2476_s27 = smov (!%p26_p0, %s28_s27), %s1614_s22 }
   0xf   : > { %2448 = sst [smem:[#allocation6_spill]] %s2474_s26  ;;  %s37_s30 = ssub.s32 %s1610_s21, %s2474_s26 }
  0x10   : > { %p48_p1 = scmp.ne.s32.totalorder %s1594_s17, %s1590_s16  ;;  %p30_p2 = scmp.ge.s32.totalorder %s2476_s27, 9 }
  0x11   : > { %p49_p3 = scmp.eq.s32.totalorder %s1622_s24, 0  ;;  %s69_s4 = sadd.s32 1, %s1586_s15 }
  0x12   : > { %p76_p4 = scmp.ne.s32.totalorder %s1586_s15, %s1582_s14  ;;  %s2478_s27 = smov (%p30_p2, %s2476_s27), 0 }
  0x13   : > { %2449 = sst [smem:[#allocation7_spill]] %s2478_s27  ;;  %s2480_s28 = smov (!%p30_p2, %s32_s28), %s1618_s23 }
  0x14   : > { %p1729_p5 = por %p49_p3, %p48_p1  ;;  %s65_s6 = ssub.s32 %s1614_s22, %s2478_s27 }
  0x15   : > { %p34_p6 = scmp.ge.s32.totalorder %s2480_s28, 2  ;;  %s66_s7 = sor.u32 %s65_s6, %s37_s30 }
  0x16   : > { %p67_p7 = scmp.eq.s32.totalorder %s66_s7, 0  ;;  %p1735_p8 = por %p76_p4, %p49_p3 }
  0x17   : > { %s2482_s28 = smov (%p34_p6, %s2480_s28), 0  ;;  %s123_s11 = sadd.s32 1, %s1578_s13 }
  0x18   : > { %s1742_s9 = scalar_select %p67_p7, %s1586_s15, %s69_s4  }
  0x19   : > { %s36_s10 = ssub.s32 %s1618_s23, %s2482_s28  ;;  %p133_p11 = scmp.ne.s32.totalorder %s1578_s13, %s1574_s12 }
  0x1a   : > { %s38_s25 = sor.u32 %s37_s30, %s36_s10  ;;  %s120_s26 = sor.u32 %s65_s6, %s36_s10 }
  0x1b   : > { %p39_p9 = scmp.eq.s32.totalorder %s38_s25, 0  ;;  %p121_p10 = scmp.eq.s32.totalorder %s120_s26, 0 }
  0x1c   : > { %s2452_s27 = sadd.s32 4294967295, %s1622_s24   ;;  %p1341_p0 = scmp.ge.s32.totalorder %s1622_s24, 54 }
  0x1d   : > { %p134_p12 = scmp.eq.s32.totalorder %s2452_s27, 53 }
  0x1e   : > { %s1752_s3 = scalar_select %p39_p9, %s1594_s17, %s41_s29  }
  0x1f   : > { %s1755_s7 = scalar_select %p121_p10, %s1578_s13, %s123_s11  }
  0x20   : > { %p1757_p13 = por %p134_p12, %p133_p11  ;;  %156 = sbr.rel (%p1341_p0) target bundleno = 91 (0x5b), region = 16 }
  0x27   : > { %159 = sbr.rel (!%p1729_p5) target bundleno = 65 (0x41), region = 20  ;;  %s161_s25 = sand.u32 (%p1729_p5), 1, %s1594_s17  }
  0x28   : > { %s1412_s26 = smul.u32 (%p1729_p5), 96, %s1618_s23  ;;  %s1342_s27 = sshll.u32 (%p1729_p5), %s161_s25, 8 }
  0x29   : > { %s2454_s0 = sld [smem:[#allocation8_spill]] (%p1729_p5)  ;;  %s1775_s5 = scalar_lea.vmem (%p1729_p5), [#allocation2], %s1342_s27 }
  0x2a   : > { %s166_s29 = sadd.s32 (%p1729_p5), %s1610_s21, %s1412_s26 }
  0x2b   : > { %s1345_s30 = sshll.u32 (%p1729_p5), %s166_s29, 3 }
  0x2f   : > { %s1770_s10 = scalar_lea.vmem %s2454_s0, %s1345_s30 }
  0x30   : > { %v258_v0 = vld [vmem:[%s1770_s10] sm:$0xff]  ;;  %v260_v1 = vld [vmem:[%s1770_s10 + $0x18] sm:$0xff]  ;;  %v262_v2 = vld [vmem:[%s1770_s10 + $0x30] sm:$0xff] }
  0x31   : > { %259 = vst [vmem:[%s1775_s5] sm:$0xff] %v258_v0  ;;  %261 = vst [vmem:[%s1775_s5 + $0x8] sm:$0xff] %v260_v1  ;;  %v264_v3 = vld [vmem:[%s1770_s10 + $0x48] sm:$0xff]  ;;  %v266_v4 = vld [vmem:[%s1770_s10 + $0x60] sm:$0xff] }
  0x32   : > { %263 = vst [vmem:[%s1775_s5 + $0x10] sm:$0xff] %v262_v2  ;;  %v268_v5 = vld [vmem:[%s1770_s10 + $0x78] sm:$0xff]  ;;  %265 = vst [vmem:[%s1775_s5 + $0x18] sm:$0xff] %v264_v3  ;;  %v270_v6 = vld [vmem:[%s1770_s10 + $0x90] sm:$0xff] }
  0x33   : > { %267 = vst [vmem:[%s1775_s5 + $0x20] sm:$0xff] %v266_v4  ;;  %269 = vst [vmem:[%s1775_s5 + $0x28] sm:$0xff] %v268_v5  ;;  %v272_v7 = vld [vmem:[%s1770_s10 + $0xa8] sm:$0xff]  ;;  %v274_v8 = vld [vmem:[%s1770_s10 + $0xc0] sm:$0xff] }
  0x34   : > { %271 = vst [vmem:[%s1775_s5 + $0x30] sm:$0xff] %v270_v6  ;;  %273 = vst [vmem:[%s1775_s5 + $0x38] sm:$0xff] %v272_v7  ;;  %v276_v9 = vld [vmem:[%s1770_s10 + $0xd8] sm:$0xff]  ;;  %v278_v10 = vld [vmem:[%s1770_s10 + $0xf0] sm:$0xff] }
  0x35   : > { %275 = vst [vmem:[%s1775_s5 + $0x40] sm:$0xff] %v274_v8  ;;  %v280_v11 = vld [vmem:[%s1770_s10 + $0x108] sm:$0xff]  ;;  %277 = vst [vmem:[%s1775_s5 + $0x48] sm:$0xff] %v276_v9  ;;  %v282_v12 = vld [vmem:[%s1770_s10 + $0x120] sm:$0xff] }
  0x36   : > { %279 = vst [vmem:[%s1775_s5 + $0x50] sm:$0xff] %v278_v10  ;;  %281 = vst [vmem:[%s1775_s5 + $0x58] sm:$0xff] %v280_v11  ;;  %v284_v13 = vld [vmem:[%s1770_s10 + $0x138] sm:$0xff]  ;;  %v286_v14 = vld [vmem:[%s1770_s10 + $0x150] sm:$0xff] }
  0x37   : > { %283 = vst [vmem:[%s1775_s5 + $0x60] sm:$0xff] %v282_v12  ;;  %285 = vst [vmem:[%s1775_s5 + $0x68] sm:$0xff] %v284_v13  ;;  %v288_v15 = vld [vmem:[%s1770_s10 + $0x168] sm:$0xff]  ;;  %v290_v16 = vld [vmem:[%s1770_s10 + $0x180] sm:$0xff] }
  0x38   : > { %287 = vst [vmem:[%s1775_s5 + $0x70] sm:$0xff] %v286_v14  ;;  %v292_v17 = vld [vmem:[%s1770_s10 + $0x198] sm:$0xff]  ;;  %289 = vst [vmem:[%s1775_s5 + $0x78] sm:$0xff] %v288_v15  ;;  %v294_v18 = vld [vmem:[%s1770_s10 + $0x1b0] sm:$0xff] }
  0x39   : > { %291 = vst [vmem:[%s1775_s5 + $0x80] sm:$0xff] %v290_v16  ;;  %293 = vst [vmem:[%s1775_s5 + $0x88] sm:$0xff] %v292_v17  ;;  %v296_v19 = vld [vmem:[%s1770_s10 + $0x1c8] sm:$0xff]  ;;  %v298_v20 = vld [vmem:[%s1770_s10 + $0x1e0] sm:$0xff] }
  0x3a   : > { %295 = vst [vmem:[%s1775_s5 + $0x90] sm:$0xff] %v294_v18  ;;  %297 = vst [vmem:[%s1775_s5 + $0x98] sm:$0xff] %v296_v19  ;;  %v300_v21 = vld [vmem:[%s1770_s10 + $0x1f8] sm:$0xff]  ;;  %v302_v22 = vld [vmem:[%s1770_s10 + $0x210] sm:$0xff] }
  0x3b   : > { %299 = vst [vmem:[%s1775_s5 + $0xa0] sm:$0xff] %v298_v20  ;;  %v304_v23 = vld [vmem:[%s1770_s10 + $0x228] sm:$0xff]  ;;  %301 = vst [vmem:[%s1775_s5 + $0xa8] sm:$0xff] %v300_v21  ;;  %v306_v24 = vld [vmem:[%s1770_s10 + $0x240] sm:$0xff] }
  0x3c   : > { %303 = vst [vmem:[%s1775_s5 + $0xb0] sm:$0xff] %v302_v22  ;;  %305 = vst [vmem:[%s1775_s5 + $0xb8] sm:$0xff] %v304_v23  ;;  %v308_v25 = vld [vmem:[%s1770_s10 + $0x258] sm:$0xff]  ;;  %v310_v26 = vld [vmem:[%s1770_s10 + $0x270] sm:$0xff] }
  0x3d   : > { %307 = vst [vmem:[%s1775_s5 + $0xc0] sm:$0xff] %v306_v24  ;;  %309 = vst [vmem:[%s1775_s5 + $0xc8] sm:$0xff] %v308_v25  ;;  %v312_v27 = vld [vmem:[%s1770_s10 + $0x288] sm:$0xff]  ;;  %v314_v28 = vld [vmem:[%s1770_s10 + $0x2a0] sm:$0xff] }
  0x3e   : > { %311 = vst [vmem:[%s1775_s5 + $0xd0] sm:$0xff] %v310_v26  ;;  %v316_v29 = vld [vmem:[%s1770_s10 + $0x2b8] sm:$0xff]  ;;  %313 = vst [vmem:[%s1775_s5 + $0xd8] sm:$0xff] %v312_v27  ;;  %v318_v30 = vld [vmem:[%s1770_s10 + $0x2d0] sm:$0xff] }
  0x3f   : > { %315 = vst [vmem:[%s1775_s5 + $0xe0] sm:$0xff] %v314_v28  ;;  %317 = vst [vmem:[%s1775_s5 + $0xe8] sm:$0xff] %v316_v29  ;;  %v320_v31 = vld [vmem:[%s1770_s10 + $0x2e8] sm:$0xff] }
  0x40   : > { %319 = vst [vmem:[%s1775_s5 + $0xf0] sm:$0xff] %v318_v30  ;;  %321 = vst [vmem:[%s1775_s5 + $0xf8] sm:$0xff] %v320_v31 }
  0x41 PF: > { %327 = sbr.rel (!%p1735_p8) target bundleno = 91 (0x5b), region = 58  ;;  %s329_s11 = sand.u32 (%p1735_p8), 1, %s1586_s15  }
  0x42   : > { %s1348_s25 = sshll.u32 (%p1735_p8), %s1614_s22, 1  ;;  %s1346_s26 = sshll.u32 (%p1735_p8), %s329_s11, 8 }
  0x43   : > { %s1413_s27 = smul.u32 (%p1735_p8), 288, %s1610_s21  ;;  %s2455_s1 = sld [smem:[#allocation9_spill]] (%p1735_p8) }
  0x44   : > { %s1851_s8 = scalar_lea.vmem (%p1735_p8), [#allocation3], %s1346_s26 }
  0x45   : > { %s335_s29 = sadd.s32 (%p1735_p8), %s1413_s27, %s1348_s25 }
  0x46   : > { %s1350_s30 = sshll.u32 (%p1735_p8), %s335_s29, 3 }
  0x49   : > { %s1846_s0 = scalar_lea.vmem %s2455_s1, %s1350_s30 }
  0x4a   : > { %v350_v32 = vld [vmem:[%s1846_s0] sm:$0xff]  ;;  %v352_v33 = vld [vmem:[%s1846_s0 + $0x8] sm:$0xff]  ;;  %v354_v34 = vld [vmem:[%s1846_s0 + $0x90] sm:$0xff] }
  0x4b   : > { %351 = vst [vmem:[%s1851_s8] sm:$0xff] %v350_v32  ;;  %353 = vst [vmem:[%s1851_s8 + $0x8] sm:$0xff] %v352_v33  ;;  %v356_v35 = vld [vmem:[%s1846_s0 + $0x98] sm:$0xff]  ;;  %v358_v36 = vld [vmem:[%s1846_s0 + $0x120] sm:$0xff] }
  0x4c   : > { %355 = vst [vmem:[%s1851_s8 + $0x10] sm:$0xff] %v354_v34  ;;  %v360_v37 = vld [vmem:[%s1846_s0 + $0x128] sm:$0xff]  ;;  %357 = vst [vmem:[%s1851_s8 + $0x18] sm:$0xff] %v356_v35  ;;  %v362_v38 = vld [vmem:[%s1846_s0 + $0x1b0] sm:$0xff] }
  0x4d   : > { %359 = vst [vmem:[%s1851_s8 + $0x20] sm:$0xff] %v358_v36  ;;  %361 = vst [vmem:[%s1851_s8 + $0x28] sm:$0xff] %v360_v37  ;;  %v364_v39 = vld [vmem:[%s1846_s0 + $0x1b8] sm:$0xff]  ;;  %v366_v40 = vld [vmem:[%s1846_s0 + $0x240] sm:$0xff] }
  0x4e   : > { %363 = vst [vmem:[%s1851_s8 + $0x30] sm:$0xff] %v362_v38  ;;  %365 = vst [vmem:[%s1851_s8 + $0x38] sm:$0xff] %v364_v39  ;;  %v368_v41 = vld [vmem:[%s1846_s0 + $0x248] sm:$0xff]  ;;  %v370_v42 = vld [vmem:[%s1846_s0 + $0x2d0] sm:$0xff] }
  0x4f   : > { %367 = vst [vmem:[%s1851_s8 + $0x40] sm:$0xff] %v366_v40  ;;  %v372_v43 = vld [vmem:[%s1846_s0 + $0x2d8] sm:$0xff]  ;;  %369 = vst [vmem:[%s1851_s8 + $0x48] sm:$0xff] %v368_v41  ;;  %v374_v44 = vld [vmem:[%s1846_s0 + $0x360] sm:$0xff] }
  0x50   : > { %371 = vst [vmem:[%s1851_s8 + $0x50] sm:$0xff] %v370_v42  ;;  %373 = vst [vmem:[%s1851_s8 + $0x58] sm:$0xff] %v372_v43  ;;  %v376_v45 = vld [vmem:[%s1846_s0 + $0x368] sm:$0xff]  ;;  %v378_v46 = vld [vmem:[%s1846_s0 + $0x3f0] sm:$0xff] }
  0x51   : > { %375 = vst [vmem:[%s1851_s8 + $0x60] sm:$0xff] %v374_v44  ;;  %377 = vst [vmem:[%s1851_s8 + $0x68] sm:$0xff] %v376_v45  ;;  %v380_v47 = vld [vmem:[%s1846_s0 + $0x3f8] sm:$0xff]  ;;  %v382_v48 = vld [vmem:[%s1846_s0 + $0x480] sm:$0xff] }
  0x52   : > { %379 = vst [vmem:[%s1851_s8 + $0x70] sm:$0xff] %v378_v46  ;;  %v384_v49 = vld [vmem:[%s1846_s0 + $0x488] sm:$0xff]  ;;  %381 = vst [vmem:[%s1851_s8 + $0x78] sm:$0xff] %v380_v47  ;;  %v386_v50 = vld [vmem:[%s1846_s0 + $0x510] sm:$0xff] }
  0x53   : > { %383 = vst [vmem:[%s1851_s8 + $0x80] sm:$0xff] %v382_v48  ;;  %385 = vst [vmem:[%s1851_s8 + $0x88] sm:$0xff] %v384_v49  ;;  %v388_v51 = vld [vmem:[%s1846_s0 + $0x518] sm:$0xff]  ;;  %v390_v52 = vld [vmem:[%s1846_s0 + $0x5a0] sm:$0xff] }
  0x54   : > { %387 = vst [vmem:[%s1851_s8 + $0x90] sm:$0xff] %v386_v50  ;;  %389 = vst [vmem:[%s1851_s8 + $0x98] sm:$0xff] %v388_v51  ;;  %v392_v53 = vld [vmem:[%s1846_s0 + $0x5a8] sm:$0xff]  ;;  %v394_v54 = vld [vmem:[%s1846_s0 + $0x630] sm:$0xff] }
  0x55   : > { %391 = vst [vmem:[%s1851_s8 + $0xa0] sm:$0xff] %v390_v52  ;;  %v396_v55 = vld [vmem:[%s1846_s0 + $0x638] sm:$0xff]  ;;  %393 = vst [vmem:[%s1851_s8 + $0xa8] sm:$0xff] %v392_v53  ;;  %v398_v56 = vld [vmem:[%s1846_s0 + $0x6c0] sm:$0xff] }
  0x56   : > { %395 = vst [vmem:[%s1851_s8 + $0xb0] sm:$0xff] %v394_v54  ;;  %397 = vst [vmem:[%s1851_s8 + $0xb8] sm:$0xff] %v396_v55  ;;  %v400_v57 = vld [vmem:[%s1846_s0 + $0x6c8] sm:$0xff]  ;;  %v402_v58 = vld [vmem:[%s1846_s0 + $0x750] sm:$0xff] }
  0x57   : > { %399 = vst [vmem:[%s1851_s8 + $0xc0] sm:$0xff] %v398_v56  ;;  %401 = vst [vmem:[%s1851_s8 + $0xc8] sm:$0xff] %v400_v57  ;;  %v404_v59 = vld [vmem:[%s1846_s0 + $0x758] sm:$0xff]  ;;  %v406_v60 = vld [vmem:[%s1846_s0 + $0x7e0] sm:$0xff] }
  0x58   : > { %403 = vst [vmem:[%s1851_s8 + $0xd0] sm:$0xff] %v402_v58  ;;  %v408_v61 = vld [vmem:[%s1846_s0 + $0x7e8] sm:$0xff]  ;;  %405 = vst [vmem:[%s1851_s8 + $0xd8] sm:$0xff] %v404_v59  ;;  %v410_v62 = vld [vmem:[%s1846_s0 + $0x870] sm:$0xff] }
  0x59   : > { %407 = vst [vmem:[%s1851_s8 + $0xe0] sm:$0xff] %v406_v60  ;;  %409 = vst [vmem:[%s1851_s8 + $0xe8] sm:$0xff] %v408_v61  ;;  %v412_v63 = vld [vmem:[%s1846_s0 + $0x878] sm:$0xff] }
  0x5a   : > { %411 = vst [vmem:[%s1851_s8 + $0xf0] sm:$0xff] %v410_v62  ;;  %413 = vst [vmem:[%s1851_s8 + $0xf8] sm:$0xff] %v412_v63 }
  0x5b PF: > { %p1351_p1 = scmp.ge.s32.totalorder %s1622_s24, 1  ;;  %p426_p2 = scmp.lt.s32.totalorder %s1622_s24, 55 }
  0x5d   : > { %p427_p3 = pnand %p1351_p1, %p426_p2 }
  0x5e   : > { %s433_s10 = sand.u32 (!%p427_p3), 1, %s1590_s16   ;;  %s440_s5 = sand.u32 (!%p427_p3), 1, %s1582_s14  }
  0x5f   : > { %430 = sbr.rel (%p427_p3) target bundleno = 477 (0x1dd), region = 85  ;;  %s1352_s11 = sshll.u32 (!%p427_p3), %s433_s10, 8 }
  0x60   : > { %s1353_s25 = sshll.u32 (!%p427_p3), %s440_s5, 8  ;;  %s467_s26 = sand.u32 (!%p427_p3), 1, %s1574_s12  }
  0x61   : > { %s1920_s0 = sshll.u32 (!%p427_p3), %s1602_s19, 1  ;;  %s1354_s27 = sshll.u32 (!%p427_p3), %s467_s26, 9 }
  0x62   : > { %p474_p4 = scmp.lt.s32.totalorder (!%p427_p3), %s1920_s0, 17  ;;  %s1927_s8 = scalar_lea.vmem (!%p427_p3), [#allocation2], %s1352_s11 }
  0x63   : > { %s1929_s1 = scalar_lea.vmem (!%p427_p3), [#allocation3], %s1353_s25  ;;  %s1931_s16 = scalar_lea.vmem (!%p427_p3), [#allocation4], %s1354_s27 }
  0x64   : > { %p1356_p5 = scmp.ne.s32.totalorder (!%p427_p3), %s1598_s18, 0 }
  0x66   : > { %s475_s29 = scalar_select %p474_p4, %s1920_s0, 17 }
  0x67   : > { %483 = sbr.rel (%p1356_p5) target bundleno = 143 (0x8f), region = 97  ;;  %v486_v0 = vlaneseq (!%p1356_p5) }
  0x68   : > { %s476_s6 = scalar_lea.vmem %s2440_s2, %s475_s29 }
  0x69   : > { %v487_v1 = vshrl.u32 (!%p1356_p5), %v486_v0, 7  ;;  %v484_v2 = vld [vmem:[%s476_s6] sm:$0x3] (!%p1356_p5) }
  0x6b   : > { %v488_v3 = vsub.s32 (!%p1356_p5), 0, %v487_v1  ;;  %v492_v4 = vsub.s32 (!%p1356_p5), 1, %v487_v1 }
  0x6d   : > { %v489_v5 = vrot.slane (!%p1356_p5), %v484_v2, %v488_v3  ;;  %v1934_v6 = vrot.slane (!%p1356_p5), %v484_v2, %v492_v4 }
  0x6f   : > { %496 = vst [vmem:[%s1931_s16] sm:$0xff] %v489_v5  ;;  %498 = vst [vmem:[%s1931_s16 + $0x10] sm:$0xff] %v489_v5 }
  0x70   : > { %500 = vst [vmem:[%s1931_s16 + $0x20] sm:$0xff] %v489_v5  ;;  %502 = vst [vmem:[%s1931_s16 + $0x30] sm:$0xff] %v489_v5 }
  0x71   : > { %504 = vst [vmem:[%s1931_s16 + $0x40] sm:$0xff] %v489_v5  ;;  %506 = vst [vmem:[%s1931_s16 + $0x50] sm:$0xff] %v489_v5 }
  0x72   : > { %508 = vst [vmem:[%s1931_s16 + $0x60] sm:$0xff] %v489_v5  ;;  %510 = vst [vmem:[%s1931_s16 + $0x70] sm:$0xff] %v489_v5 }
  0x73   : > { %512 = vst [vmem:[%s1931_s16 + $0x80] sm:$0xff] %v489_v5  ;;  %514 = vst [vmem:[%s1931_s16 + $0x90] sm:$0xff] %v489_v5 }
  0x74   : > { %516 = vst [vmem:[%s1931_s16 + $0xa0] sm:$0xff] %v489_v5  ;;  %518 = vst [vmem:[%s1931_s16 + $0xb0] sm:$0xff] %v489_v5 }
  0x75   : > { %520 = vst [vmem:[%s1931_s16 + $0xc0] sm:$0xff] %v489_v5  ;;  %522 = vst [vmem:[%s1931_s16 + $0xd0] sm:$0xff] %v489_v5 }
  0x76   : > { %524 = vst [vmem:[%s1931_s16 + $0xe0] sm:$0xff] %v489_v5  ;;  %526 = vst [vmem:[%s1931_s16 + $0xf0] sm:$0xff] %v489_v5 }
  0x77   : > { %528 = vst [vmem:[%s1931_s16 + $0x100] sm:$0xff] %v489_v5  ;;  %530 = vst [vmem:[%s1931_s16 + $0x110] sm:$0xff] %v489_v5 }
  0x78   : > { %532 = vst [vmem:[%s1931_s16 + $0x120] sm:$0xff] %v489_v5  ;;  %534 = vst [vmem:[%s1931_s16 + $0x130] sm:$0xff] %v489_v5 }
  0x79   : > { %536 = vst [vmem:[%s1931_s16 + $0x140] sm:$0xff] %v489_v5  ;;  %538 = vst [vmem:[%s1931_s16 + $0x150] sm:$0xff] %v489_v5 }
  0x7a   : > { %540 = vst [vmem:[%s1931_s16 + $0x160] sm:$0xff] %v489_v5  ;;  %542 = vst [vmem:[%s1931_s16 + $0x170] sm:$0xff] %v489_v5 }
  0x7b   : > { %544 = vst [vmem:[%s1931_s16 + $0x180] sm:$0xff] %v489_v5  ;;  %546 = vst [vmem:[%s1931_s16 + $0x190] sm:$0xff] %v489_v5 }
  0x7c   : > { %548 = vst [vmem:[%s1931_s16 + $0x1a0] sm:$0xff] %v489_v5  ;;  %550 = vst [vmem:[%s1931_s16 + $0x1b0] sm:$0xff] %v489_v5 }
  0x7d   : > { %552 = vst [vmem:[%s1931_s16 + $0x1c0] sm:$0xff] %v489_v5  ;;  %554 = vst [vmem:[%s1931_s16 + $0x1d0] sm:$0xff] %v489_v5 }
  0x7e   : > { %556 = vst [vmem:[%s1931_s16 + $0x1e0] sm:$0xff] %v489_v5  ;;  %558 = vst [vmem:[%s1931_s16 + $0x1f0] sm:$0xff] %v489_v5 }
  0x7f   : > { %497 = vst [vmem:[%s1931_s16 + $0x8] sm:$0xff] %v1934_v6  ;;  %499 = vst [vmem:[%s1931_s16 + $0x18] sm:$0xff] %v1934_v6 }
  0x80   : > { %501 = vst [vmem:[%s1931_s16 + $0x28] sm:$0xff] %v1934_v6  ;;  %503 = vst [vmem:[%s1931_s16 + $0x38] sm:$0xff] %v1934_v6 }
  0x81   : > { %505 = vst [vmem:[%s1931_s16 + $0x48] sm:$0xff] %v1934_v6  ;;  %507 = vst [vmem:[%s1931_s16 + $0x58] sm:$0xff] %v1934_v6 }
  0x82   : > { %509 = vst [vmem:[%s1931_s16 + $0x68] sm:$0xff] %v1934_v6  ;;  %511 = vst [vmem:[%s1931_s16 + $0x78] sm:$0xff] %v1934_v6 }
  0x83   : > { %513 = vst [vmem:[%s1931_s16 + $0x88] sm:$0xff] %v1934_v6  ;;  %515 = vst [vmem:[%s1931_s16 + $0x98] sm:$0xff] %v1934_v6 }
  0x84   : > { %517 = vst [vmem:[%s1931_s16 + $0xa8] sm:$0xff] %v1934_v6  ;;  %519 = vst [vmem:[%s1931_s16 + $0xb8] sm:$0xff] %v1934_v6 }
  0x85   : > { %521 = vst [vmem:[%s1931_s16 + $0xc8] sm:$0xff] %v1934_v6  ;;  %523 = vst [vmem:[%s1931_s16 + $0xd8] sm:$0xff] %v1934_v6 }
  0x86   : > { %525 = vst [vmem:[%s1931_s16 + $0xe8] sm:$0xff] %v1934_v6  ;;  %527 = vst [vmem:[%s1931_s16 + $0xf8] sm:$0xff] %v1934_v6 }
  0x87   : > { %529 = vst [vmem:[%s1931_s16 + $0x108] sm:$0xff] %v1934_v6  ;;  %531 = vst [vmem:[%s1931_s16 + $0x118] sm:$0xff] %v1934_v6 }
  0x88   : > { %533 = vst [vmem:[%s1931_s16 + $0x128] sm:$0xff] %v1934_v6  ;;  %535 = vst [vmem:[%s1931_s16 + $0x138] sm:$0xff] %v1934_v6 }
  0x89   : > { %537 = vst [vmem:[%s1931_s16 + $0x148] sm:$0xff] %v1934_v6  ;;  %539 = vst [vmem:[%s1931_s16 + $0x158] sm:$0xff] %v1934_v6 }
  0x8a   : > { %541 = vst [vmem:[%s1931_s16 + $0x168] sm:$0xff] %v1934_v6  ;;  %543 = vst [vmem:[%s1931_s16 + $0x178] sm:$0xff] %v1934_v6 }
  0x8b   : > { %545 = vst [vmem:[%s1931_s16 + $0x188] sm:$0xff] %v1934_v6  ;;  %547 = vst [vmem:[%s1931_s16 + $0x198] sm:$0xff] %v1934_v6 }
  0x8c   : > { %549 = vst [vmem:[%s1931_s16 + $0x1a8] sm:$0xff] %v1934_v6  ;;  %551 = vst [vmem:[%s1931_s16 + $0x1b8] sm:$0xff] %v1934_v6 }
  0x8d   : > { %553 = vst [vmem:[%s1931_s16 + $0x1c8] sm:$0xff] %v1934_v6  ;;  %555 = vst [vmem:[%s1931_s16 + $0x1d8] sm:$0xff] %v1934_v6 }
  0x8e   : > { %557 = vst [vmem:[%s1931_s16 + $0x1e8] sm:$0xff] %v1934_v6  ;;  %559 = vst [vmem:[%s1931_s16 + $0x1f8] sm:$0xff] %v1934_v6 }
  0x8f PF: > { %v657_v7 = vld [vmem:[%s1929_s1 + $0x8] sm:$0xff]  ;;  %v659_v8 = vld [vmem:[%s1929_s1 + $0x18] sm:$0xff]  ;;  %v656_v9 = vld [vmem:[%s1929_s1] sm:$0xff]  ;;  %v1624_v14 = vmov 0.0   ;;  %s2457_s10 = sld [smem:[#allocation10_spill]] (%p1757_p13) }
  0x90   : > { %v1364_v10 = vpack.c.bf16 %v659_v8, %v657_v7  ;;  %v658_v11 = vld [vmem:[%s1929_s1 + $0x10] sm:$0xff]  ;;  %v661_v12 = vld [vmem:[%s1929_s1 + $0x28] sm:$0xff]  ;;  %v663_v13 = vld [vmem:[%s1929_s1 + $0x38] sm:$0xff]  ;;  %752 = vmatprep.mubr.f32.mxu0 %v1624_v14  ;;  %848 = vmatprep.mubr.f32.mxu1 %v1624_v14 }
  0x91   : > { %v1366_v15 = vpack.c.bf16 %v658_v11, %v656_v9  ;;  %v1368_v16 = vpack.c.bf16 %v663_v13, %v661_v12  ;;  %v660_v17 = vld [vmem:[%s1929_s1 + $0x20] sm:$0xff]  ;;  %v662_v18 = vld [vmem:[%s1929_s1 + $0x30] sm:$0xff]  ;;  %v665_v19 = vld [vmem:[%s1929_s1 + $0x48] sm:$0xff] }
  0x92   : > { %1365 = vmatprep.subr.bf16.mxu0 %v1364_v10  ;;  %1396 = vmatprep.subr.bf16.mxu1 %v1364_v10  ;;  %v667_v20 = vld [vmem:[%s1929_s1 + $0x58] sm:$0xff]  ;;  %v1370_v21 = vpack.c.bf16 %v662_v18, %v660_v17  ;;  %v664_v23 = vld [vmem:[%s1929_s1 + $0x40] sm:$0xff]  ;;  %v666_v24 = vld [vmem:[%s1929_s1 + $0x50] sm:$0xff] }
  0x93   : > { %1367 = vmatpush1.bf16.msra.mxu0 %v1366_v15  ;;  %1404 = vmatpush1.bf16.msra.mxu1 %v1366_v15  ;;  %v1372_v22 = vpack.c.bf16 %v667_v20, %v665_v19  ;;  %v669_v25 = vld [vmem:[%s1929_s1 + $0x68] sm:$0xff]  ;;  %v671_v26 = vld [vmem:[%s1929_s1 + $0x78] sm:$0xff]  ;;  %v1374_v27 = vpack.c.bf16 %v666_v24, %v664_v23  ;;  %v668_v29 = vld [vmem:[%s1929_s1 + $0x60] sm:$0xff] }
  0x94   : > { %1369 = vmatprep.subr.bf16.mxu0 %v1368_v16  ;;  %1397 = vmatprep.subr.bf16.mxu1 %v1368_v16  ;;  %v1376_v28 = vpack.c.bf16 %v671_v26, %v669_v25  ;;  %v670_v30 = vld [vmem:[%s1929_s1 + $0x70] sm:$0xff]  ;;  %v673_v31 = vld [vmem:[%s1929_s1 + $0x88] sm:$0xff]  ;;  %v675_v32 = vld [vmem:[%s1929_s1 + $0x98] sm:$0xff] }
  0x95   : > { %v1378_v33 = vpack.c.bf16 %v670_v30, %v668_v29  ;;  %v1380_v34 = vpack.c.bf16 %v675_v32, %v673_v31  ;;  %v672_v35 = vld [vmem:[%s1929_s1 + $0x80] sm:$0xff]  ;;  %v674_v36 = vld [vmem:[%s1929_s1 + $0x90] sm:$0xff]  ;;  %v677_v37 = vld [vmem:[%s1929_s1 + $0xa8] sm:$0xff] }
  0x96   : > { %v679_v38 = vld [vmem:[%s1929_s1 + $0xb8] sm:$0xff]  ;;  %v1382_v39 = vpack.c.bf16 %v674_v36, %v672_v35  ;;  %v676_v41 = vld [vmem:[%s1929_s1 + $0xa0] sm:$0xff]  ;;  %v678_v42 = vld [vmem:[%s1929_s1 + $0xb0] sm:$0xff] }
  0x97   : > { %1371 = vmatpush1.bf16.msra.mxu0 %v1370_v21  ;;  %1405 = vmatpush1.bf16.msra.mxu1 %v1370_v21  ;;  %v1384_v40 = vpack.c.bf16 %v679_v38, %v677_v37  ;;  %v681_v43 = vld [vmem:[%s1929_s1 + $0xc8] sm:$0xff]  ;;  %v683_v44 = vld [vmem:[%s1929_s1 + $0xd8] sm:$0xff]  ;;  %v1386_v45 = vpack.c.bf16 %v678_v42, %v676_v41  ;;  %v680_v47 = vld [vmem:[%s1929_s1 + $0xc0] sm:$0xff] }
  0x98   : > { %1373 = vmatprep.subr.bf16.mxu0 %v1372_v22  ;;  %1398 = vmatprep.subr.bf16.mxu1 %v1372_v22  ;;  %v1388_v46 = vpack.c.bf16 %v683_v44, %v681_v43  ;;  %v682_v48 = vld [vmem:[%s1929_s1 + $0xd0] sm:$0xff]  ;;  %v685_v49 = vld [vmem:[%s1929_s1 + $0xe8] sm:$0xff]  ;;  %v687_v50 = vld [vmem:[%s1929_s1 + $0xf8] sm:$0xff] }
  0x99   : > { %v1390_v51 = vpack.c.bf16 %v682_v48, %v680_v47  ;;  %v1392_v52 = vpack.c.bf16 %v687_v50, %v685_v49  ;;  %v684_v53 = vld [vmem:[%s1929_s1 + $0xe0] sm:$0xff]  ;;  %v686_v54 = vld [vmem:[%s1929_s1 + $0xf0] sm:$0xff]  ;;  %v625_v58 = vld [vmem:[%s1927_s8 + $0x8] sm:$0xff]  ;;  %s2456_s1 = sld [smem:[#allocation5_spill]] (%p1757_p13) }
  0x9a   : > { %v1394_v55 = vpack.c.bf16 %v686_v54, %v684_v53  ;;  %v624_v56 = vld [vmem:[%s1927_s8] sm:$0xff]  ;;  %v641_v59 = vld [vmem:[%s1927_s8 + $0x88] sm:$0xff]  ;;  %v626_v60 = vld [vmem:[%s1927_s8 + $0x10] sm:$0xff] }
  0x9b   : > { %1375 = vmatpush1.bf16.msra.mxu0 %v1374_v27  ;;  %1406 = vmatpush1.bf16.msra.mxu1 %v1374_v27  ;;  %v640_v57 = vld [vmem:[%s1927_s8 + $0x80] sm:$0xff]  ;;  %v642_v61 = vld [vmem:[%s1927_s8 + $0x90] sm:$0xff]  ;;  %v627_v62 = vld [vmem:[%s1927_s8 + $0x18] sm:$0xff] }
  0x9c   : > { %1377 = vmatprep.subr.bf16.mxu0 %v1376_v28  ;;  %1399 = vmatprep.subr.bf16.mxu1 %v1376_v28  ;;  %v643_v63 = vld [vmem:[%s1927_s8 + $0x98] sm:$0xff]  ;;  %v628_v0 = vld [vmem:[%s1927_s8 + $0x20] sm:$0xff]  ;;  %v629_v2 = vld [vmem:[%s1927_s8 + $0x28] sm:$0xff] }
  0x9d   : > { %v644_v1 = vld [vmem:[%s1927_s8 + $0xa0] sm:$0xff]  ;;  %v645_v3 = vld [vmem:[%s1927_s8 + $0xa8] sm:$0xff]  ;;  %v630_v4 = vld [vmem:[%s1927_s8 + $0x30] sm:$0xff] }
  0x9e   : > { %v646_v5 = vld [vmem:[%s1927_s8 + $0xb0] sm:$0xff]  ;;  %v631_v6 = vld [vmem:[%s1927_s8 + $0x38] sm:$0xff]  ;;  %v632_v8 = vld [vmem:[%s1927_s8 + $0x40] sm:$0xff] }
  0x9f   : > { %1379 = vmatpush1.bf16.msra.mxu0 %v1378_v33  ;;  %1407 = vmatpush1.bf16.msra.mxu1 %v1378_v33  ;;  %v647_v7 = vld [vmem:[%s1927_s8 + $0xb8] sm:$0xff]  ;;  %v648_v9 = vld [vmem:[%s1927_s8 + $0xc0] sm:$0xff]  ;;  %v633_v10 = vld [vmem:[%s1927_s8 + $0x48] sm:$0xff]  ;;  %s1414_s12 = smul.u32 (%p1757_p13), 576, %s2456_s1 }
  0xa0   : > { %1381 = vmatprep.subr.bf16.mxu0 %v1380_v34  ;;  %1400 = vmatprep.subr.bf16.mxu1 %v1380_v34  ;;  %v649_v11 = vld [vmem:[%s1927_s8 + $0xc8] sm:$0xff]  ;;  %v634_v12 = vld [vmem:[%s1927_s8 + $0x50] sm:$0xff]  ;;  %v635_v15 = vld [vmem:[%s1927_s8 + $0x58] sm:$0xff] }
  0xa1   : > { %v650_v13 = vld [vmem:[%s1927_s8 + $0xd0] sm:$0xff]  ;;  %v651_v16 = vld [vmem:[%s1927_s8 + $0xd8] sm:$0xff]  ;;  %v636_v17 = vld [vmem:[%s1927_s8 + $0x60] sm:$0xff]  ;;  %s1083_s14 = sadd.s32 (%p1757_p13), %s1414_s12, %s1920_s0 }
  0xa2   : > { %v652_v18 = vld [vmem:[%s1927_s8 + $0xe0] sm:$0xff]  ;;  %v637_v19 = vld [vmem:[%s1927_s8 + $0x68] sm:$0xff]  ;;  %v638_v21 = vld [vmem:[%s1927_s8 + $0x70] sm:$0xff]  ;;  %s1361_s18 = sshll.u32 (%p1757_p13), %s1083_s14, 3 }
  0xa3   : > { %1383 = vmatpush1.bf16.msra.mxu0 %v1382_v39  ;;  %1408 = vmatpush1.bf16.msra.mxu1 %v1382_v39  ;;  %v653_v20 = vld [vmem:[%s1927_s8 + $0xe8] sm:$0xff]  ;;  %v654_v22 = vld [vmem:[%s1927_s8 + $0xf0] sm:$0xff]  ;;  %v639_v23 = vld [vmem:[%s1927_s8 + $0x78] sm:$0xff]  ;;  %s2275_s5 = scalar_lea.vmem (%p1757_p13), %s2457_s10, %s1361_s18 }
  0xa4   : > { %1385 = vmatprep.subr.bf16.mxu0 %v1384_v40  ;;  %1401 = vmatprep.subr.bf16.mxu1 %v1384_v40  ;;  %v655_v24 = vld [vmem:[%s1927_s8 + $0xf8] sm:$0xff]  ;;  %v560_v25 = vld [vmem:[%s1931_s16] sm:$0xff]  ;;  %v561_v27 = vld [vmem:[%s1931_s16 + $0x8] sm:$0xff] }
  0xa5   : > { %v592_v26 = vld [vmem:[%s1931_s16 + $0x100] sm:$0xff]  ;;  %v593_v28 = vld [vmem:[%s1931_s16 + $0x108] sm:$0xff]  ;;  %v562_v36 = vld [vmem:[%s1931_s16 + $0x10] sm:$0xff] }
  0xa6   : > { %v594_v37 = vld [vmem:[%s1931_s16 + $0x110] sm:$0xff]  ;;  %v563_v38 = vld [vmem:[%s1931_s16 + $0x18] sm:$0xff]  ;;  %v564_v48 = vld [vmem:[%s1931_s16 + $0x20] sm:$0xff] }
  0xa7   : > { %1387 = vmatpush1.bf16.msra.mxu0 %v1386_v45  ;;  %1409 = vmatpush1.bf16.msra.mxu1 %v1386_v45  ;;  %v595_v39 = vld [vmem:[%s1931_s16 + $0x118] sm:$0xff]  ;;  %v596_v49 = vld [vmem:[%s1931_s16 + $0x120] sm:$0xff]  ;;  %v565_v50 = vld [vmem:[%s1931_s16 + $0x28] sm:$0xff] }
  0xa8   : > { %1389 = vmatprep.subr.bf16.mxu0 %v1388_v46  ;;  %1402 = vmatprep.subr.bf16.mxu1 %v1388_v46 }
  0xab   : > { %1391 = vmatpush1.bf16.msra.mxu0 %v1390_v51  ;;  %1410 = vmatpush1.bf16.msra.mxu1 %v1390_v51  ;;  %v597_v51 = vld [vmem:[%s1931_s16 + $0x128] sm:$0xff] }
  0xac   : > { %1393 = vmatprep.subr.bf16.mxu0 %v1392_v52  ;;  %1403 = vmatprep.subr.bf16.mxu1 %v1392_v52 }
  0xaf   : > { %1395 = vmatpush1.bf16.msra.mxu0 %v1394_v55  ;;  %1411 = vmatpush1.bf16.msra.mxu1 %v1394_v55 }
  0xb2   : > { %753 = vmatmul.mubr.f32.vlgmr.msra.gmra.mrb[0].mxu0 %v624_v56  ;;  %849 = vmatmul.mubr.f32.vlgmr.msra.gmra.mrb[0].mxu1 %v640_v57 }
  0xb3   : > { %758 = vmatprep.mubr.f32.mxu0 %v1624_v14  ;;  %854 = vmatprep.mubr.f32.mxu1 %v1624_v14 }
  0xb6   : > { %759 = vmatmul.mubr.f32.gmra.mrb[2].mxu0 %v625_v58  ;;  %855 = vmatmul.mubr.f32.gmra.mrb[2].mxu1 %v641_v59 }
  0xb7   : > { %764 = vmatprep.mubr.f32.mxu0 %v1624_v14  ;;  %860 = vmatprep.mubr.f32.mxu1 %v1624_v14 }
  0xba   : > { %765 = vmatmul.mubr.f32.gmra.mrb[4].mxu0 %v626_v60  ;;  %861 = vmatmul.mubr.f32.gmra.mrb[4].mxu1 %v642_v61  ;;  %v566_v60 = vld [vmem:[%s1931_s16 + $0x30] sm:$0xff] }
  0xbb   : > { %770 = vmatprep.mubr.f32.mxu0 %v1624_v14  ;;  %866 = vmatprep.mubr.f32.mxu1 %v1624_v14  ;;  %v598_v61 = vld [vmem:[%s1931_s16 + $0x130] sm:$0xff] }
  0xbe   : > { %771 = vmatmul.mubr.f32.gmra.mrb[6].mxu0 %v627_v62  ;;  %867 = vmatmul.mubr.f32.gmra.mrb[6].mxu1 %v643_v63  ;;  %v567_v62 = vld [vmem:[%s1931_s16 + $0x38] sm:$0xff] }
  0xbf   : > { %776 = vmatprep.mubr.f32.mxu0 %v1624_v14  ;;  %872 = vmatprep.mubr.f32.mxu1 %v1624_v14  ;;  %v599_v63 = vld [vmem:[%s1931_s16 + $0x138] sm:$0xff] }
  0xc2   : > { %777 = vmatmul.mubr.f32.gmra.mrb[8].mxu0 %v628_v0  ;;  %873 = vmatmul.mubr.f32.gmra.mrb[8].mxu1 %v644_v1 }
  0xc3   : > { %782 = vmatprep.mubr.f32.mxu0 %v1624_v14  ;;  %878 = vmatprep.mubr.f32.mxu1 %v1624_v14 }
  0xc6   : > { %783 = vmatmul.mubr.f32.gmra.mrb[10].mxu0 %v629_v2  ;;  %879 = vmatmul.mubr.f32.gmra.mrb[10].mxu1 %v645_v3 }
  0xc7   : > { %788 = vmatprep.mubr.f32.mxu0 %v1624_v14  ;;  %884 = vmatprep.mubr.f32.mxu1 %v1624_v14 }
  0xca   : > { %789 = vmatmul.mubr.f32.gmra.mrb[12].mxu0 %v630_v4  ;;  %885 = vmatmul.mubr.f32.gmra.mrb[12].mxu1 %v646_v5 }
  0xcb   : > { %794 = vmatprep.mubr.f32.mxu0 %v1624_v14  ;;  %890 = vmatprep.mubr.f32.mxu1 %v1624_v14 }
  0xce   : > { %795 = vmatmul.mubr.f32.gmra.mrb[14].mxu0 %v631_v6  ;;  %891 = vmatmul.mubr.f32.gmra.mrb[14].mxu1 %v647_v7 }
  0xcf   : > { %800 = vmatprep.mubr.f32.mxu0 %v1624_v14  ;;  %896 = vmatprep.mubr.f32.mxu1 %v1624_v14 }
  0xd2   : > { %801 = vmatmul.mubr.f32.gmra.mrb[16].mxu0 %v632_v8  ;;  %897 = vmatmul.mubr.f32.gmra.mrb[16].mxu1 %v648_v9  ;;  %v568_v8 = vld [vmem:[%s1931_s16 + $0x40] sm:$0xff] }
  0xd3   : > { %806 = vmatprep.mubr.f32.mxu0 %v1624_v14  ;;  %902 = vmatprep.mubr.f32.mxu1 %v1624_v14  ;;  %v600_v9 = vld [vmem:[%s1931_s16 + $0x140] sm:$0xff] }
  0xd6   : > { %807 = vmatmul.mubr.f32.gmra.mrb[18].mxu0 %v633_v10  ;;  %903 = vmatmul.mubr.f32.gmra.mrb[18].mxu1 %v649_v11  ;;  %v569_v10 = vld [vmem:[%s1931_s16 + $0x48] sm:$0xff] }
  0xd7   : > { %812 = vmatprep.mubr.f32.mxu0 %v1624_v14  ;;  %908 = vmatprep.mubr.f32.mxu1 %v1624_v14  ;;  %v601_v11 = vld [vmem:[%s1931_s16 + $0x148] sm:$0xff] }
  0xda   : > { %813 = vmatmul.mubr.f32.gmra.mrb[20].mxu0 %v634_v12  ;;  %909 = vmatmul.mubr.f32.gmra.mrb[20].mxu1 %v650_v13 }
  0xdb   : > { %818 = vmatprep.mubr.f32.mxu0 %v1624_v14  ;;  %914 = vmatprep.mubr.f32.mxu1 %v1624_v14 }
  0xde   : > { %819 = vmatmul.mubr.f32.gmra.mrb[22].mxu0 %v635_v15  ;;  %915 = vmatmul.mubr.f32.gmra.mrb[22].mxu1 %v651_v16 }
  0xdf   : > { %824 = vmatprep.mubr.f32.mxu0 %v1624_v14  ;;  %920 = vmatprep.mubr.f32.mxu1 %v1624_v14 }
  0xe2   : > { %825 = vmatmul.mubr.f32.gmra.mrb[24].mxu0 %v636_v17  ;;  %921 = vmatmul.mubr.f32.gmra.mrb[24].mxu1 %v652_v18 }
  0xe3   : > { %830 = vmatprep.mubr.f32.mxu0 %v1624_v14  ;;  %926 = vmatprep.mubr.f32.mxu1 %v1624_v14 }
  0xe6   : > { %831 = vmatmul.mubr.f32.gmra.mrb[26].mxu0 %v637_v19  ;;  %927 = vmatmul.mubr.f32.gmra.mrb[26].mxu1 %v653_v20 }
  0xe7   : > { %836 = vmatprep.mubr.f32.mxu0 %v1624_v14  ;;  %932 = vmatprep.mubr.f32.mxu1 %v1624_v14 }
  0xea   : > { %837 = vmatmul.mubr.f32.gmra.mrb[28].mxu0 %v638_v21  ;;  %933 = vmatmul.mubr.f32.gmra.mrb[28].mxu1 %v654_v22  ;;  %v570_v21 = vld [vmem:[%s1931_s16 + $0x50] sm:$0xff] }
  0xeb   : > { %842 = vmatprep.mubr.f32.mxu0 %v1624_v14  ;;  %938 = vmatprep.mubr.f32.mxu1 %v1624_v14  ;;  %v602_v22 = vld [vmem:[%s1931_s16 + $0x150] sm:$0xff] }
  0xee   : > { %843 = vmatmul.mubr.f32.gmra.mrb[30].mxu0 %v639_v23  ;;  %939 = vmatmul.mubr.f32.gmra.mrb[30].mxu1 %v655_v24  ;;  %v571_v23 = vld [vmem:[%s1931_s16 + $0x58] sm:$0xff] }
  0xef   : > { %v603_v24 = vld [vmem:[%s1931_s16 + $0x158] sm:$0xff] }
 0x185   : > { %v754_v29 = vpop.f32.mrb[0].mxu0  ;;  %v850_v30 = vpop.f32.mrb[0].mxu1 }
 0x186   : > { %v945_v31 = vadd.f32 %v754_v29, %v560_v25  ;;  %v977_v14 = vadd.f32 %v850_v30, %v592_v26  ;;  %v756_v32 = vpop.f32.mrb[1].mxu0  ;;  %v852_v33 = vpop.f32.mrb[1].mxu1 }
 0x187   : > { %v946_v34 = vadd.f32 %v756_v32, %v561_v27  ;;  %v978_v35 = vadd.f32 %v852_v33, %v593_v28  ;;  %v572_v32 = vld [vmem:[%s1931_s16 + $0x60] sm:$0xff] }
 0x188   : > { %1009 = vst [vmem:[%s1931_s16] sm:$0xff] %v945_v31  ;;  %1041 = vst [vmem:[%s1931_s16 + $0x100] sm:$0xff] %v977_v14  ;;  %v604_v33 = vld [vmem:[%s1931_s16 + $0x160] sm:$0xff] }
 0x189   : > { %1010 = vst [vmem:[%s1931_s16 + $0x8] sm:$0xff] %v946_v34  ;;  %1042 = vst [vmem:[%s1931_s16 + $0x108] sm:$0xff] %v978_v35  ;;  %v760_v40 = vpop.f32.mrb[2].mxu0  ;;  %v856_v41 = vpop.f32.mrb[2].mxu1  ;;  %v573_v34 = vld [vmem:[%s1931_s16 + $0x68] sm:$0xff] }
 0x18a   : > { %v947_v42 = vadd.f32 %v760_v40, %v562_v36  ;;  %v979_v43 = vadd.f32 %v856_v41, %v594_v37  ;;  %v762_v44 = vpop.f32.mrb[3].mxu0  ;;  %v858_v45 = vpop.f32.mrb[3].mxu1  ;;  %v605_v35 = vld [vmem:[%s1931_s16 + $0x168] sm:$0xff] }
 0x18b   : > { %v948_v46 = vadd.f32 %v762_v44, %v563_v38  ;;  %v980_v47 = vadd.f32 %v858_v45, %v595_v39  ;;  %v574_v44 = vld [vmem:[%s1931_s16 + $0x70] sm:$0xff] }
 0x18c   : > { %1011 = vst [vmem:[%s1931_s16 + $0x10] sm:$0xff] %v947_v42  ;;  %1043 = vst [vmem:[%s1931_s16 + $0x110] sm:$0xff] %v979_v43  ;;  %v606_v45 = vld [vmem:[%s1931_s16 + $0x170] sm:$0xff] }
 0x18d   : > { %1012 = vst [vmem:[%s1931_s16 + $0x18] sm:$0xff] %v948_v46  ;;  %1044 = vst [vmem:[%s1931_s16 + $0x118] sm:$0xff] %v980_v47  ;;  %v766_v52 = vpop.f32.mrb[4].mxu0  ;;  %v862_v53 = vpop.f32.mrb[4].mxu1  ;;  %v575_v46 = vld [vmem:[%s1931_s16 + $0x78] sm:$0xff] }
 0x18e   : > { %v949_v54 = vadd.f32 %v766_v52, %v564_v48  ;;  %v981_v55 = vadd.f32 %v862_v53, %v596_v49  ;;  %v768_v56 = vpop.f32.mrb[5].mxu0  ;;  %v864_v57 = vpop.f32.mrb[5].mxu1  ;;  %v607_v47 = vld [vmem:[%s1931_s16 + $0x178] sm:$0xff] }
 0x18f   : > { %v950_v58 = vadd.f32 %v768_v56, %v565_v50  ;;  %v982_v59 = vadd.f32 %v864_v57, %v597_v51  ;;  %v576_v56 = vld [vmem:[%s1931_s16 + $0x80] sm:$0xff] }
 0x190   : > { %1013 = vst [vmem:[%s1931_s16 + $0x20] sm:$0xff] %v949_v54  ;;  %1045 = vst [vmem:[%s1931_s16 + $0x120] sm:$0xff] %v981_v55  ;;  %v608_v57 = vld [vmem:[%s1931_s16 + $0x180] sm:$0xff] }
 0x191   : > { %1014 = vst [vmem:[%s1931_s16 + $0x28] sm:$0xff] %v950_v58  ;;  %1046 = vst [vmem:[%s1931_s16 + $0x128] sm:$0xff] %v982_v59  ;;  %v772_v0 = vpop.f32.mrb[6].mxu0  ;;  %v868_v1 = vpop.f32.mrb[6].mxu1  ;;  %v577_v58 = vld [vmem:[%s1931_s16 + $0x88] sm:$0xff] }
 0x192   : > { %v951_v2 = vadd.f32 %v772_v0, %v566_v60  ;;  %v983_v3 = vadd.f32 %v868_v1, %v598_v61  ;;  %v774_v4 = vpop.f32.mrb[7].mxu0  ;;  %v870_v5 = vpop.f32.mrb[7].mxu1  ;;  %v609_v59 = vld [vmem:[%s1931_s16 + $0x188] sm:$0xff] }
 0x193   : > { %v952_v6 = vadd.f32 %v774_v4, %v567_v62  ;;  %v984_v7 = vadd.f32 %v870_v5, %v599_v63  ;;  %v578_v4 = vld [vmem:[%s1931_s16 + $0x90] sm:$0xff] }
 0x194   : > { %1015 = vst [vmem:[%s1931_s16 + $0x30] sm:$0xff] %v951_v2  ;;  %1047 = vst [vmem:[%s1931_s16 + $0x130] sm:$0xff] %v983_v3  ;;  %v610_v5 = vld [vmem:[%s1931_s16 + $0x190] sm:$0xff] }
 0x195   : > { %1016 = vst [vmem:[%s1931_s16 + $0x38] sm:$0xff] %v952_v6  ;;  %1048 = vst [vmem:[%s1931_s16 + $0x138] sm:$0xff] %v984_v7  ;;  %v778_v12 = vpop.f32.mrb[8].mxu0  ;;  %v874_v13 = vpop.f32.mrb[8].mxu1  ;;  %v579_v6 = vld [vmem:[%s1931_s16 + $0x98] sm:$0xff] }
 0x196   : > { %v953_v15 = vadd.f32 %v778_v12, %v568_v8  ;;  %v985_v16 = vadd.f32 %v874_v13, %v600_v9  ;;  %v780_v17 = vpop.f32.mrb[9].mxu0  ;;  %v876_v18 = vpop.f32.mrb[9].mxu1  ;;  %v611_v7 = vld [vmem:[%s1931_s16 + $0x198] sm:$0xff] }
 0x197   : > { %v954_v19 = vadd.f32 %v780_v17, %v569_v10  ;;  %v986_v20 = vadd.f32 %v876_v18, %v601_v11  ;;  %v580_v17 = vld [vmem:[%s1931_s16 + $0xa0] sm:$0xff] }
 0x198   : > { %1017 = vst [vmem:[%s1931_s16 + $0x40] sm:$0xff] %v953_v15  ;;  %1049 = vst [vmem:[%s1931_s16 + $0x140] sm:$0xff] %v985_v16  ;;  %v612_v18 = vld [vmem:[%s1931_s16 + $0x1a0] sm:$0xff] }
 0x199   : > { %1018 = vst [vmem:[%s1931_s16 + $0x48] sm:$0xff] %v954_v19  ;;  %1050 = vst [vmem:[%s1931_s16 + $0x148] sm:$0xff] %v986_v20  ;;  %v784_v25 = vpop.f32.mrb[10].mxu0  ;;  %v880_v26 = vpop.f32.mrb[10].mxu1  ;;  %v581_v19 = vld [vmem:[%s1931_s16 + $0xa8] sm:$0xff] }
 0x19a   : > { %v955_v27 = vadd.f32 %v784_v25, %v570_v21  ;;  %v987_v28 = vadd.f32 %v880_v26, %v602_v22  ;;  %v786_v29 = vpop.f32.mrb[11].mxu0  ;;  %v882_v30 = vpop.f32.mrb[11].mxu1  ;;  %v613_v20 = vld [vmem:[%s1931_s16 + $0x1a8] sm:$0xff] }
 0x19b   : > { %v956_v31 = vadd.f32 %v786_v29, %v571_v23  ;;  %v988_v14 = vadd.f32 %v882_v30, %v603_v24  ;;  %v582_v29 = vld [vmem:[%s1931_s16 + $0xb0] sm:$0xff] }
 0x19c   : > { %1019 = vst [vmem:[%s1931_s16 + $0x50] sm:$0xff] %v955_v27  ;;  %1051 = vst [vmem:[%s1931_s16 + $0x150] sm:$0xff] %v987_v28  ;;  %v614_v30 = vld [vmem:[%s1931_s16 + $0x1b0] sm:$0xff] }
 0x19d   : > { %1020 = vst [vmem:[%s1931_s16 + $0x58] sm:$0xff] %v956_v31  ;;  %1052 = vst [vmem:[%s1931_s16 + $0x158] sm:$0xff] %v988_v14  ;;  %v790_v36 = vpop.f32.mrb[12].mxu0  ;;  %v886_v37 = vpop.f32.mrb[12].mxu1  ;;  %v583_v31 = vld [vmem:[%s1931_s16 + $0xb8] sm:$0xff] }
 0x19e   : > { %v957_v38 = vadd.f32 %v790_v36, %v572_v32  ;;  %v989_v39 = vadd.f32 %v886_v37, %v604_v33  ;;  %v792_v40 = vpop.f32.mrb[13].mxu0  ;;  %v888_v41 = vpop.f32.mrb[13].mxu1  ;;  %v615_v14 = vld [vmem:[%s1931_s16 + $0x1b8] sm:$0xff] }
 0x19f   : > { %v958_v42 = vadd.f32 %v792_v40, %v573_v34  ;;  %v990_v43 = vadd.f32 %v888_v41, %v605_v35  ;;  %v584_v40 = vld [vmem:[%s1931_s16 + $0xc0] sm:$0xff] }
 0x1a0   : > { %1021 = vst [vmem:[%s1931_s16 + $0x60] sm:$0xff] %v957_v38  ;;  %1053 = vst [vmem:[%s1931_s16 + $0x160] sm:$0xff] %v989_v39  ;;  %v616_v41 = vld [vmem:[%s1931_s16 + $0x1c0] sm:$0xff] }
 0x1a1   : > { %1022 = vst [vmem:[%s1931_s16 + $0x68] sm:$0xff] %v958_v42  ;;  %1054 = vst [vmem:[%s1931_s16 + $0x168] sm:$0xff] %v990_v43  ;;  %v796_v48 = vpop.f32.mrb[14].mxu0  ;;  %v892_v49 = vpop.f32.mrb[14].mxu1  ;;  %v585_v42 = vld [vmem:[%s1931_s16 + $0xc8] sm:$0xff] }
 0x1a2   : > { %v959_v50 = vadd.f32 %v796_v48, %v574_v44  ;;  %v991_v51 = vadd.f32 %v892_v49, %v606_v45  ;;  %v798_v52 = vpop.f32.mrb[15].mxu0  ;;  %v894_v53 = vpop.f32.mrb[15].mxu1  ;;  %v617_v43 = vld [vmem:[%s1931_s16 + $0x1c8] sm:$0xff] }
 0x1a3   : > { %v960_v54 = vadd.f32 %v798_v52, %v575_v46  ;;  %v992_v55 = vadd.f32 %v894_v53, %v607_v47  ;;  %v586_v52 = vld [vmem:[%s1931_s16 + $0xd0] sm:$0xff] }
 0x1a4   : > { %1023 = vst [vmem:[%s1931_s16 + $0x70] sm:$0xff] %v959_v50  ;;  %1055 = vst [vmem:[%s1931_s16 + $0x170] sm:$0xff] %v991_v51  ;;  %v618_v53 = vld [vmem:[%s1931_s16 + $0x1d0] sm:$0xff] }
 0x1a5   : > { %1024 = vst [vmem:[%s1931_s16 + $0x78] sm:$0xff] %v960_v54  ;;  %1056 = vst [vmem:[%s1931_s16 + $0x178] sm:$0xff] %v992_v55  ;;  %v802_v60 = vpop.f32.mrb[16].mxu0  ;;  %v898_v61 = vpop.f32.mrb[16].mxu1  ;;  %v587_v54 = vld [vmem:[%s1931_s16 + $0xd8] sm:$0xff] }
 0x1a6   : > { %v961_v62 = vadd.f32 %v802_v60, %v576_v56  ;;  %v993_v63 = vadd.f32 %v898_v61, %v608_v57  ;;  %v804_v0 = vpop.f32.mrb[17].mxu0  ;;  %v900_v1 = vpop.f32.mrb[17].mxu1  ;;  %v619_v55 = vld [vmem:[%s1931_s16 + $0x1d8] sm:$0xff] }
 0x1a7   : > { %v962_v2 = vadd.f32 %v804_v0, %v577_v58  ;;  %v994_v3 = vadd.f32 %v900_v1, %v609_v59  ;;  %v588_v0 = vld [vmem:[%s1931_s16 + $0xe0] sm:$0xff] }
 0x1a8   : > { %1025 = vst [vmem:[%s1931_s16 + $0x80] sm:$0xff] %v961_v62  ;;  %1057 = vst [vmem:[%s1931_s16 + $0x180] sm:$0xff] %v993_v63  ;;  %v620_v1 = vld [vmem:[%s1931_s16 + $0x1e0] sm:$0xff] }
 0x1a9   : > { %1026 = vst [vmem:[%s1931_s16 + $0x88] sm:$0xff] %v962_v2  ;;  %1058 = vst [vmem:[%s1931_s16 + $0x188] sm:$0xff] %v994_v3  ;;  %v808_v8 = vpop.f32.mrb[18].mxu0  ;;  %v904_v9 = vpop.f32.mrb[18].mxu1  ;;  %v589_v2 = vld [vmem:[%s1931_s16 + $0xe8] sm:$0xff] }
 0x1aa   : > { %v963_v10 = vadd.f32 %v808_v8, %v578_v4  ;;  %v995_v11 = vadd.f32 %v904_v9, %v610_v5  ;;  %v810_v12 = vpop.f32.mrb[19].mxu0  ;;  %v906_v13 = vpop.f32.mrb[19].mxu1  ;;  %v621_v3 = vld [vmem:[%s1931_s16 + $0x1e8] sm:$0xff] }
 0x1ab   : > { %v964_v15 = vadd.f32 %v810_v12, %v579_v6  ;;  %v996_v16 = vadd.f32 %v906_v13, %v611_v7  ;;  %v590_v12 = vld [vmem:[%s1931_s16 + $0xf0] sm:$0xff] }
 0x1ac   : > { %1027 = vst [vmem:[%s1931_s16 + $0x90] sm:$0xff] %v963_v10  ;;  %1059 = vst [vmem:[%s1931_s16 + $0x190] sm:$0xff] %v995_v11  ;;  %v622_v13 = vld [vmem:[%s1931_s16 + $0x1f0] sm:$0xff] }
 0x1ad   : > { %1028 = vst [vmem:[%s1931_s16 + $0x98] sm:$0xff] %v964_v15  ;;  %1060 = vst [vmem:[%s1931_s16 + $0x198] sm:$0xff] %v996_v16  ;;  %v814_v21 = vpop.f32.mrb[20].mxu0  ;;  %v910_v22 = vpop.f32.mrb[20].mxu1  ;;  %v591_v15 = vld [vmem:[%s1931_s16 + $0xf8] sm:$0xff] }
 0x1ae   : > { %v965_v23 = vadd.f32 %v814_v21, %v580_v17  ;;  %v997_v24 = vadd.f32 %v910_v22, %v612_v18  ;;  %v816_v25 = vpop.f32.mrb[21].mxu0  ;;  %v912_v26 = vpop.f32.mrb[21].mxu1  ;;  %v623_v16 = vld [vmem:[%s1931_s16 + $0x1f8] sm:$0xff] }
 0x1af   : > { %v966_v27 = vadd.f32 %v816_v25, %v581_v19  ;;  %v998_v28 = vadd.f32 %v912_v26, %v613_v20  ;;  %v1098_v25 = vld [vmem:[%s1931_s16] sm:$0xff] (%p1757_p13)  ;;  %v1100_v26 = vld [vmem:[%s1931_s16 + $0x8] sm:$0xff] (%p1757_p13) }
 0x1b0   : > { %1029 = vst [vmem:[%s1931_s16 + $0xa0] sm:$0xff] %v965_v23  ;;  %1061 = vst [vmem:[%s1931_s16 + $0x1a0] sm:$0xff] %v997_v24 }
 0x1b1   : > { %1030 = vst [vmem:[%s1931_s16 + $0xa8] sm:$0xff] %v966_v27  ;;  %1062 = vst [vmem:[%s1931_s16 + $0x1a8] sm:$0xff] %v998_v28  ;;  %v820_v32 = vpop.f32.mrb[22].mxu0  ;;  %v916_v33 = vpop.f32.mrb[22].mxu1  ;;  %v1102_v27 = vld [vmem:[%s1931_s16 + $0x10] sm:$0xff] (%p1757_p13)  ;;  %v1104_v28 = vld [vmem:[%s1931_s16 + $0x18] sm:$0xff] (%p1757_p13) }
 0x1b2   : > { %v967_v34 = vadd.f32 %v820_v32, %v582_v29  ;;  %v999_v35 = vadd.f32 %v916_v33, %v614_v30  ;;  %v822_v36 = vpop.f32.mrb[23].mxu0  ;;  %v918_v37 = vpop.f32.mrb[23].mxu1  ;;  %v1106_v29 = vld [vmem:[%s1931_s16 + $0x20] sm:$0xff] (%p1757_p13)  ;;  %v1108_v30 = vld [vmem:[%s1931_s16 + $0x28] sm:$0xff] (%p1757_p13)  ;;  %1099 = vst [vmem:[%s2275_s5] sm:$0xff] (%p1757_p13), %v1098_v25  ;;  %1101 = vst [vmem:[%s2275_s5 + $0x8] sm:$0xff] (%p1757_p13), %v1100_v26 }
 0x1b3   : > { %v968_v38 = vadd.f32 %v822_v36, %v583_v31  ;;  %v1000_v39 = vadd.f32 %v918_v37, %v615_v14  ;;  %v1110_v31 = vld [vmem:[%s1931_s16 + $0x30] sm:$0xff] (%p1757_p13)  ;;  %v1112_v14 = vld [vmem:[%s1931_s16 + $0x38] sm:$0xff] (%p1757_p13)  ;;  %v1114_v32 = vld [vmem:[%s1931_s16 + $0x40] sm:$0xff] (%p1757_p13)  ;;  %1103 = vst [vmem:[%s2275_s5 + $0x90] sm:$0xff] (%p1757_p13), %v1102_v27 }
 0x1b4   : > { %1031 = vst [vmem:[%s1931_s16 + $0xb0] sm:$0xff] %v967_v34  ;;  %1063 = vst [vmem:[%s1931_s16 + $0x1b0] sm:$0xff] %v999_v35  ;;  %v1116_v33 = vld [vmem:[%s1931_s16 + $0x48] sm:$0xff] (%p1757_p13)  ;;  %v1118_v34 = vld [vmem:[%s1931_s16 + $0x50] sm:$0xff] (%p1757_p13) }
 0x1b5   : > { %1032 = vst [vmem:[%s1931_s16 + $0xb8] sm:$0xff] %v968_v38  ;;  %1064 = vst [vmem:[%s1931_s16 + $0x1b8] sm:$0xff] %v1000_v39  ;;  %v826_v44 = vpop.f32.mrb[24].mxu0  ;;  %v922_v45 = vpop.f32.mrb[24].mxu1  ;;  %v1120_v35 = vld [vmem:[%s1931_s16 + $0x58] sm:$0xff] (%p1757_p13)  ;;  %v1122_v36 = vld [vmem:[%s1931_s16 + $0x60] sm:$0xff] (%p1757_p13) }
 0x1b6   : > { %v969_v46 = vadd.f32 %v826_v44, %v584_v40  ;;  %v1001_v47 = vadd.f32 %v922_v45, %v616_v41  ;;  %v828_v48 = vpop.f32.mrb[25].mxu0  ;;  %v924_v49 = vpop.f32.mrb[25].mxu1  ;;  %v1124_v37 = vld [vmem:[%s1931_s16 + $0x68] sm:$0xff] (%p1757_p13)  ;;  %v1126_v38 = vld [vmem:[%s1931_s16 + $0x70] sm:$0xff] (%p1757_p13)  ;;  %1105 = vst [vmem:[%s2275_s5 + $0x98] sm:$0xff] (%p1757_p13), %v1104_v28  ;;  %1107 = vst [vmem:[%s2275_s5 + $0x120] sm:$0xff] (%p1757_p13), %v1106_v29 }
 0x1b7   : > { %v970_v50 = vadd.f32 %v828_v48, %v585_v42  ;;  %v1002_v51 = vadd.f32 %v924_v49, %v617_v43  ;;  %1109 = vst [vmem:[%s2275_s5 + $0x128] sm:$0xff] (%p1757_p13), %v1108_v30  ;;  %1111 = vst [vmem:[%s2275_s5 + $0x1b0] sm:$0xff] (%p1757_p13), %v1110_v31  ;;  %v1128_v39 = vld [vmem:[%s1931_s16 + $0x78] sm:$0xff] (%p1757_p13)  ;;  %v1130_v40 = vld [vmem:[%s1931_s16 + $0x80] sm:$0xff] (%p1757_p13) }
 0x1b8   : > { %1033 = vst [vmem:[%s1931_s16 + $0xc0] sm:$0xff] %v969_v46  ;;  %1065 = vst [vmem:[%s1931_s16 + $0x1c0] sm:$0xff] %v1001_v47  ;;  %v1132_v41 = vld [vmem:[%s1931_s16 + $0x88] sm:$0xff] (%p1757_p13)  ;;  %v1134_v42 = vld [vmem:[%s1931_s16 + $0x90] sm:$0xff] (%p1757_p13) }
 0x1b9   : > { %1034 = vst [vmem:[%s1931_s16 + $0xc8] sm:$0xff] %v970_v50  ;;  %1066 = vst [vmem:[%s1931_s16 + $0x1c8] sm:$0xff] %v1002_v51  ;;  %v832_v56 = vpop.f32.mrb[26].mxu0  ;;  %v928_v57 = vpop.f32.mrb[26].mxu1  ;;  %v1136_v43 = vld [vmem:[%s1931_s16 + $0x98] sm:$0xff] (%p1757_p13)  ;;  %v1138_v44 = vld [vmem:[%s1931_s16 + $0xa0] sm:$0xff] (%p1757_p13) }
 0x1ba   : > { %v971_v58 = vadd.f32 %v832_v56, %v586_v52  ;;  %v1003_v59 = vadd.f32 %v928_v57, %v618_v53  ;;  %v834_v60 = vpop.f32.mrb[27].mxu0  ;;  %v930_v61 = vpop.f32.mrb[27].mxu1  ;;  %1113 = vst [vmem:[%s2275_s5 + $0x1b8] sm:$0xff] (%p1757_p13), %v1112_v14  ;;  %1115 = vst [vmem:[%s2275_s5 + $0x240] sm:$0xff] (%p1757_p13), %v1114_v32  ;;  %v1140_v45 = vld [vmem:[%s1931_s16 + $0xa8] sm:$0xff] (%p1757_p13)  ;;  %v1162_v56 = vld [vmem:[%s1931_s16 + $0x100] sm:$0xff] (%p1757_p13) }
 0x1bb   : > { %v972_v62 = vadd.f32 %v834_v60, %v587_v54  ;;  %v1004_v63 = vadd.f32 %v930_v61, %v619_v55  ;;  %1117 = vst [vmem:[%s2275_s5 + $0x248] sm:$0xff] (%p1757_p13), %v1116_v33  ;;  %1119 = vst [vmem:[%s2275_s5 + $0x2d0] sm:$0xff] (%p1757_p13), %v1118_v34  ;;  %v1142_v46 = vld [vmem:[%s1931_s16 + $0xb0] sm:$0xff] (%p1757_p13)  ;;  %v1164_v57 = vld [vmem:[%s1931_s16 + $0x108] sm:$0xff] (%p1757_p13) }
 0x1bc   : > { %1035 = vst [vmem:[%s1931_s16 + $0xd0] sm:$0xff] %v971_v58  ;;  %1067 = vst [vmem:[%s1931_s16 + $0x1d0] sm:$0xff] %v1003_v59  ;;  %v1144_v47 = vld [vmem:[%s1931_s16 + $0xb8] sm:$0xff] (%p1757_p13)  ;;  %v1166_v58 = vld [vmem:[%s1931_s16 + $0x110] sm:$0xff] (%p1757_p13) }
 0x1bd   : > { %1036 = vst [vmem:[%s1931_s16 + $0xd8] sm:$0xff] %v972_v62  ;;  %1068 = vst [vmem:[%s1931_s16 + $0x1d8] sm:$0xff] %v1004_v63  ;;  %v838_v4 = vpop.f32.mrb[28].mxu0  ;;  %v934_v5 = vpop.f32.mrb[28].mxu1  ;;  %v1168_v59 = vld [vmem:[%s1931_s16 + $0x118] sm:$0xff] (%p1757_p13)  ;;  %v1170_v60 = vld [vmem:[%s1931_s16 + $0x120] sm:$0xff] (%p1757_p13) }
 0x1be   : > { %v973_v6 = vadd.f32 %v838_v4, %v588_v0  ;;  %v1005_v7 = vadd.f32 %v934_v5, %v620_v1  ;;  %v840_v8 = vpop.f32.mrb[29].mxu0  ;;  %v936_v9 = vpop.f32.mrb[29].mxu1  ;;  %1121 = vst [vmem:[%s2275_s5 + $0x2d8] sm:$0xff] (%p1757_p13), %v1120_v35  ;;  %1123 = vst [vmem:[%s2275_s5 + $0x360] sm:$0xff] (%p1757_p13), %v1122_v36  ;;  %v1172_v61 = vld [vmem:[%s1931_s16 + $0x128] sm:$0xff] (%p1757_p13)  ;;  %v1174_v62 = vld [vmem:[%s1931_s16 + $0x130] sm:$0xff] (%p1757_p13) }
 0x1bf   : > { %v974_v10 = vadd.f32 %v840_v8, %v589_v2  ;;  %v1006_v11 = vadd.f32 %v936_v9, %v621_v3  ;;  %1079 = sbr.rel (!%p1757_p13) target bundleno = 477 (0x1dd), region = 101  ;;  %1125 = vst [vmem:[%s2275_s5 + $0x368] sm:$0xff] (%p1757_p13), %v1124_v37  ;;  %1127 = vst [vmem:[%s2275_s5 + $0x3f0] sm:$0xff] (%p1757_p13), %v1126_v38  ;;  %v1146_v48 = vld [vmem:[%s1931_s16 + $0xc0] sm:$0xff] (%p1757_p13)  ;;  %v1176_v63 = vld [vmem:[%s1931_s16 + $0x138] sm:$0xff] (%p1757_p13) }
 0x1c0   : > { %1037 = vst [vmem:[%s1931_s16 + $0xe0] sm:$0xff] %v973_v6  ;;  %1069 = vst [vmem:[%s1931_s16 + $0x1e0] sm:$0xff] %v1005_v7  ;;  %v1148_v49 = vld [vmem:[%s1931_s16 + $0xc8] sm:$0xff] (%p1757_p13)  ;;  %v1178_v0 = vld [vmem:[%s1931_s16 + $0x140] sm:$0xff] (%p1757_p13) }
 0x1c1   : > { %1038 = vst [vmem:[%s1931_s16 + $0xe8] sm:$0xff] %v974_v10  ;;  %1070 = vst [vmem:[%s1931_s16 + $0x1e8] sm:$0xff] %v1006_v11  ;;  %v844_v17 = vpop.f32.mrb[30].mxu0  ;;  %v940_v18 = vpop.f32.mrb[30].mxu1  ;;  %v1180_v1 = vld [vmem:[%s1931_s16 + $0x148] sm:$0xff] (%p1757_p13)  ;;  %v1182_v2 = vld [vmem:[%s1931_s16 + $0x150] sm:$0xff] (%p1757_p13) }
 0x1c2   : > { %v975_v19 = vadd.f32 %v844_v17, %v590_v12  ;;  %v1007_v20 = vadd.f32 %v940_v18, %v622_v13  ;;  %v846_v21 = vpop.f32.mrb[31].mxu0  ;;  %v942_v22 = vpop.f32.mrb[31].mxu1  ;;  %1129 = vst [vmem:[%s2275_s5 + $0x3f8] sm:$0xff] (%p1757_p13), %v1128_v39  ;;  %1131 = vst [vmem:[%s2275_s5 + $0x480] sm:$0xff] (%p1757_p13), %v1130_v40  ;;  %v1184_v3 = vld [vmem:[%s1931_s16 + $0x158] sm:$0xff] (%p1757_p13)  ;;  %v1186_v4 = vld [vmem:[%s1931_s16 + $0x160] sm:$0xff] (%p1757_p13) }
 0x1c3   : > { %v976_v23 = vadd.f32 %v846_v21, %v591_v15  ;;  %v1008_v24 = vadd.f32 %v942_v22, %v623_v16  ;;  %1133 = vst [vmem:[%s2275_s5 + $0x488] sm:$0xff] (%p1757_p13), %v1132_v41  ;;  %1135 = vst [vmem:[%s2275_s5 + $0x510] sm:$0xff] (%p1757_p13), %v1134_v42  ;;  %v1150_v50 = vld [vmem:[%s1931_s16 + $0xd0] sm:$0xff] (%p1757_p13)  ;;  %v1188_v5 = vld [vmem:[%s1931_s16 + $0x168] sm:$0xff] (%p1757_p13) }
 0x1c4   : > { %1039 = vst [vmem:[%s1931_s16 + $0xf0] sm:$0xff] %v975_v19  ;;  %1071 = vst [vmem:[%s1931_s16 + $0x1f0] sm:$0xff] %v1007_v20  ;;  %v1152_v51 = vld [vmem:[%s1931_s16 + $0xd8] sm:$0xff] (%p1757_p13)  ;;  %v1190_v6 = vld [vmem:[%s1931_s16 + $0x170] sm:$0xff] (%p1757_p13) }
 0x1c5   : > { %1040 = vst [vmem:[%s1931_s16 + $0xf8] sm:$0xff] %v976_v23  ;;  %1072 = vst [vmem:[%s1931_s16 + $0x1f8] sm:$0xff] %v1008_v24  ;;  %v1192_v7 = vld [vmem:[%s1931_s16 + $0x178] sm:$0xff] (%p1757_p13)  ;;  %v1194_v8 = vld [vmem:[%s1931_s16 + $0x180] sm:$0xff] (%p1757_p13) }
 0x1c6   : > { %1137 = vst [vmem:[%s2275_s5 + $0x518] sm:$0xff] %v1136_v43  ;;  %1139 = vst [vmem:[%s2275_s5 + $0x5a0] sm:$0xff] %v1138_v44  ;;  %v1196_v9 = vld [vmem:[%s1931_s16 + $0x188] sm:$0xff]  ;;  %v1198_v10 = vld [vmem:[%s1931_s16 + $0x190] sm:$0xff] }
 0x1c7   : > { %1141 = vst [vmem:[%s2275_s5 + $0x5a8] sm:$0xff] %v1140_v45  ;;  %1143 = vst [vmem:[%s2275_s5 + $0x630] sm:$0xff] %v1142_v46  ;;  %v1154_v52 = vld [vmem:[%s1931_s16 + $0xe0] sm:$0xff]  ;;  %v1200_v11 = vld [vmem:[%s1931_s16 + $0x198] sm:$0xff] }
 0x1c8   : > { %1145 = vst [vmem:[%s2275_s5 + $0x638] sm:$0xff] %v1144_v47  ;;  %1147 = vst [vmem:[%s2275_s5 + $0x6c0] sm:$0xff] %v1146_v48  ;;  %v1156_v53 = vld [vmem:[%s1931_s16 + $0xe8] sm:$0xff]  ;;  %v1202_v12 = vld [vmem:[%s1931_s16 + $0x1a0] sm:$0xff] }
 0x1c9   : > { %1149 = vst [vmem:[%s2275_s5 + $0x6c8] sm:$0xff] %v1148_v49  ;;  %1151 = vst [vmem:[%s2275_s5 + $0x750] sm:$0xff] %v1150_v50  ;;  %v1204_v13 = vld [vmem:[%s1931_s16 + $0x1a8] sm:$0xff]  ;;  %v1206_v15 = vld [vmem:[%s1931_s16 + $0x1b0] sm:$0xff] }
 0x1ca   : > { %1153 = vst [vmem:[%s2275_s5 + $0x758] sm:$0xff] %v1152_v51  ;;  %1155 = vst [vmem:[%s2275_s5 + $0x7e0] sm:$0xff] %v1154_v52  ;;  %v1208_v16 = vld [vmem:[%s1931_s16 + $0x1b8] sm:$0xff]  ;;  %v1210_v17 = vld [vmem:[%s1931_s16 + $0x1c0] sm:$0xff] }
 0x1cb   : > { %1157 = vst [vmem:[%s2275_s5 + $0x7e8] sm:$0xff] %v1156_v53  ;;  %v1158_v54 = vld [vmem:[%s1931_s16 + $0xf0] sm:$0xff]  ;;  %1163 = vst [vmem:[%s2275_s5 + $0x900] sm:$0xff] %v1162_v56  ;;  %v1212_v18 = vld [vmem:[%s1931_s16 + $0x1c8] sm:$0xff] }
 0x1cc   : > { %v1160_v55 = vld [vmem:[%s1931_s16 + $0xf8] sm:$0xff]  ;;  %1159 = vst [vmem:[%s2275_s5 + $0x870] sm:$0xff] %v1158_v54  ;;  %1165 = vst [vmem:[%s2275_s5 + $0x908] sm:$0xff] %v1164_v57  ;;  %v1214_v19 = vld [vmem:[%s1931_s16 + $0x1d0] sm:$0xff] }
 0x1cd   : > { %1161 = vst [vmem:[%s2275_s5 + $0x878] sm:$0xff] %v1160_v55  ;;  %1167 = vst [vmem:[%s2275_s5 + $0x990] sm:$0xff] %v1166_v58  ;;  %v1216_v20 = vld [vmem:[%s1931_s16 + $0x1d8] sm:$0xff]  ;;  %v1218_v21 = vld [vmem:[%s1931_s16 + $0x1e0] sm:$0xff] }
 0x1ce   : > { %1169 = vst [vmem:[%s2275_s5 + $0x998] sm:$0xff] %v1168_v59  ;;  %1171 = vst [vmem:[%s2275_s5 + $0xa20] sm:$0xff] %v1170_v60  ;;  %v1220_v22 = vld [vmem:[%s1931_s16 + $0x1e8] sm:$0xff]  ;;  %v1222_v23 = vld [vmem:[%s1931_s16 + $0x1f0] sm:$0xff] }
 0x1cf   : > { %1173 = vst [vmem:[%s2275_s5 + $0xa28] sm:$0xff] %v1172_v61  ;;  %1175 = vst [vmem:[%s2275_s5 + $0xab0] sm:$0xff] %v1174_v62  ;;  %v1224_v24 = vld [vmem:[%s1931_s16 + $0x1f8] sm:$0xff] }
 0x1d0   : > { %1177 = vst [vmem:[%s2275_s5 + $0xab8] sm:$0xff] %v1176_v63  ;;  %1179 = vst [vmem:[%s2275_s5 + $0xb40] sm:$0xff] %v1178_v0 }
 0x1d1   : > { %1181 = vst [vmem:[%s2275_s5 + $0xb48] sm:$0xff] %v1180_v1  ;;  %1183 = vst [vmem:[%s2275_s5 + $0xbd0] sm:$0xff] %v1182_v2 }
 0x1d2   : > { %1185 = vst [vmem:[%s2275_s5 + $0xbd8] sm:$0xff] %v1184_v3  ;;  %1187 = vst [vmem:[%s2275_s5 + $0xc60] sm:$0xff] %v1186_v4 }
 0x1d3   : > { %1189 = vst [vmem:[%s2275_s5 + $0xc68] sm:$0xff] %v1188_v5  ;;  %1191 = vst [vmem:[%s2275_s5 + $0xcf0] sm:$0xff] %v1190_v6 }
 0x1d4   : > { %1193 = vst [vmem:[%s2275_s5 + $0xcf8] sm:$0xff] %v1192_v7  ;;  %1195 = vst [vmem:[%s2275_s5 + $0xd80] sm:$0xff] %v1194_v8 }
 0x1d5   : > { %1197 = vst [vmem:[%s2275_s5 + $0xd88] sm:$0xff] %v1196_v9  ;;  %1199 = vst [vmem:[%s2275_s5 + $0xe10] sm:$0xff] %v1198_v10 }
 0x1d6   : > { %1201 = vst [vmem:[%s2275_s5 + $0xe18] sm:$0xff] %v1200_v11  ;;  %1203 = vst [vmem:[%s2275_s5 + $0xea0] sm:$0xff] %v1202_v12 }
 0x1d7   : > { %1205 = vst [vmem:[%s2275_s5 + $0xea8] sm:$0xff] %v1204_v13  ;;  %1207 = vst [vmem:[%s2275_s5 + $0xf30] sm:$0xff] %v1206_v15 }
 0x1d8   : > { %1209 = vst [vmem:[%s2275_s5 + $0xf38] sm:$0xff] %v1208_v16  ;;  %1211 = vst [vmem:[%s2275_s5 + $0xfc0] sm:$0xff] %v1210_v17 }
 0x1d9   : > { %1213 = vst [vmem:[%s2275_s5 + $0xfc8] sm:$0xff] %v1212_v18  ;;  %1215 = vst [vmem:[%s2275_s5 + $0x1050] sm:$0xff] %v1214_v19 }
 0x1da   : > { %1217 = vst [vmem:[%s2275_s5 + $0x1058] sm:$0xff] %v1216_v20  ;;  %1219 = vst [vmem:[%s2275_s5 + $0x10e0] sm:$0xff] %v1218_v21 }
 0x1db   : > { %1221 = vst [vmem:[%s2275_s5 + $0x10e8] sm:$0xff] %v1220_v22  ;;  %1223 = vst [vmem:[%s2275_s5 + $0x1170] sm:$0xff] %v1222_v23 }
 0x1dc   : > { %1225 = vst [vmem:[%s2275_s5 + $0x1178] sm:$0xff] %v1224_v24 }
 0x1dd PF: > { %s13_s24 = sadd.s32 1, %s1622_s24   ;;  %s2459_s25 = sld [smem:[#allocation6_spill]] }
 0x1de   : > { %p2394_p6 = scmp.ge.s32.totalorder %s13_s24, 56   ;;  %s2460_s26 = sld [smem:[#allocation7_spill]] }
 0x1df   : > { %s2461_s12 = smov %s1578_s13  ;;  %s2462_s13 = smov %s1755_s7 }
 0x1e0   : > { %s2463_s14 = smov %s1586_s15  ;;  %s2464_s15 = smov %s1742_s9 }
 0x1e1   : > { %s2465_s16 = smov %s1594_s17  ;;  %s2466_s17 = smov %s1752_s3 }
 0x1e2   : > { %s2467_s18 = smov %s1610_s21  ;;  %s2468_s19 = smov %s1614_s22 }
 0x1e3   : > { %s2469_s20 = smov %s1618_s23  ;;  %s2470_s21 = smov %s2459_s25 }
 0x1e4   : > { %s2471_s22 = smov %s2460_s26  ;;  %s2472_s23 = smov %s2482_s28 }
 0x1e5   :  { %12 = sbr.rel (!%p2394_p6) target bundleno = 11 (0xb), region = 166 }

// kernel: head_forward.17
= control target key start
LH: loop header
LB: loop body
LE: loop exit
PB: predicated region body
PF: predicated region fallthrough
CT: control target
= control target key end

     0   :  { %8 = vsyncpa [#allocation3], 0  ;;  %s1490_s0 = inlined_call_operand.vmem [shape: f32[512,256], index: 0, kind: input, shape index: {}]   ;;  %s1491_s1 = inlined_call_operand.vmem [shape: f32[256,128], index: 1, kind: input, shape index: {}]   ;;  %s1492_s2 = inlined_call_operand.vmem [shape: f32[1,128], index: 2, kind: input, shape index: {}]   ;;  %s1493_s3 = inlined_call_operand.hbm [shape: f32[512,128], index: 3, kind: output, shape index: {}]  }
   0x1   :  { %10 = vsyncpa [#allocation3 + $0x1], 0  ;;  %s1106_s12 = smov 0   ;;  %s1108_s13 = smov 0  }
   0x2   :  { %s1110_s14 = smov 0   ;;  %s1112_s15 = smov 0  }
   0x3   :  { %s1114_s16 = smov 0   ;;  %s1116_s17 = smov 0  }
   0x4 LB: > { %s845_s18 = sadd.s32 4294967295, %s1080_s17   ;;  %s846_s19 = sadd.s32 4294967294, %s1080_s17   ;;  %s1080_s17 = sphi %s1116_s17, %s16_s17   ;;  %s1076_s16 = sphi %s1114_s16, %s1500_s16   ;;  %s1072_s15 = sphi %s1112_s15, %s1499_s15   ;;  %s1068_s14 = sphi %s1110_s14, %s1498_s14   ;;  %s1064_s13 = sphi %s1108_s13, %s1497_s13   ;;  %s1060_s12 = sphi %s1106_s12, %s1496_s12  }
   0x5   : > { %s35_s20 = sadd.s32 1, %s1076_s16  ;;  %s126_s21 = sadd.s32 1, %s1068_s14 }
   0x6   : > { %p37_p0 = scmp.ge.s32.totalorder %s35_s20, 2  ;;  %p136_p1 = scmp.ne.s32.totalorder %s1068_s14, %s1064_s13 }
   0x7   : > { %p137_p2 = scmp.eq.s32.totalorder %s845_s18, 1  ;;  %p142_p3 = scmp.ne.s32.totalorder %s1064_s13, %s1060_s12 }
   0x8   : > { %s1502_s20 = smov (%p37_p0, %s35_s20), 0  ;;  %p143_p5 = scmp.eq.s32.totalorder %s846_s19, 1 }
   0x9   : > { %p1146_p4 = por %p137_p2, %p136_p1  ;;  %s121_s23 = ssub.s32 %s1076_s16, %s1502_s20 }
   0xa   : > { %p851_p6 = scmp.ge.s32.totalorder %s1080_s17, 1  ;;  %p124_p7 = scmp.eq.s32.totalorder %s121_s23, 0 }
   0xb   : > { %p1153_p8 = por %p143_p5, %p142_p3  ;;  %p194_p9 = scmp.lt.s32.totalorder %s1080_s17, 3 }
   0xc   : > { %s1159_s25 = scalar_select %p124_p7, %s1068_s14, %s126_s21  }
   0xd   : > { %p195_p10 = pnand %p851_p6, %p194_p9 }
   0xe   : > { %v398_v0 = vld [vmem:[%s1491_s1] sm:$0xff] (!%p195_p10)  ;;  %v399_v1 = vld [vmem:[%s1491_s1 + $0x8] sm:$0xff] (!%p195_p10)  ;;  %v400_v2 = vld [vmem:[%s1491_s1 + $0x10] sm:$0xff] (!%p195_p10)  ;;  %s853_s5 = sshll.u32 (!%p195_p10), %s1072_s15, 5  ;;  %v1082_v3 = vmov (!%p195_p10), 0.0|0.0   ;;  %s231_s30 = sand.u32 (!%p195_p10), 1, %s1064_s13  }
   0xf   : > { %198 = sbr.rel (%p195_p10) target bundleno = 369 (0x171), region = 32  ;;  %864 = vmatprep.subr.bf16.mxu0 (!%p195_p10), %v1082_v3  ;;  %912 = vmatprep.subr.bf16.mxu1 (!%p195_p10), %v1082_v3  ;;  %v865_v4 = vpack.c.bf16 (!%p195_p10), %v399_v1, %v398_v0  ;;  %v401_v5 = vld [vmem:[%s1491_s1 + $0x18] sm:$0xff] (!%p195_p10)  ;;  %p236_p11 = scmp.lt.s32.totalorder (!%p195_p10), %s853_s5, 63  ;;  %v402_v7 = vld [vmem:[%s1491_s1 + $0x20] sm:$0xff] (!%p195_p10)  ;;  %v403_v8 = vld [vmem:[%s1491_s1 + $0x28] sm:$0xff] (!%p195_p10) }
  0x10   : > { %v868_v6 = vpack.c.bf16 (!%p195_p10), %v401_v5, %v400_v2  ;;  %v871_v9 = vpack.c.bf16 (!%p195_p10), %v403_v8, %v402_v7  ;;  %v404_v10 = vld [vmem:[%s1491_s1 + $0x30] sm:$0xff] (!%p195_p10)  ;;  %v405_v11 = vld [vmem:[%s1491_s1 + $0x38] sm:$0xff] (!%p195_p10)  ;;  %v406_v15 = vld [vmem:[%s1491_s1 + $0x40] sm:$0xff] (!%p195_p10)  ;;  %s852_s4 = sshll.u32 (!%p195_p10), %s231_s30, 8  ;;  %s1083_s19 = smov (!%p195_p10), [#allocation2]  }
  0x11   : > { %866 = vmatpush1.bf16.msra.mxu0 (!%p195_p10), %v865_v4  ;;  %928 = vmatpush1.bf16.msra.mxu1 (!%p195_p10), %v865_v4  ;;  %v874_v13 = vpack.c.bf16 (!%p195_p10), %v405_v11, %v404_v10  ;;  %v407_v16 = vld [vmem:[%s1491_s1 + $0x48] sm:$0xff] (!%p195_p10)  ;;  %v408_v18 = vld [vmem:[%s1491_s1 + $0x50] sm:$0xff] (!%p195_p10)  ;;  %v409_v19 = vld [vmem:[%s1491_s1 + $0x58] sm:$0xff] (!%p195_p10)  ;;  %s1369_s7 = scalar_lea.vmem (!%p195_p10), [#allocation2], %s852_s4  ;;  %s1006_s21 = sshll.u32 (!%p195_p10), %s1083_s19, 4  ;;  %s1007_s21 = int_to_ptr.vmem [resolvable:$false] %s1006_s21 }
  0x12   : > { %867 = vmatprep.subr.bf16.mxu0 (!%p195_p10), %v1082_v3  ;;  %913 = vmatprep.subr.bf16.mxu1 (!%p195_p10), %v1082_v3  ;;  %v877_v17 = vpack.c.bf16 (!%p195_p10), %v407_v16, %v406_v15  ;;  %v880_v20 = vpack.c.bf16 (!%p195_p10), %v409_v19, %v408_v18  ;;  %v410_v21 = vld [vmem:[%s1491_s1 + $0x60] sm:$0xff] (!%p195_p10)  ;;  %v411_v22 = vld [vmem:[%s1491_s1 + $0x68] sm:$0xff] (!%p195_p10)  ;;  %v412_v24 = vld [vmem:[%s1491_s1 + $0x70] sm:$0xff] (!%p195_p10)  ;;  %s734_s8 = sshll.u32 (!%p195_p10), %s1369_s7, 4  ;;  %s1008_s26 = scalar_lea.vmem (!%p195_p10), %s1007_s21, 8192  ;;  %s1436_s8 = int_to_ptr.vmem [resolvable:$true] %s734_s8 }
  0x13   : > { %v883_v23 = vpack.c.bf16 (!%p195_p10), %v411_v22, %v410_v21  ;;  %v413_v25 = vld [vmem:[%s1491_s1 + $0x78] sm:$0xff] (!%p195_p10)  ;;  %v414_v27 = vld [vmem:[%s1491_s1 + $0x80] sm:$0xff] (!%p195_p10)  ;;  %v415_v28 = vld [vmem:[%s1491_s1 + $0x88] sm:$0xff] (!%p195_p10)  ;;  %p1009_p1 = scmp.lt.s32.totalorder (!%p195_p10), %s1436_s8, %s1007_s21 }
  0x14   : > { %v886_v26 = vpack.c.bf16 (!%p195_p10), %v413_v25, %v412_v24  ;;  %v889_v29 = vpack.c.bf16 (!%p195_p10), %v415_v28, %v414_v27  ;;  %v416_v30 = vld [vmem:[%s1491_s1 + $0x90] sm:$0xff] (!%p195_p10)  ;;  %v417_v31 = vld [vmem:[%s1491_s1 + $0x98] sm:$0xff] (!%p195_p10)  ;;  %v418_v33 = vld [vmem:[%s1491_s1 + $0xa0] sm:$0xff] (!%p195_p10) }
  0x15   : > { %869 = vmatpush1.bf16.msra.mxu0 (!%p195_p10), %v868_v6  ;;  %929 = vmatpush1.bf16.msra.mxu1 (!%p195_p10), %v868_v6  ;;  %v892_v32 = vpack.c.bf16 (!%p195_p10), %v417_v31, %v416_v30  ;;  %v419_v34 = vld [vmem:[%s1491_s1 + $0xa8] sm:$0xff] (!%p195_p10)  ;;  %v420_v36 = vld [vmem:[%s1491_s1 + $0xb0] sm:$0xff] (!%p195_p10)  ;;  %v421_v37 = vld [vmem:[%s1491_s1 + $0xb8] sm:$0xff] (!%p195_p10) }
  0x16   : > { %s1504_s5 = smov (!%p236_p11, %s853_s5), 63  ;;  %870 = vmatprep.subr.bf16.mxu0 %v1082_v3  ;;  %914 = vmatprep.subr.bf16.mxu1 %v1082_v3  ;;  %v895_v35 = vpack.c.bf16 %v419_v34, %v418_v33  ;;  %v898_v38 = vpack.c.bf16 %v421_v37, %v420_v36  ;;  %v422_v39 = vld [vmem:[%s1491_s1 + $0xc0] sm:$0xff]  ;;  %v423_v40 = vld [vmem:[%s1491_s1 + $0xc8] sm:$0xff]  ;;  %v424_v42 = vld [vmem:[%s1491_s1 + $0xd0] sm:$0xff] }
  0x17   : > { %s862_s18 = sshll.u32 %s1504_s5, 4  ;;  %v901_v41 = vpack.c.bf16 %v423_v40, %v422_v39  ;;  %v425_v43 = vld [vmem:[%s1491_s1 + $0xd8] sm:$0xff]  ;;  %v426_v45 = vld [vmem:[%s1491_s1 + $0xe0] sm:$0xff]  ;;  %v427_v46 = vld [vmem:[%s1491_s1 + $0xe8] sm:$0xff] }
  0x18   : > { %s1187_s23 = scalar_lea.vmem %s1490_s0, %s862_s18  ;;  %v904_v44 = vpack.c.bf16 %v425_v43, %v424_v42  ;;  %v907_v47 = vpack.c.bf16 %v427_v46, %v426_v45  ;;  %v428_v48 = vld [vmem:[%s1491_s1 + $0xf0] sm:$0xff]  ;;  %v429_v49 = vld [vmem:[%s1491_s1 + $0xf8] sm:$0xff]  ;;  %s1002_s18 = scalar_lea.vmem %s1436_s8, 4096 }
  0x19   : > { %v335_v12 = vld [vmem:[%s1187_s23 + $0x8] sm:$0xff]  ;;  %872 = vmatpush1.bf16.msra.mxu0 %v871_v9  ;;  %930 = vmatpush1.bf16.msra.mxu1 %v871_v9  ;;  %v910_v50 = vpack.c.bf16 %v429_v49, %v428_v48  ;;  %v334_v51 = vld [vmem:[%s1187_s23] sm:$0xff]  ;;  %v337_v53 = vld [vmem:[%s1187_s23 + $0x18] sm:$0xff]  ;;  %p1003_p12 = scmp.ne.s32.totalorder %s1436_s8, %s1002_s18  ;;  %p1010_p2 = scmp.lt.s32.totalorder %s1008_s26, %s1002_s18 }
  0x1a   : > { %v367_v14 = vld [vmem:[%s1187_s23 + $0x108] sm:$0xff]  ;;  %873 = vmatprep.subr.bf16.mxu0 %v1082_v3  ;;  %915 = vmatprep.subr.bf16.mxu1 %v1082_v3  ;;  %v366_v52 = vld [vmem:[%s1187_s23 + $0x100] sm:$0xff]  ;;  %v369_v54 = vld [vmem:[%s1187_s23 + $0x118] sm:$0xff] }
  0x1b   : > { %494 = vmatprep.mubr.f32.mxu0 %v335_v12  ;;  %574 = vmatprep.mubr.f32.mxu1 %v367_v14  ;;  %v336_v55 = vld [vmem:[%s1187_s23 + $0x10] sm:$0xff]  ;;  %v339_v57 = vld [vmem:[%s1187_s23 + $0x28] sm:$0xff]  ;;  %v338_v59 = vld [vmem:[%s1187_s23 + $0x20] sm:$0xff]  ;;  %p1004_p13 = pnand %p1003_p12, %p1146_p4  ;;  %p1011_p3 = por %p1010_p2, %p1009_p1 }
  0x1c   : > { %v368_v56 = vld [vmem:[%s1187_s23 + $0x110] sm:$0xff]  ;;  %v371_v58 = vld [vmem:[%s1187_s23 + $0x128] sm:$0xff]  ;;  %v370_v60 = vld [vmem:[%s1187_s23 + $0x120] sm:$0xff] }
  0x1d   : > { %875 = vmatpush1.bf16.msra.mxu0 %v874_v13  ;;  %931 = vmatpush1.bf16.msra.mxu1 %v874_v13  ;;  %v341_v61 = vld [vmem:[%s1187_s23 + $0x38] sm:$0xff]  ;;  %v340_v63 = vld [vmem:[%s1187_s23 + $0x30] sm:$0xff]  ;;  %v343_v1 = vld [vmem:[%s1187_s23 + $0x48] sm:$0xff]  ;;  %p1005_p0 = pneg %p1004_p13 }
  0x1e   : > { %876 = vmatprep.subr.bf16.mxu0 %v1082_v3  ;;  %916 = vmatprep.subr.bf16.mxu1 %v1082_v3  ;;  %v373_v62 = vld [vmem:[%s1187_s23 + $0x138] sm:$0xff]  ;;  %v372_v0 = vld [vmem:[%s1187_s23 + $0x130] sm:$0xff]  ;;  %v375_v2 = vld [vmem:[%s1187_s23 + $0x148] sm:$0xff] }
  0x1f   : > { %v374_v4 = vld [vmem:[%s1187_s23 + $0x140] sm:$0xff]  ;;  %v345_v5 = vld [vmem:[%s1187_s23 + $0x58] sm:$0xff]  ;;  %v344_v7 = vld [vmem:[%s1187_s23 + $0x50] sm:$0xff]  ;;  %p1012_p5 = pnand %p1011_p3, %p1005_p0 }
  0x20   : > { %v377_v6 = vld [vmem:[%s1187_s23 + $0x158] sm:$0xff]  ;;  %v376_v8 = vld [vmem:[%s1187_s23 + $0x150] sm:$0xff]  ;;  %v347_v9 = vld [vmem:[%s1187_s23 + $0x68] sm:$0xff] }
  0x21   : > { %878 = vmatpush1.bf16.msra.mxu0 %v877_v17  ;;  %932 = vmatpush1.bf16.msra.mxu1 %v877_v17  ;;  %v379_v10 = vld [vmem:[%s1187_s23 + $0x168] sm:$0xff]  ;;  %v346_v11 = vld [vmem:[%s1187_s23 + $0x60] sm:$0xff]  ;;  %v349_v13 = vld [vmem:[%s1187_s23 + $0x78] sm:$0xff] }
  0x22   : > { %879 = vmatprep.subr.bf16.mxu0 %v1082_v3  ;;  %917 = vmatprep.subr.bf16.mxu1 %v1082_v3  ;;  %v378_v12 = vld [vmem:[%s1187_s23 + $0x160] sm:$0xff]  ;;  %v381_v14 = vld [vmem:[%s1187_s23 + $0x178] sm:$0xff]  ;;  %v348_v15 = vld [vmem:[%s1187_s23 + $0x70] sm:$0xff] }
  0x23   : > { %v380_v16 = vld [vmem:[%s1187_s23 + $0x170] sm:$0xff]  ;;  %v351_v17 = vld [vmem:[%s1187_s23 + $0x88] sm:$0xff]  ;;  %v350_v19 = vld [vmem:[%s1187_s23 + $0x80] sm:$0xff] }
  0x24   : > { %v383_v18 = vld [vmem:[%s1187_s23 + $0x188] sm:$0xff]  ;;  %v353_v21 = vld [vmem:[%s1187_s23 + $0x98] sm:$0xff]  ;;  %v384_v24 = vld [vmem:[%s1187_s23 + $0x190] sm:$0xff] }
  0x25   : > { %881 = vmatpush1.bf16.msra.mxu0 %v880_v20  ;;  %933 = vmatpush1.bf16.msra.mxu1 %v880_v20  ;;  %v382_v20 = vld [vmem:[%s1187_s23 + $0x180] sm:$0xff]  ;;  %v385_v22 = vld [vmem:[%s1187_s23 + $0x198] sm:$0xff]  ;;  %v355_v25 = vld [vmem:[%s1187_s23 + $0xa8] sm:$0xff] }
  0x26   : > { %882 = vmatprep.subr.bf16.mxu0 %v1082_v3  ;;  %918 = vmatprep.subr.bf16.mxu1 %v1082_v3  ;;  %v354_v27 = vld [vmem:[%s1187_s23 + $0xa0] sm:$0xff]  ;;  %v389_v30 = vld [vmem:[%s1187_s23 + $0x1b8] sm:$0xff]  ;;  %v356_v31 = vld [vmem:[%s1187_s23 + $0xb0] sm:$0xff] }
  0x27   : > { %v386_v28 = vld [vmem:[%s1187_s23 + $0x1a0] sm:$0xff]  ;;  %v359_v33 = vld [vmem:[%s1187_s23 + $0xc8] sm:$0xff]  ;;  %v361_v37 = vld [vmem:[%s1187_s23 + $0xd8] sm:$0xff] }
  0x28   : > { %v391_v34 = vld [vmem:[%s1187_s23 + $0x1c8] sm:$0xff]  ;;  %v390_v36 = vld [vmem:[%s1187_s23 + $0x1c0] sm:$0xff]  ;;  %v360_v39 = vld [vmem:[%s1187_s23 + $0xd0] sm:$0xff] }
  0x29   : > { %884 = vmatpush1.bf16.msra.mxu0 %v883_v23  ;;  %934 = vmatpush1.bf16.msra.mxu1 %v883_v23  ;;  %v352_v23 = vld [vmem:[%s1187_s23 + $0x90] sm:$0xff]  ;;  %v395_v42 = vld [vmem:[%s1187_s23 + $0x1e8] sm:$0xff]  ;;  %v362_v43 = vld [vmem:[%s1187_s23 + $0xe0] sm:$0xff] }
  0x2a   : > { %885 = vmatprep.subr.bf16.mxu0 %v1082_v3  ;;  %919 = vmatprep.subr.bf16.mxu1 %v1082_v3  ;;  %v392_v40 = vld [vmem:[%s1187_s23 + $0x1d0] sm:$0xff]  ;;  %v365_v45 = vld [vmem:[%s1187_s23 + $0xf8] sm:$0xff]  ;;  %v1365_v49 = vld [vmem:[%s1492_s2] ss:$0 sm:$0xff] }
  0x2b   : > { %v397_v46 = vld [vmem:[%s1187_s23 + $0x1f8] sm:$0xff]  ;;  %v396_v48 = vld [vmem:[%s1187_s23 + $0x1f0] sm:$0xff] }
  0x2d   : > { %887 = vmatpush1.bf16.msra.mxu0 %v886_v26  ;;  %935 = vmatpush1.bf16.msra.mxu1 %v886_v26  ;;  %v387_v26 = vld [vmem:[%s1187_s23 + $0x1a8] sm:$0xff] }
  0x2e   : > { %888 = vmatprep.subr.bf16.mxu0 %v1082_v3  ;;  %920 = vmatprep.subr.bf16.mxu1 %v1082_v3 }
  0x31   : > { %890 = vmatpush1.bf16.msra.mxu0 %v889_v29  ;;  %936 = vmatpush1.bf16.msra.mxu1 %v889_v29  ;;  %v357_v29 = vld [vmem:[%s1187_s23 + $0xb8] sm:$0xff] }
  0x32   : > { %891 = vmatprep.subr.bf16.mxu0 %v1082_v3  ;;  %921 = vmatprep.subr.bf16.mxu1 %v1082_v3 }
  0x35   : > { %893 = vmatpush1.bf16.msra.mxu0 %v892_v32  ;;  %937 = vmatpush1.bf16.msra.mxu1 %v892_v32  ;;  %v388_v32 = vld [vmem:[%s1187_s23 + $0x1b0] sm:$0xff] }
  0x36   : > { %894 = vmatprep.subr.bf16.mxu0 %v1082_v3  ;;  %922 = vmatprep.subr.bf16.mxu1 %v1082_v3 }
  0x39   : > { %896 = vmatpush1.bf16.msra.mxu0 %v895_v35  ;;  %938 = vmatpush1.bf16.msra.mxu1 %v895_v35  ;;  %v358_v35 = vld [vmem:[%s1187_s23 + $0xc0] sm:$0xff] }
  0x3a   : > { %897 = vmatprep.subr.bf16.mxu0 %v1082_v3  ;;  %923 = vmatprep.subr.bf16.mxu1 %v1082_v3 }
  0x3d   : > { %899 = vmatpush1.bf16.msra.mxu0 %v898_v38  ;;  %939 = vmatpush1.bf16.msra.mxu1 %v898_v38  ;;  %v393_v38 = vld [vmem:[%s1187_s23 + $0x1d8] sm:$0xff] }
  0x3e   : > { %900 = vmatprep.subr.bf16.mxu0 %v1082_v3  ;;  %924 = vmatprep.subr.bf16.mxu1 %v1082_v3 }
  0x41   : > { %902 = vmatpush1.bf16.msra.mxu0 %v901_v41  ;;  %940 = vmatpush1.bf16.msra.mxu1 %v901_v41  ;;  %v363_v41 = vld [vmem:[%s1187_s23 + $0xe8] sm:$0xff] }
  0x42   : > { %903 = vmatprep.subr.bf16.mxu0 %v1082_v3  ;;  %925 = vmatprep.subr.bf16.mxu1 %v1082_v3 }
  0x45   : > { %905 = vmatpush1.bf16.msra.mxu0 %v904_v44  ;;  %941 = vmatpush1.bf16.msra.mxu1 %v904_v44  ;;  %v394_v44 = vld [vmem:[%s1187_s23 + $0x1e0] sm:$0xff] }
  0x46   : > { %906 = vmatprep.subr.bf16.mxu0 %v1082_v3  ;;  %926 = vmatprep.subr.bf16.mxu1 %v1082_v3 }
  0x49   : > { %908 = vmatpush1.bf16.msra.mxu0 %v907_v47  ;;  %942 = vmatpush1.bf16.msra.mxu1 %v907_v47  ;;  %v364_v47 = vld [vmem:[%s1187_s23 + $0xf0] sm:$0xff] }
  0x4a   : > { %909 = vmatprep.subr.bf16.mxu0 %v1082_v3  ;;  %927 = vmatprep.subr.bf16.mxu1 %v1082_v3  ;;  %v342_v3 = vld [vmem:[%s1187_s23 + $0x40] sm:$0xff]  ;;  %s863_s23 = sshll.u32 %s1072_s15, 12  ;;  %s1444_s15 = scalar_lea.sflag [#allocation3], %s231_s30 }
  0x4b   : > { %s1434_s11 = scalar_lea.hbm %s1493_s3, %s863_s23 }
  0x4d   : > { %911 = vmatpush1.bf16.msra.mxu0 %v910_v50  ;;  %943 = vmatpush1.bf16.msra.mxu1 %v910_v50 }
  0x50   : > { %495 = vmatmul.mubr.f32.vlgmr.msra.gmra.mrb[0].mxu0 %v334_v51  ;;  %575 = vmatmul.mubr.f32.vlgmr.msra.gmra.mrb[0].mxu1 %v366_v52 }
  0x51   : > { %499 = vmatprep.mubr.f32.mxu0 %v337_v53  ;;  %579 = vmatprep.mubr.f32.mxu1 %v369_v54 }
  0x54   : > { %500 = vmatmul.mubr.f32.gmra.mrb[2].mxu0 %v336_v55  ;;  %580 = vmatmul.mubr.f32.gmra.mrb[2].mxu1 %v368_v56 }
  0x55   : > { %504 = vmatprep.mubr.f32.mxu0 %v339_v57  ;;  %584 = vmatprep.mubr.f32.mxu1 %v371_v58 }
  0x58   : > { %505 = vmatmul.mubr.f32.gmra.mrb[4].mxu0 %v338_v59  ;;  %585 = vmatmul.mubr.f32.gmra.mrb[4].mxu1 %v370_v60 }
  0x59   : > { %509 = vmatprep.mubr.f32.mxu0 %v341_v61  ;;  %589 = vmatprep.mubr.f32.mxu1 %v373_v62 }
  0x5c   : > { %510 = vmatmul.mubr.f32.gmra.mrb[6].mxu0 %v340_v63  ;;  %590 = vmatmul.mubr.f32.gmra.mrb[6].mxu1 %v372_v0 }
  0x5d   : > { %514 = vmatprep.mubr.f32.mxu0 %v343_v1  ;;  %594 = vmatprep.mubr.f32.mxu1 %v375_v2 }
  0x60   : > { %515 = vmatmul.mubr.f32.gmra.mrb[8].mxu0 %v342_v3  ;;  %595 = vmatmul.mubr.f32.gmra.mrb[8].mxu1 %v374_v4 }
  0x61   : > { %519 = vmatprep.mubr.f32.mxu0 %v345_v5  ;;  %599 = vmatprep.mubr.f32.mxu1 %v377_v6 }
  0x64   : > { %520 = vmatmul.mubr.f32.gmra.mrb[10].mxu0 %v344_v7  ;;  %600 = vmatmul.mubr.f32.gmra.mrb[10].mxu1 %v376_v8 }
  0x65   : > { %524 = vmatprep.mubr.f32.mxu0 %v347_v9  ;;  %604 = vmatprep.mubr.f32.mxu1 %v379_v10 }
  0x68   : > { %525 = vmatmul.mubr.f32.gmra.mrb[12].mxu0 %v346_v11  ;;  %605 = vmatmul.mubr.f32.gmra.mrb[12].mxu1 %v378_v12 }
  0x69   : > { %529 = vmatprep.mubr.f32.mxu0 %v349_v13  ;;  %609 = vmatprep.mubr.f32.mxu1 %v381_v14 }
  0x6c   : > { %530 = vmatmul.mubr.f32.gmra.mrb[14].mxu0 %v348_v15  ;;  %610 = vmatmul.mubr.f32.gmra.mrb[14].mxu1 %v380_v16 }
  0x6d   : > { %534 = vmatprep.mubr.f32.mxu0 %v351_v17  ;;  %614 = vmatprep.mubr.f32.mxu1 %v383_v18 }
  0x70   : > { %535 = vmatmul.mubr.f32.gmra.mrb[16].mxu0 %v350_v19  ;;  %615 = vmatmul.mubr.f32.gmra.mrb[16].mxu1 %v382_v20 }
  0x71   : > { %539 = vmatprep.mubr.f32.mxu0 %v353_v21  ;;  %619 = vmatprep.mubr.f32.mxu1 %v385_v22 }
  0x74   : > { %540 = vmatmul.mubr.f32.gmra.mrb[18].mxu0 %v352_v23  ;;  %620 = vmatmul.mubr.f32.gmra.mrb[18].mxu1 %v384_v24 }
  0x75   : > { %544 = vmatprep.mubr.f32.mxu0 %v355_v25  ;;  %624 = vmatprep.mubr.f32.mxu1 %v387_v26 }
  0x78   : > { %545 = vmatmul.mubr.f32.gmra.mrb[20].mxu0 %v354_v27  ;;  %625 = vmatmul.mubr.f32.gmra.mrb[20].mxu1 %v386_v28 }
  0x79   : > { %549 = vmatprep.mubr.f32.mxu0 %v357_v29  ;;  %629 = vmatprep.mubr.f32.mxu1 %v389_v30 }
  0x7c   : > { %550 = vmatmul.mubr.f32.gmra.mrb[22].mxu0 %v356_v31  ;;  %630 = vmatmul.mubr.f32.gmra.mrb[22].mxu1 %v388_v32 }
  0x7d   : > { %554 = vmatprep.mubr.f32.mxu0 %v359_v33  ;;  %634 = vmatprep.mubr.f32.mxu1 %v391_v34 }
  0x80   : > { %555 = vmatmul.mubr.f32.gmra.mrb[24].mxu0 %v358_v35  ;;  %635 = vmatmul.mubr.f32.gmra.mrb[24].mxu1 %v390_v36 }
  0x81   : > { %559 = vmatprep.mubr.f32.mxu0 %v361_v37  ;;  %639 = vmatprep.mubr.f32.mxu1 %v393_v38 }
  0x84   : > { %560 = vmatmul.mubr.f32.gmra.mrb[26].mxu0 %v360_v39  ;;  %640 = vmatmul.mubr.f32.gmra.mrb[26].mxu1 %v392_v40 }
  0x85   : > { %564 = vmatprep.mubr.f32.mxu0 %v363_v41  ;;  %644 = vmatprep.mubr.f32.mxu1 %v395_v42 }
  0x88   : > { %565 = vmatmul.mubr.f32.gmra.mrb[28].mxu0 %v362_v43  ;;  %645 = vmatmul.mubr.f32.gmra.mrb[28].mxu1 %v394_v44 }
  0x89   : > { %569 = vmatprep.mubr.f32.mxu0 %v365_v45  ;;  %649 = vmatprep.mubr.f32.mxu1 %v397_v46 }
  0x8c   : > { %570 = vmatmul.mubr.f32.gmra.mrb[30].mxu0 %v364_v47  ;;  %650 = vmatmul.mubr.f32.gmra.mrb[30].mxu1 %v396_v48 }
 0x123   : > { %v496_v50 = vpop.f32.mrb[0].mxu0  ;;  %v576_v51 = vpop.f32.mrb[0].mxu1 }
 0x124   : > { %v655_v52 = vadd.f32 %v1365_v49, %v496_v50  ;;  %v671_v53 = vadd.f32 %v1365_v49, %v576_v51  ;;  %v498_v54 = vpop.f32.mrb[1].mxu0  ;;  %v578_v55 = vpop.f32.mrb[1].mxu1 }
 0x126   : > { %687 = vst [vmem:[%s1369_s7] sm:$0xff] %v655_v52  ;;  %703 = vst [vmem:[%s1369_s7 + $0x80] sm:$0xff] %v671_v53 }
 0x127   : > { %v501_v56 = vpop.f32.mrb[2].mxu0  ;;  %v581_v57 = vpop.f32.mrb[2].mxu1 }
 0x128   : > { %v656_v58 = vadd.f32 %v1365_v49, %v501_v56  ;;  %v672_v59 = vadd.f32 %v1365_v49, %v581_v57  ;;  %v503_v60 = vpop.f32.mrb[3].mxu0  ;;  %v583_v61 = vpop.f32.mrb[3].mxu1 }
 0x12a   : > { %688 = vst [vmem:[%s1369_s7 + $0x8] sm:$0xff] %v656_v58  ;;  %704 = vst [vmem:[%s1369_s7 + $0x88] sm:$0xff] %v672_v59 }
 0x12b   : > { %v506_v62 = vpop.f32.mrb[4].mxu0  ;;  %v586_v63 = vpop.f32.mrb[4].mxu1 }
 0x12c   : > { %v657_v0 = vadd.f32 %v1365_v49, %v506_v62  ;;  %v673_v1 = vadd.f32 %v1365_v49, %v586_v63  ;;  %v508_v2 = vpop.f32.mrb[5].mxu0  ;;  %v588_v3 = vpop.f32.mrb[5].mxu1 }
 0x12e   : > { %689 = vst [vmem:[%s1369_s7 + $0x10] sm:$0xff] %v657_v0  ;;  %705 = vst [vmem:[%s1369_s7 + $0x90] sm:$0xff] %v673_v1 }
 0x12f   : > { %v511_v4 = vpop.f32.mrb[6].mxu0  ;;  %v591_v5 = vpop.f32.mrb[6].mxu1 }
 0x130   : > { %v658_v6 = vadd.f32 %v1365_v49, %v511_v4  ;;  %v674_v7 = vadd.f32 %v1365_v49, %v591_v5  ;;  %v513_v8 = vpop.f32.mrb[7].mxu0  ;;  %v593_v9 = vpop.f32.mrb[7].mxu1 }
 0x132   : > { %690 = vst [vmem:[%s1369_s7 + $0x18] sm:$0xff] %v658_v6  ;;  %706 = vst [vmem:[%s1369_s7 + $0x98] sm:$0xff] %v674_v7 }
 0x133   : > { %v516_v10 = vpop.f32.mrb[8].mxu0  ;;  %v596_v11 = vpop.f32.mrb[8].mxu1 }
 0x134   : > { %v659_v12 = vadd.f32 %v1365_v49, %v516_v10  ;;  %v675_v13 = vadd.f32 %v1365_v49, %v596_v11  ;;  %v518_v14 = vpop.f32.mrb[9].mxu0  ;;  %v598_v15 = vpop.f32.mrb[9].mxu1 }
 0x136   : > { %691 = vst [vmem:[%s1369_s7 + $0x20] sm:$0xff] %v659_v12  ;;  %707 = vst [vmem:[%s1369_s7 + $0xa0] sm:$0xff] %v675_v13 }
 0x137   : > { %v521_v16 = vpop.f32.mrb[10].mxu0  ;;  %v601_v17 = vpop.f32.mrb[10].mxu1 }
 0x138   : > { %v660_v18 = vadd.f32 %v1365_v49, %v521_v16  ;;  %v676_v19 = vadd.f32 %v1365_v49, %v601_v17  ;;  %v523_v20 = vpop.f32.mrb[11].mxu0  ;;  %v603_v21 = vpop.f32.mrb[11].mxu1 }
 0x13a   : > { %692 = vst [vmem:[%s1369_s7 + $0x28] sm:$0xff] %v660_v18  ;;  %708 = vst [vmem:[%s1369_s7 + $0xa8] sm:$0xff] %v676_v19 }
 0x13b   : > { %v526_v22 = vpop.f32.mrb[12].mxu0  ;;  %v606_v23 = vpop.f32.mrb[12].mxu1 }
 0x13c   : > { %v661_v24 = vadd.f32 %v1365_v49, %v526_v22  ;;  %v677_v25 = vadd.f32 %v1365_v49, %v606_v23  ;;  %v528_v26 = vpop.f32.mrb[13].mxu0  ;;  %v608_v27 = vpop.f32.mrb[13].mxu1 }
 0x13e   : > { %693 = vst [vmem:[%s1369_s7 + $0x30] sm:$0xff] %v661_v24  ;;  %709 = vst [vmem:[%s1369_s7 + $0xb0] sm:$0xff] %v677_v25 }
 0x13f   : > { %v531_v28 = vpop.f32.mrb[14].mxu0  ;;  %v611_v29 = vpop.f32.mrb[14].mxu1 }
 0x140   : > { %v662_v30 = vadd.f32 %v1365_v49, %v531_v28  ;;  %v678_v31 = vadd.f32 %v1365_v49, %v611_v29  ;;  %v533_v32 = vpop.f32.mrb[15].mxu0  ;;  %v613_v33 = vpop.f32.mrb[15].mxu1 }
 0x142   : > { %694 = vst [vmem:[%s1369_s7 + $0x38] sm:$0xff] %v662_v30  ;;  %710 = vst [vmem:[%s1369_s7 + $0xb8] sm:$0xff] %v678_v31 }
 0x143   : > { %v536_v34 = vpop.f32.mrb[16].mxu0  ;;  %v616_v35 = vpop.f32.mrb[16].mxu1 }
 0x144   : > { %v663_v36 = vadd.f32 %v1365_v49, %v536_v34  ;;  %v679_v37 = vadd.f32 %v1365_v49, %v616_v35  ;;  %v538_v38 = vpop.f32.mrb[17].mxu0  ;;  %v618_v39 = vpop.f32.mrb[17].mxu1 }
 0x146   : > { %695 = vst [vmem:[%s1369_s7 + $0x40] sm:$0xff] %v663_v36  ;;  %711 = vst [vmem:[%s1369_s7 + $0xc0] sm:$0xff] %v679_v37 }
 0x147   : > { %v541_v40 = vpop.f32.mrb[18].mxu0  ;;  %v621_v41 = vpop.f32.mrb[18].mxu1 }
 0x148   : > { %v664_v42 = vadd.f32 %v1365_v49, %v541_v40  ;;  %v680_v43 = vadd.f32 %v1365_v49, %v621_v41  ;;  %v543_v44 = vpop.f32.mrb[19].mxu0  ;;  %v623_v45 = vpop.f32.mrb[19].mxu1 }
 0x14a   : > { %696 = vst [vmem:[%s1369_s7 + $0x48] sm:$0xff] %v664_v42  ;;  %712 = vst [vmem:[%s1369_s7 + $0xc8] sm:$0xff] %v680_v43 }
 0x14b   : > { %v546_v46 = vpop.f32.mrb[20].mxu0  ;;  %v626_v47 = vpop.f32.mrb[20].mxu1 }
 0x14c   : > { %v665_v48 = vadd.f32 %v1365_v49, %v546_v46  ;;  %v681_v50 = vadd.f32 %v1365_v49, %v626_v47  ;;  %v548_v51 = vpop.f32.mrb[21].mxu0  ;;  %v628_v52 = vpop.f32.mrb[21].mxu1 }
 0x14e   : > { %697 = vst [vmem:[%s1369_s7 + $0x50] sm:$0xff] %v665_v48  ;;  %713 = vst [vmem:[%s1369_s7 + $0xd0] sm:$0xff] %v681_v50 }
 0x14f   : > { %v551_v53 = vpop.f32.mrb[22].mxu0  ;;  %v631_v54 = vpop.f32.mrb[22].mxu1 }
 0x150   : > { %v666_v55 = vadd.f32 %v1365_v49, %v551_v53  ;;  %v682_v56 = vadd.f32 %v1365_v49, %v631_v54  ;;  %v553_v57 = vpop.f32.mrb[23].mxu0  ;;  %v633_v58 = vpop.f32.mrb[23].mxu1 }
 0x152   : > { %698 = vst [vmem:[%s1369_s7 + $0x58] sm:$0xff] %v666_v55  ;;  %714 = vst [vmem:[%s1369_s7 + $0xd8] sm:$0xff] %v682_v56 }
 0x153   : > { %v556_v59 = vpop.f32.mrb[24].mxu0  ;;  %v636_v60 = vpop.f32.mrb[24].mxu1 }
 0x154   : > { %v667_v61 = vadd.f32 %v1365_v49, %v556_v59  ;;  %v683_v62 = vadd.f32 %v1365_v49, %v636_v60  ;;  %v558_v63 = vpop.f32.mrb[25].mxu0  ;;  %v638_v0 = vpop.f32.mrb[25].mxu1 }
 0x156   : > { %699 = vst [vmem:[%s1369_s7 + $0x60] sm:$0xff] %v667_v61  ;;  %715 = vst [vmem:[%s1369_s7 + $0xe0] sm:$0xff] %v683_v62 }
 0x157   : > { %v561_v1 = vpop.f32.mrb[26].mxu0  ;;  %v641_v2 = vpop.f32.mrb[26].mxu1 }
 0x158   : > { %v668_v3 = vadd.f32 %v1365_v49, %v561_v1  ;;  %v684_v4 = vadd.f32 %v1365_v49, %v641_v2  ;;  %v563_v5 = vpop.f32.mrb[27].mxu0  ;;  %v643_v6 = vpop.f32.mrb[27].mxu1 }
 0x15a   : > { %700 = vst [vmem:[%s1369_s7 + $0x68] sm:$0xff] %v668_v3  ;;  %716 = vst [vmem:[%s1369_s7 + $0xe8] sm:$0xff] %v684_v4 }
 0x15b   : > { %v566_v7 = vpop.f32.mrb[28].mxu0  ;;  %v646_v8 = vpop.f32.mrb[28].mxu1 }
 0x15c   : > { %v669_v9 = vadd.f32 %v1365_v49, %v566_v7  ;;  %v685_v10 = vadd.f32 %v1365_v49, %v646_v8  ;;  %v568_v11 = vpop.f32.mrb[29].mxu0  ;;  %v648_v12 = vpop.f32.mrb[29].mxu1 }
 0x15e   : > { %701 = vst [vmem:[%s1369_s7 + $0x70] sm:$0xff] %v669_v9  ;;  %717 = vst [vmem:[%s1369_s7 + $0xf0] sm:$0xff] %v685_v10 }
 0x15f   : > { %v571_v13 = vpop.f32.mrb[30].mxu0  ;;  %v651_v14 = vpop.f32.mrb[30].mxu1 }
 0x160   : > { %v670_v15 = vadd.f32 %v1365_v49, %v571_v13  ;;  %v686_v16 = vadd.f32 %v1365_v49, %v651_v14  ;;  %v573_v17 = vpop.f32.mrb[31].mxu0  ;;  %v653_v18 = vpop.f32.mrb[31].mxu1 }
 0x162   : > { %702 = vst [vmem:[%s1369_s7 + $0x78] sm:$0xff] %v670_v15  ;;  %718 = vst [vmem:[%s1369_s7 + $0xf8] sm:$0xff] %v686_v16 }
 0x163   : > { %1015 = shalt.err (!%p1012_p5)
}
 0x164   : > { %s1016_s27 = scalar_lea.hbm %s1434_s11, 4096  ;;  %s1020_s30 = scalar_lea.hbm %s1493_s3, 8192 }
 0x165   : > { %p1017_p6 = scmp.ne.s32.totalorder %s1434_s11, %s1016_s27  ;;  %p1021_p10 = scmp.lt.u32.totalorder %s1434_s11, %s1493_s3 }
 0x166   : > { %p1022_p11 = scmp.lt.u32.totalorder %s1020_s30, %s1016_s27  ;;  %p1024_p13 = scmp.lt.u32.totalorder %s1016_s27, %s1434_s11 }
 0x167   : > { %p1018_p7 = pnand %p1017_p6, %p1146_p4 }
 0x168   : > { %p1023_p12 = por %p1022_p11, %p1021_p10 }
 0x169   : > { %p1019_p9 = pneg %p1018_p7 }
 0x16a   : > { %p1025_p0 = por %p1024_p13, %p1023_p12 }
 0x16c   : > { %p1026_p1 = pnand %p1025_p0, %p1019_p9 }
 0x16e   : > { %1029 = shalt.err (!%p1026_p1)
}
 0x16f   : > { %s1084_s6 = smov 128   ;;  %s1085_s7 = smov 8  }
 0x170   : > { %944 = dma.vmem_to_hbm [thread:$0]  (%p1146_p4), %s1436_s8, 4096, %s1434_s11, %s1444_s15, %s1084_s6, %s1084_s6, %s1085_s7  }
 0x171 PF: > { %p950_p2 = scmp.ge.s32.totalorder %s1080_s17, 2  ;;  %s749_s23 = sand.u32 1, %s1060_s12  }
 0x172   : > { %s750_s9 = scalar_lea.sflag [#allocation3], %s749_s23 }
 0x173   : > { %p947_p3 = pnand %p950_p2, %p1153_p8 }
 0x175   : > { %1055 = dma.done.wait (!%p947_p3), %s750_s9, 4096  }
 0x176   : > { %1057 = vsyncadd (!%p947_p3), %s750_s9, 4294963200  ;;  %s16_s17 = sadd.s32 1, %s1080_s17   ;;  %s1496_s12 = smov %s1064_s13 }
 0x177   : > { %p13_p5 = scmp.ge.s32.totalorder %s16_s17, 4   ;;  %s1497_s13 = smov %s1068_s14 }
 0x178   : > { %s1498_s14 = smov %s1159_s25  ;;  %s1499_s15 = smov %s1076_s16 }
 0x179   : > { %s1500_s16 = smov %s1502_s20  ;;  %15 = sbr.rel (!%p13_p5) target bundleno = 4 (0x4), region = 77 }
 0x180   :  { %755 = vsyncpa [#allocation3], 1 }
 0x181   :  { %757 = vsyncpa [#allocation3 + $0x1], 1 }

</bundles_post_ra>
